<compile_context>
chip_gen: v5e
topology: v5e:2x2
jax: 0.10.0
libtpu: 0.0.40
codegen_flags: <defaults>
</compile_context>

<pallas_src>
import functools

import jax
import jax.numpy as jnp
from jax import lax
from jax.experimental import pallas as pl
from jax.experimental.pallas import tpu as pltpu

NEG_INF = -1e30


# --------------------------- fused Pallas kernel -----------------------------

def _fused_hetero_gnn_kernel(
    # graph + input features
    adj_ref, x_s_ref, x_d_ref,
    # layer 1: fused SAGEConv weights [W_l ; W_r], bias (lin_l only)
    w1_to_ref, b1_to_ref, w1_rv_ref, b1_rv_ref,
    # layer 2: GATv2Conv, per-head packed weights (H, h1, 2C) / biases (H, 1, 2C)
    w2s_ref, b2s_ref, w2d_ref, b2d_ref,
    att_to_ref, bias_to_ref, att_rv_ref, bias_rv_ref,
    # layer 3: fused SAGEConv weights
    w3_to_ref, b3_to_ref, w3_rv_ref, b3_rv_ref,
    # classifier one-hot gather matrices (bf16, exact)
    sel_u_ref, sel_d_ref,
    # output (1, E) lane-dense
    o_ref,
    # VMEM scratch: GAT head-sum accumulators
    acc_d_ref, acc_s_ref,
    *, num_heads, gat_channels):
  f32 = jnp.float32
  bf16 = jnp.bfloat16
  C = gat_channels

  adj = adj_ref[...]                       # (Nd, Ns) f32 0/1 -- GAT mask, 'to'
  adj_t = jnp.transpose(adj)               # (Ns, Nd)         -- GAT mask, 'rev_to'

  # mean-aggregation scales folded into the adjacency ONCE (reused by layers 1 & 3);
  # bf16 MXU copies (1/deg not exact in bf16, matched by the reference, <<5e-2 tol).
  deg_d = jnp.sum(adj, axis=1, keepdims=True)
  deg_s = jnp.sum(adj_t, axis=1, keepdims=True)
  inv_d = jnp.where(deg_d > 0, pl.reciprocal(jnp.maximum(deg_d, 1.0), approx=True), 0.0)
  inv_s = jnp.where(deg_s > 0, pl.reciprocal(jnp.maximum(deg_s, 1.0), approx=True), 0.0)
  adj_m = (adj * inv_d).astype(bf16)       # (Nd, Ns)
  adj_tm = (adj_t * inv_s).astype(bf16)    # (Ns, Nd)

  def sage(adj_mean_bf, x_src_bf, x_root, w_ref, b_ref, relu):
    # PyG SAGEConv(normalize=True): lin_l(mean_j x_j) + lin_r(x_i), then L2-normalize.
    # lin_l/lin_r fused into one matmul: [agg | x_root] @ [W_l ; W_r]  (K = 2*feat).
    agg = jnp.dot(adj_mean_bf, x_src_bf, preferred_element_type=f32)
    z = jnp.concatenate([agg, x_root], axis=-1).astype(bf16)   # 128-aligned lane concat
    out = jnp.dot(z, w_ref[...], preferred_element_type=f32) + b_ref[...]
    ssq = jnp.sum(out * out, axis=-1, keepdims=True)
    out = out * lax.rsqrt(jnp.maximum(ssq, 1e-24))             # EUP rsqrt, no sqrt+div
    if relu:
      out = jnp.maximum(out, 0.0)
    return out

  x_s = x_s_ref[...]
  x_d = x_d_ref[...]

  # ---------------- layer 1: HeteroConv(SAGEConv) + relu ----------------
  x_d1 = sage(adj_m, x_s.astype(bf16), x_d, w1_to_ref, b1_to_ref, True)
  x_s1 = sage(adj_tm, x_d.astype(bf16), x_s, w1_rv_ref, b1_rv_ref, True)
  # TODO(synk): F.dropout(p=0.4) implemented as eval-mode identity (no stochastic mask).

  # ------- layer 2: HeteroConv(GATv2Conv, heads=H, concat=False) + relu -------
  xs1_bf = x_s1.astype(bf16)
  xd1_bf = x_d1.astype(bf16)
  acc_d_ref[...] = jnp.zeros_like(acc_d_ref)
  acc_s_ref[...] = jnp.zeros_like(acc_s_ref)

  def gat_head(mask, xl, xr, att_row):
    # GATv2: e = att . leaky_relu(lin_l(x_src) + lin_r(x_dst), 0.2), softmax over src,
    # out = sum_src alpha * lin_l(x_src).
    s = xr[:, None, :] + xl[None, :, :]                    # (n_dst, n_src, C)
    s = jnp.maximum(s, 0.2 * s)                            # LeakyReLU(0.2)
    # att-weighted reduce kept on VPU+XLU (see header note on the MXU variant).
    e = jnp.sum(s * att_row[None], axis=-1)                # (n_dst, n_src)
    e = jnp.where(mask > 0, e, NEG_INF)
    m = jnp.max(e, axis=1, keepdims=True)
    p = jnp.exp(e - m) * mask                              # mask also zeroes isolated-dst rows
    denom = jnp.sum(p, axis=1, keepdims=True)
    alpha = p * pl.reciprocal(jnp.maximum(denom, 1e-20), approx=True)
    return jnp.dot(alpha.astype(bf16), xl.astype(bf16), preferred_element_type=f32)

  def head_body(h, carry):
    # per-head lin_l / lin_r for both directions: one (N, h1) @ (h1, 2C) matmul per type
    p_s = jnp.dot(xs1_bf, w2s_ref[h], preferred_element_type=f32) + b2s_ref[h]  # (Ns, 2C)
    p_d = jnp.dot(xd1_bf, w2d_ref[h], preferred_element_type=f32) + b2d_ref[h]  # (Nd, 2C)
    xl_to, xr_rv = p_s[:, :C], p_s[:, C:]     # snorna: lin_l('to'), lin_r('rev_to')
    xr_to, xl_rv = p_d[:, :C], p_d[:, C:]     # disease: lin_r('to'), lin_l('rev_to')
    acc_d_ref[...] += gat_head(adj, xl_to, xr_to, att_to_ref[h])
    acc_s_ref[...] += gat_head(adj_t, xl_rv, xr_rv, att_rv_ref[h])
    return carry

  # rolled loop over heads (not unrolled) -> bounded vreg live ranges, no VMEM spills
  lax.fori_loop(0, num_heads, head_body, 0)

  inv_h = 1.0 / num_heads                     # concat=False -> mean over heads
  x_d2 = jnp.maximum(acc_d_ref[...] * inv_h + bias_to_ref[...], 0.0)
  x_s2 = jnp.maximum(acc_s_ref[...] * inv_h + bias_rv_ref[...], 0.0)
  # TODO(synk): dropout after layer 2 is also an eval-mode identity.

  # ---------------- layer 3: HeteroConv(SAGEConv), no relu ----------------
  x_d3 = sage(adj_m, x_s2.astype(bf16), x_d2, w3_to_ref, b3_to_ref, False)
  x_s3 = sage(adj_tm, x_d2.astype(bf16), x_s2, w3_rv_ref, b3_rv_ref, False)

  # ------------- classifier: (x_snorna[u] * x_disease[d]).sum(-1) -------------
  a = jnp.dot(sel_u_ref[...], x_s3.astype(bf16), preferred_element_type=f32)   # (E, h3)
  b = jnp.dot(sel_d_ref[...], x_d3.astype(bf16), preferred_element_type=f32)   # (E, h3)
  prod = a * b
  ones = jnp.ones((1, prod.shape[1]), f32)
  # lane-dense (1, E) output via a B-transposed contraction (no (E,1) masked column store)
  o_ref[...] = lax.dot_general(ones, prod, (((1,), (1,)), ((), ())),
                               preferred_element_type=f32)


# ------------------------------- wrapper --------------------------------------

def hetero_gnn_forward(packed, x_s, x_d, adj, sel_u, sel_d, *, num_heads, hidden):
  n_s, n_d = x_s.shape[0], x_d.shape[0]
  n_edges = sel_u.shape[0]
  kernel = functools.partial(_fused_hetero_gnn_kernel,
                             num_heads=num_heads, gat_channels=hidden[1])
  out = pl.pallas_call(
      kernel,
      out_shape=jax.ShapeDtypeStruct((1, n_edges), jnp.float32),
      scratch_shapes=[pltpu.VMEM((n_d, hidden[1]), jnp.float32),
                      pltpu.VMEM((n_s, hidden[1]), jnp.float32)],
      # ~2 MiB actually resident; keep the scoped-VMEM ask small (v7x has 64 MiB total)
      compiler_params=pltpu.CompilerParams(vmem_limit_bytes=8 * 1024 * 1024),
  )(adj, x_s, x_d, *packed, sel_u, sel_d)
  return out[0]


# --------------------------- params & packing ---------------------------------

def init_params(key, f_s, f_d, hidden, num_heads):
  h1, h2, h3 = hidden
  ks = jax.random.split(key, 6)

  def sage_p(k, in_src, in_dst, out):
    k1, k2, k3 = jax.random.split(k, 3)
    return {
        "w_l": jax.random.normal(k1, (in_src, out), jnp.float32) / jnp.sqrt(in_src),
        "b_l": 0.1 * jax.random.normal(k2, (1, out), jnp.float32),
        "w_r": jax.random.normal(k3, (in_dst, out), jnp.float32) / jnp.sqrt(in_dst),
    }

  def gat_p(k, in_src, in_dst, out, heads):
    k1, k2, k3, k4, k5, k6 = jax.random.split(k, 6)
    return {
        "w_l": jax.random.normal(k1, (in_src, heads * out), jnp.float32) / jnp.sqrt(in_src),
        "b_l": 0.1 * jax.random.normal(k2, (1, heads * out), jnp.float32),
        "w_r": jax.random.normal(k3, (in_dst, heads * out), jnp.float32) / jnp.sqrt(in_dst),
        "b_r": 0.1 * jax.random.normal(k4, (1, heads * out), jnp.float32),
        "att": jax.random.normal(k5, (heads, out), jnp.float32) / jnp.sqrt(out),
        "bias": 0.1 * jax.random.normal(k6, (1, out), jnp.float32),
    }

  return {
      "l1_to": sage_p(ks[0], f_s, f_d, h1),
      "l1_rev": sage_p(ks[1], f_d, f_s, h1),
      "l2_to": gat_p(ks[2], h1, h1, h2, num_heads),
      "l2_rev": gat_p(ks[3], h1, h1, h2, num_heads),
      "l3_to": sage_p(ks[4], h2, h2, h3),
      "l3_rev": sage_p(ks[5], h2, h2, h3),
  }


def pack_params(params, *, num_heads, hidden):
  # Done once, outside the per-forward path:
  #  * SAGE: [W_l ; W_r] fused along the input axis, bf16 (single K=2*feat matmul).
  #  * GAT: per-head, per input node type [lin_l | lin_r] packed head-major
  #    (H, h1, 2C) bf16 so the kernel's head loop indexes the leading ref axis.
  bf16 = jnp.bfloat16
  C = hidden[1]
  l1t, l1r = params["l1_to"], params["l1_rev"]
  l2t, l2r = params["l2_to"], params["l2_rev"]
  l3t, l3r = params["l3_to"], params["l3_rev"]

  def sage_pack(p):
    return jnp.concatenate([p["w_l"], p["w_r"]], axis=0).astype(bf16), p["b_l"]

  w1_to, b1_to = sage_pack(l1t)
  w1_rv, b1_rv = sage_pack(l1r)
  w3_to, b3_to = sage_pack(l3t)
  w3_rv, b3_rv = sage_pack(l3r)

  def heads_w(w):   # (in, H*C) -> (H, in, C)
    return jnp.transpose(w.reshape(w.shape[0], num_heads, C), (1, 0, 2))

  def heads_b(b):   # (1, H*C) -> (H, 1, C)
    return jnp.transpose(b.reshape(1, num_heads, C), (1, 0, 2))

  # snorna feeds lin_l of 'to' and lin_r of 'rev_to'; disease the other two.
  w2s = jnp.concatenate([heads_w(l2t["w_l"]), heads_w(l2r["w_r"])], axis=-1).astype(bf16)
  b2s = jnp.concatenate([heads_b(l2t["b_l"]), heads_b(l2r["b_r"])], axis=-1)
  w2d = jnp.concatenate([heads_w(l2t["w_r"]), heads_w(l2r["w_l"])], axis=-1).astype(bf16)
  b2d = jnp.concatenate([heads_b(l2t["b_r"]), heads_b(l2r["b_l"])], axis=-1)
  att_to = l2t["att"].reshape(num_heads, 1, C)
  att_rv = l2r["att"].reshape(num_heads, 1, C)

  return (w1_to, b1_to, w1_rv, b1_rv,
          w2s, b2s, w2d, b2d,
          att_to, l2t["bias"], att_rv, l2r["bias"],
          w3_to, b3_to, w3_rv, b3_rv)


# -------------------------- pure-JAX reference --------------------------------

def hetero_gnn_reference(packed, x_s, x_d, adj, sel_u, sel_d, *, num_heads, hidden):
  (w1_to, b1_to, w1_rv, b1_rv,
   w2s, b2s, w2d, b2d, att_to, bias_to, att_rv, bias_rv,
   w3_to, b3_to, w3_rv, b3_rv) = packed
  f32, bf16 = jnp.float32, jnp.bfloat16
  C = hidden[1]
  adj_t = adj.T
  deg_d = adj.sum(1, keepdims=True)
  deg_s = adj_t.sum(1, keepdims=True)
  inv_d = jnp.where(deg_d > 0, 1.0 / jnp.maximum(deg_d, 1.0), 0.0)
  inv_s = jnp.where(deg_s > 0, 1.0 / jnp.maximum(deg_s, 1.0), 0.0)
  adj_m = (adj * inv_d).astype(bf16)
  adj_tm = (adj_t * inv_s).astype(bf16)

  def sage(adj_mean, x_src, x_root, w, b, relu):
    agg = jnp.dot(adj_mean, x_src.astype(bf16), preferred_element_type=f32)
    z = jnp.concatenate([agg, x_root], axis=-1).astype(bf16)
    out = jnp.dot(z, w, preferred_element_type=f32) + b
    out = out * lax.rsqrt(jnp.maximum(jnp.sum(out * out, -1, keepdims=True), 1e-24))
    return jnp.maximum(out, 0.0) if relu else out

  x_d1 = sage(adj_m, x_s, x_d, w1_to, b1_to, True)
  x_s1 = sage(adj_tm, x_d, x_s, w1_rv, b1_rv, True)

  xs1_bf, xd1_bf = x_s1.astype(bf16), x_d1.astype(bf16)

  def gat_head(mask, xl, xr, att_row):
    s = xr[:, None, :] + xl[None, :, :]
    s = jnp.maximum(s, 0.2 * s)
    e = jnp.sum(s * att_row[None], axis=-1)
    e = jnp.where(mask > 0, e, NEG_INF)
    p = jnp.exp(e - e.max(1, keepdims=True)) * mask
    alpha = p / jnp.maximum(p.sum(1, keepdims=True), 1e-20)
    return jnp.dot(alpha.astype(bf16), xl.astype(bf16), preferred_element_type=f32)

  acc_d = jnp.zeros((x_d.shape[0], C), f32)
  acc_s = jnp.zeros((x_s.shape[0], C), f32)
  for h in range(num_heads):
    p_s = jnp.dot(xs1_bf, w2s[h], preferred_element_type=f32) + b2s[h]
    p_d = jnp.dot(xd1_bf, w2d[h], preferred_element_type=f32) + b2d[h]
    xl_to, xr_rv = p_s[:, :C], p_s[:, C:]
    xr_to, xl_rv = p_d[:, :C], p_d[:, C:]
    acc_d = acc_d + gat_head(adj, xl_to, xr_to, att_to[h])
    acc_s = acc_s + gat_head(adj_t, xl_rv, xr_rv, att_rv[h])
  x_d2 = jnp.maximum(acc_d / num_heads + bias_to, 0.0)
  x_s2 = jnp.maximum(acc_s / num_heads + bias_rv, 0.0)

  x_d3 = sage(adj_m, x_s2, x_d2, w3_to, b3_to, False)
  x_s3 = sage(adj_tm, x_d2, x_s2, w3_rv, b3_rv, False)

  a = jnp.dot(sel_u, x_s3.astype(bf16), preferred_element_type=f32)
  b = jnp.dot(sel_d, x_d3.astype(bf16), preferred_element_type=f32)
  return jnp.sum(a * b, axis=-1)


# ----------------------------------- main --------------------------------------

if __name__ == "__main__":
  N_SNORNA, N_DISEASE = 16, 24
  F_SNORNA, F_DISEASE = 128, 128   # lane-aligned input features (pad to 128 in general)
  HIDDEN = (128, 128, 64)          # hidden_1, hidden_2, hidden_3
  HEADS = 8
  N_LABEL_EDGES = 16

  key = jax.random.PRNGKey(0)
  k_xs, k_xd, k_adj, k_eu, k_ed, k_par = jax.random.split(key, 6)

  x_snorna = jax.random.normal(k_xs, (N_SNORNA, F_SNORNA), jnp.float32)
  x_disease = jax.random.normal(k_xd, (N_DISEASE, F_DISEASE), jnp.float32)

  # dense 0/1 adjacency, shape [num_disease (dst), num_snorna (src)]
  adj_ds = jax.random.bernoulli(k_adj, 0.3, (N_DISEASE, N_SNORNA)).astype(jnp.float32)

  # edge_label_index for ('snorna','to','disease'), encoded as one-hot gathers (bf16 exact)
  eli_u = jax.random.randint(k_eu, (N_LABEL_EDGES,), 0, N_SNORNA)
  eli_d = jax.random.randint(k_ed, (N_LABEL_EDGES,), 0, N_DISEASE)
  sel_u = jax.nn.one_hot(eli_u, N_SNORNA, dtype=jnp.bfloat16)
  sel_d = jax.nn.one_hot(eli_d, N_DISEASE, dtype=jnp.bfloat16)

  params = init_params(k_par, F_SNORNA, F_DISEASE, HIDDEN, HEADS)
  packed = pack_params(params, num_heads=HEADS, hidden=HIDDEN)

  pred = hetero_gnn_forward(packed, x_snorna, x_disease, adj_ds, sel_u, sel_d,
                            num_heads=HEADS, hidden=HIDDEN)
  jax.block_until_ready(pred)
  assert pred.shape == (N_LABEL_EDGES,)

  # sanity check against the pure-JAX reference (same bf16 packed weights / casts)
  ref = hetero_gnn_reference(packed, x_snorna, x_disease, adj_ds, sel_u, sel_d,
                             num_heads=HEADS, hidden=HIDDEN)
  jax.block_until_ready(ref)
  assert float(jnp.max(jnp.abs(pred - ref))) < 5e-2

  print("KERNEL_OK")
</pallas_src>

<mosaic_0001>
module attributes {stable_mosaic.version = 11 : i64} {
  func.func @_fused_hetero_gnn_kernel(%arg0: memref<24x16xf32, #tpu.memory_space<vmem>>, %arg1: memref<16x128xf32, #tpu.memory_space<vmem>>, %arg2: memref<24x128xf32, #tpu.memory_space<vmem>>, %arg3: memref<256x128xbf16, #tpu.memory_space<vmem>>, %arg4: memref<1x128xf32, #tpu.memory_space<vmem>>, %arg5: memref<256x128xbf16, #tpu.memory_space<vmem>>, %arg6: memref<1x128xf32, #tpu.memory_space<vmem>>, %arg7: memref<8x128x256xbf16, #tpu.memory_space<vmem>>, %arg8: memref<8x1x256xf32, #tpu.memory_space<vmem>>, %arg9: memref<8x128x256xbf16, #tpu.memory_space<vmem>>, %arg10: memref<8x1x256xf32, #tpu.memory_space<vmem>>, %arg11: memref<8x1x128xf32, #tpu.memory_space<vmem>>, %arg12: memref<1x128xf32, #tpu.memory_space<vmem>>, %arg13: memref<8x1x128xf32, #tpu.memory_space<vmem>>, %arg14: memref<1x128xf32, #tpu.memory_space<vmem>>, %arg15: memref<256x64xbf16, #tpu.memory_space<vmem>>, %arg16: memref<1x64xf32, #tpu.memory_space<vmem>>, %arg17: memref<256x64xbf16, #tpu.memory_space<vmem>>, %arg18: memref<1x64xf32, #tpu.memory_space<vmem>>, %arg19: memref<16x16xbf16, #tpu.memory_space<vmem>>, %arg20: memref<16x24xbf16, #tpu.memory_space<vmem>>, %arg21: memref<1x16xf32, #tpu.memory_space<vmem>>, %arg22: memref<24x128xf32, #tpu.memory_space<vmem>>, %arg23: memref<16x128xf32, #tpu.memory_space<vmem>>) attributes {dimension_semantics = [], scalar_prefetch = 0 : i64, scratch_operands = 2 : i64, tpu.core_type = #tpu.core_type<tc>} {
    %c0 = arith.constant 0 : index
    %c0_0 = arith.constant 0 : index
    %0 = vector.load %arg0[%c0, %c0_0] : memref<24x16xf32, #tpu.memory_space<vmem>>, vector<24x16xf32>
    %1 = tpu.transpose %0, [1, 0] : vector<24x16xf32> -> vector<16x24xf32>
    %cst = arith.constant dense<0.000000e+00> : vector<24xf32>
    %2 = vector.multi_reduction <add>, %0, %cst [1] : vector<24x16xf32> to vector<24xf32>
    %3 = vector.shape_cast %2 : vector<24xf32> to vector<24x1xf32>
    %cst_1 = arith.constant dense<0.000000e+00> : vector<16xf32>
    %4 = vector.multi_reduction <add>, %1, %cst_1 [1] : vector<16x24xf32> to vector<16xf32>
    %5 = vector.shape_cast %4 : vector<16xf32> to vector<16x1xf32>
    %cst_2 = arith.constant 0.000000e+00 : f32
    %6 = vector.broadcast %cst_2 : f32 to vector<24x1xf32>
    %7 = arith.cmpf ogt, %3, %6 : vector<24x1xf32>
    %cst_3 = arith.constant 1.000000e+00 : f32
    %8 = vector.broadcast %cst_3 : f32 to vector<24x1xf32>
    %9 = arith.maximumf %3, %8 : vector<24x1xf32>
    %10 = tpu.reciprocal %9 {approx = true} : vector<24x1xf32> -> vector<24x1xf32>
    %cst_4 = arith.constant 0.000000e+00 : f32
    %11 = vector.broadcast %cst_4 : f32 to vector<24x1xf32>
    %12 = arith.select %7, %10, %11 : vector<24x1xi1>, vector<24x1xf32>
    %cst_5 = arith.constant 0.000000e+00 : f32
    %13 = vector.broadcast %cst_5 : f32 to vector<16x1xf32>
    %14 = arith.cmpf ogt, %5, %13 : vector<16x1xf32>
    %cst_6 = arith.constant 1.000000e+00 : f32
    %15 = vector.broadcast %cst_6 : f32 to vector<16x1xf32>
    %16 = arith.maximumf %5, %15 : vector<16x1xf32>
    %17 = tpu.reciprocal %16 {approx = true} : vector<16x1xf32> -> vector<16x1xf32>
    %cst_7 = arith.constant 0.000000e+00 : f32
    %18 = vector.broadcast %cst_7 : f32 to vector<16x1xf32>
    %19 = arith.select %14, %17, %18 : vector<16x1xi1>, vector<16x1xf32>
    %20 = vector.broadcast %12 : vector<24x1xf32> to vector<24x16xf32>
    %21 = arith.mulf %0, %20 : vector<24x16xf32>
    %22 = arith.truncf %21 : vector<24x16xf32> to vector<24x16xbf16>
    %23 = vector.broadcast %19 : vector<16x1xf32> to vector<16x24xf32>
    %24 = arith.mulf %1, %23 : vector<16x24xf32>
    %25 = arith.truncf %24 : vector<16x24xf32> to vector<16x24xbf16>
    %c0_8 = arith.constant 0 : index
    %c0_9 = arith.constant 0 : index
    %26 = vector.load %arg1[%c0_8, %c0_9] : memref<16x128xf32, #tpu.memory_space<vmem>>, vector<16x128xf32>
    %c0_10 = arith.constant 0 : index
    %c0_11 = arith.constant 0 : index
    %27 = vector.load %arg2[%c0_10, %c0_11] : memref<24x128xf32, #tpu.memory_space<vmem>>, vector<24x128xf32>
    %28 = arith.truncf %26 : vector<16x128xf32> to vector<16x128xbf16>
    %cst_12 = arith.constant dense<0.000000e+00> : vector<24x128xf32>
    %29 = tpu.matmul %22, %28, %cst_12 {dimension_numbers = #tpu.dot_dimension_numbers<[1], [0], [0], [1], [0, 0, 1, 1], [], []>} : vector<24x16xbf16>, vector<16x128xbf16>, vector<24x128xf32> -> vector<24x128xf32>
    %30 = tpu.concatenate %29, %27 in 1 : vector<24x128xf32>, vector<24x128xf32> -> vector<24x256xf32>
    %31 = arith.truncf %30 : vector<24x256xf32> to vector<24x256xbf16>
    %c0_13 = arith.constant 0 : index
    %c0_14 = arith.constant 0 : index
    %32 = vector.load %arg3[%c0_13, %c0_14] : memref<256x128xbf16, #tpu.memory_space<vmem>>, vector<256x128xbf16>
    %cst_15 = arith.constant dense<0.000000e+00> : vector<24x128xf32>
    %33 = tpu.matmul %31, %32, %cst_15 {dimension_numbers = #tpu.dot_dimension_numbers<[1], [0], [0], [1], [0, 0, 1, 1], [], []>} : vector<24x256xbf16>, vector<256x128xbf16>, vector<24x128xf32> -> vector<24x128xf32>
    %c0_16 = arith.constant 0 : index
    %c0_17 = arith.constant 0 : index
    %34 = vector.load %arg4[%c0_16, %c0_17] : memref<1x128xf32, #tpu.memory_space<vmem>>, vector<1x128xf32>
    %35 = vector.broadcast %34 : vector<1x128xf32> to vector<24x128xf32>
    %36 = arith.addf %33, %35 : vector<24x128xf32>
    %37 = arith.mulf %36, %36 : vector<24x128xf32>
    %cst_18 = arith.constant dense<0.000000e+00> : vector<24xf32>
    %38 = vector.multi_reduction <add>, %37, %cst_18 [1] : vector<24x128xf32> to vector<24xf32>
    %39 = vector.shape_cast %38 : vector<24xf32> to vector<24x1xf32>
    %cst_19 = arith.constant 1.000000e-24 : f32
    %40 = vector.broadcast %cst_19 : f32 to vector<24x1xf32>
    %41 = arith.maximumf %39, %40 : vector<24x1xf32>
    %42 = math.rsqrt %41 : vector<24x1xf32>
    %43 = vector.broadcast %42 : vector<24x1xf32> to vector<24x128xf32>
    %44 = arith.mulf %36, %43 : vector<24x128xf32>
    %cst_20 = arith.constant 0.000000e+00 : f32
    %45 = vector.broadcast %cst_20 : f32 to vector<24x128xf32>
    %46 = arith.maximumf %44, %45 : vector<24x128xf32>
    %47 = arith.truncf %27 : vector<24x128xf32> to vector<24x128xbf16>
    %cst_21 = arith.constant dense<0.000000e+00> : vector<16x128xf32>
    %48 = tpu.matmul %25, %47, %cst_21 {dimension_numbers = #tpu.dot_dimension_numbers<[1], [0], [0], [1], [0, 0, 1, 1], [], []>} : vector<16x24xbf16>, vector<24x128xbf16>, vector<16x128xf32> -> vector<16x128xf32>
    %49 = tpu.concatenate %48, %26 in 1 : vector<16x128xf32>, vector<16x128xf32> -> vector<16x256xf32>
    %50 = arith.truncf %49 : vector<16x256xf32> to vector<16x256xbf16>
    %c0_22 = arith.constant 0 : index
    %c0_23 = arith.constant 0 : index
    %51 = vector.load %arg5[%c0_22, %c0_23] : memref<256x128xbf16, #tpu.memory_space<vmem>>, vector<256x128xbf16>
    %cst_24 = arith.constant dense<0.000000e+00> : vector<16x128xf32>
    %52 = tpu.matmul %50, %51, %cst_24 {dimension_numbers = #tpu.dot_dimension_numbers<[1], [0], [0], [1], [0, 0, 1, 1], [], []>} : vector<16x256xbf16>, vector<256x128xbf16>, vector<16x128xf32> -> vector<16x128xf32>
    %c0_25 = arith.constant 0 : index
    %c0_26 = arith.constant 0 : index
    %53 = vector.load %arg6[%c0_25, %c0_26] : memref<1x128xf32, #tpu.memory_space<vmem>>, vector<1x128xf32>
    %54 = vector.broadcast %53 : vector<1x128xf32> to vector<16x128xf32>
    %55 = arith.addf %52, %54 : vector<16x128xf32>
    %56 = arith.mulf %55, %55 : vector<16x128xf32>
    %cst_27 = arith.constant dense<0.000000e+00> : vector<16xf32>
    %57 = vector.multi_reduction <add>, %56, %cst_27 [1] : vector<16x128xf32> to vector<16xf32>
    %58 = vector.shape_cast %57 : vector<16xf32> to vector<16x1xf32>
    %cst_28 = arith.constant 1.000000e-24 : f32
    %59 = vector.broadcast %cst_28 : f32 to vector<16x1xf32>
    %60 = arith.maximumf %58, %59 : vector<16x1xf32>
    %61 = math.rsqrt %60 : vector<16x1xf32>
    %62 = vector.broadcast %61 : vector<16x1xf32> to vector<16x128xf32>
    %63 = arith.mulf %55, %62 : vector<16x128xf32>
    %cst_29 = arith.constant 0.000000e+00 : f32
    %64 = vector.broadcast %cst_29 : f32 to vector<16x128xf32>
    %65 = arith.maximumf %63, %64 : vector<16x128xf32>
    %66 = arith.truncf %65 : vector<16x128xf32> to vector<16x128xbf16>
    %67 = arith.truncf %46 : vector<24x128xf32> to vector<24x128xbf16>
    %cst_30 = arith.constant 0.000000e+00 : f32
    %68 = vector.broadcast %cst_30 : f32 to vector<24x128xf32>
    %c0_31 = arith.constant 0 : index
    %c0_32 = arith.constant 0 : index
    %69 = vector.load %arg22[%c0_31, %c0_32] : memref<24x128xf32, #tpu.memory_space<vmem>>, vector<24x128xf32>
    tpu.vector_store %arg22[%c0_31, %c0_32], %68 {strides = array<i32>} : memref<24x128xf32, #tpu.memory_space<vmem>>, vector<24x128xf32>,
    %cst_33 = arith.constant 0.000000e+00 : f32
    %70 = vector.broadcast %cst_33 : f32 to vector<16x128xf32>
    %c0_34 = arith.constant 0 : index
    %c0_35 = arith.constant 0 : index
    %71 = vector.load %arg23[%c0_34, %c0_35] : memref<16x128xf32, #tpu.memory_space<vmem>>, vector<16x128xf32>
    tpu.vector_store %arg23[%c0_34, %c0_35], %70 {strides = array<i32>} : memref<16x128xf32, #tpu.memory_space<vmem>>, vector<16x128xf32>,
    %c0_i32 = arith.constant 0 : i32
    %c8_i32 = arith.constant 8 : i32
    %72 = arith.addi %c0_i32, %c8_i32 : i32
    %c1_i32 = arith.constant 1 : i32
    scf.for %arg24 = %c0_i32 to %72 step %c1_i32  : i32 {
      %133 = arith.index_cast %arg24 : i32 to index
      %c0_75 = arith.constant 0 : index
      %c0_76 = arith.constant 0 : index
      %134 = vector.load %arg7[%133, %c0_75, %c0_76] : memref<8x128x256xbf16, #tpu.memory_space<vmem>>, vector<1x128x256xbf16>
      %135 = vector.shape_cast %134 : vector<1x128x256xbf16> to vector<128x256xbf16>
      %cst_77 = arith.constant dense<0.000000e+00> : vector<16x256xf32>
      %136 = tpu.matmul %66, %135, %cst_77 {dimension_numbers = #tpu.dot_dimension_numbers<[1], [0], [0], [1], [0, 0, 1, 1], [], []>} : vector<16x128xbf16>, vector<128x256xbf16>, vector<16x256xf32> -> vector<16x256xf32>
      %137 = arith.index_cast %arg24 : i32 to index
      %c0_78 = arith.constant 0 : index
      %c0_79 = arith.constant 0 : index
      %138 = vector.load %arg8[%137, %c0_78, %c0_79] : memref<8x1x256xf32, #tpu.memory_space<vmem>>, vector<1x1x256xf32>
      %139 = vector.shape_cast %138 : vector<1x1x256xf32> to vector<1x256xf32>
      %140 = vector.broadcast %139 : vector<1x256xf32> to vector<16x256xf32>
      %141 = arith.addf %136, %140 : vector<16x256xf32>
      %142 = arith.index_cast %arg24 : i32 to index
      %c0_80 = arith.constant 0 : index
      %c0_81 = arith.constant 0 : index
      %143 = vector.load %arg9[%142, %c0_80, %c0_81] : memref<8x128x256xbf16, #tpu.memory_space<vmem>>, vector<1x128x256xbf16>
      %144 = vector.shape_cast %143 : vector<1x128x256xbf16> to vector<128x256xbf16>
      %cst_82 = arith.constant dense<0.000000e+00> : vector<24x256xf32>
      %145 = tpu.matmul %67, %144, %cst_82 {dimension_numbers = #tpu.dot_dimension_numbers<[1], [0], [0], [1], [0, 0, 1, 1], [], []>} : vector<24x128xbf16>, vector<128x256xbf16>, vector<24x256xf32> -> vector<24x256xf32>
      %146 = arith.index_cast %arg24 : i32 to index
      %c0_83 = arith.constant 0 : index
      %c0_84 = arith.constant 0 : index
      %147 = vector.load %arg10[%146, %c0_83, %c0_84] : memref<8x1x256xf32, #tpu.memory_space<vmem>>, vector<1x1x256xf32>
      %148 = vector.shape_cast %147 : vector<1x1x256xf32> to vector<1x256xf32>
      %149 = vector.broadcast %148 : vector<1x256xf32> to vector<24x256xf32>
      %150 = arith.addf %145, %149 : vector<24x256xf32>
      %151 = vector.extract_strided_slice %141 {offsets = [0, 0], sizes = [16, 128], strides = [1, 1]} : vector<16x256xf32> to vector<16x128xf32>
      %152 = vector.extract_strided_slice %141 {offsets = [0, 128], sizes = [16, 128], strides = [1, 1]} : vector<16x256xf32> to vector<16x128xf32>
      %153 = vector.extract_strided_slice %150 {offsets = [0, 0], sizes = [24, 128], strides = [1, 1]} : vector<24x256xf32> to vector<24x128xf32>
      %154 = vector.extract_strided_slice %150 {offsets = [0, 128], sizes = [24, 128], strides = [1, 1]} : vector<24x256xf32> to vector<24x128xf32>
      %c0_85 = arith.constant 0 : index
      %c0_86 = arith.constant 0 : index
      %155 = vector.load %arg22[%c0_85, %c0_86] : memref<24x128xf32, #tpu.memory_space<vmem>>, vector<24x128xf32>
      %156 = arith.index_cast %arg24 : i32 to index
      %c0_87 = arith.constant 0 : index
      %c0_88 = arith.constant 0 : index
      %157 = vector.load %arg11[%156, %c0_87, %c0_88] : memref<8x1x128xf32, #tpu.memory_space<vmem>>, vector<1x1x128xf32>
      %158 = vector.shape_cast %157 : vector<1x1x128xf32> to vector<1x128xf32>
      %159 = vector.shape_cast %153 : vector<24x128xf32> to vector<24x1x128xf32>
      %160 = vector.shape_cast %151 : vector<16x128xf32> to vector<1x16x128xf32>
      %161 = vector.broadcast %159 : vector<24x1x128xf32> to vector<24x16x128xf32>
      %162 = vector.broadcast %160 : vector<1x16x128xf32> to vector<24x16x128xf32>
      %163 = arith.addf %161, %162 : vector<24x16x128xf32>
      %cst_89 = arith.constant 2.000000e-01 : f32
      %164 = vector.broadcast %cst_89 : f32 to vector<24x16x128xf32>
      %165 = arith.mulf %164, %163 : vector<24x16x128xf32>
      %166 = arith.maximumf %163, %165 : vector<24x16x128xf32>
      %167 = vector.shape_cast %158 : vector<1x128xf32> to vector<1x1x128xf32>
      %168 = vector.broadcast %167 : vector<1x1x128xf32> to vector<24x16x128xf32>
      %169 = arith.mulf %166, %168 : vector<24x16x128xf32>
      %cst_90 = arith.constant dense<0.000000e+00> : vector<24x16xf32>
      %170 = vector.multi_reduction <add>, %169, %cst_90 [2] : vector<24x16x128xf32> to vector<24x16xf32>
      %cst_91 = arith.constant 0.000000e+00 : f32
      %171 = vector.broadcast %cst_91 : f32 to vector<24x16xf32>
      %172 = arith.cmpf ogt, %0, %171 : vector<24x16xf32>
      %cst_92 = arith.constant -1.000000e+30 : f32
      %173 = vector.broadcast %cst_92 : f32 to vector<24x16xf32>
      %174 = arith.select %172, %170, %173 : vector<24x16xi1>, vector<24x16xf32>
      %cst_93 = arith.constant dense<0xFF800000> : vector<24xf32>
      %175 = vector.multi_reduction <maximumf>, %174, %cst_93 [1] : vector<24x16xf32> to vector<24xf32>
      %176 = vector.shape_cast %175 : vector<24xf32> to vector<24x1xf32>
      %177 = vector.broadcast %176 : vector<24x1xf32> to vector<24x16xf32>
      %178 = arith.subf %174, %177 : vector<24x16xf32>
      %179 = math.exp %178 : vector<24x16xf32>
      %180 = arith.mulf %179, %0 : vector<24x16xf32>
      %cst_94 = arith.constant dense<0.000000e+00> : vector<24xf32>
      %181 = vector.multi_reduction <add>, %180, %cst_94 [1] : vector<24x16xf32> to vector<24xf32>
      %182 = vector.shape_cast %181 : vector<24xf32> to vector<24x1xf32>
      %cst_95 = arith.constant 9.99999968E-21 : f32
      %183 = vector.broadcast %cst_95 : f32 to vector<24x1xf32>
      %184 = arith.maximumf %182, %183 : vector<24x1xf32>
      %185 = tpu.reciprocal %184 {approx = true} : vector<24x1xf32> -> vector<24x1xf32>
      %186 = vector.broadcast %185 : vector<24x1xf32> to vector<24x16xf32>
      %187 = arith.mulf %180, %186 : vector<24x16xf32>
      %188 = arith.truncf %187 : vector<24x16xf32> to vector<24x16xbf16>
      %189 = arith.truncf %151 : vector<16x128xf32> to vector<16x128xbf16>
      %cst_96 = arith.constant dense<0.000000e+00> : vector<24x128xf32>
      %190 = tpu.matmul %188, %189, %cst_96 {dimension_numbers = #tpu.dot_dimension_numbers<[1], [0], [0], [1], [0, 0, 1, 1], [], []>} : vector<24x16xbf16>, vector<16x128xbf16>, vector<24x128xf32> -> vector<24x128xf32>
      %191 = arith.addf %155, %190 : vector<24x128xf32>
      %c0_97 = arith.constant 0 : index
      %c0_98 = arith.constant 0 : index
      %192 = vector.load %arg22[%c0_97, %c0_98] : memref<24x128xf32, #tpu.memory_space<vmem>>, vector<24x128xf32>
      tpu.vector_store %arg22[%c0_97, %c0_98], %191 {strides = array<i32>} : memref<24x128xf32, #tpu.memory_space<vmem>>, vector<24x128xf32>,
      %c0_99 = arith.constant 0 : index
      %c0_100 = arith.constant 0 : index
      %193 = vector.load %arg23[%c0_99, %c0_100] : memref<16x128xf32, #tpu.memory_space<vmem>>, vector<16x128xf32>
      %194 = arith.index_cast %arg24 : i32 to index
      %c0_101 = arith.constant 0 : index
      %c0_102 = arith.constant 0 : index
      %195 = vector.load %arg13[%194, %c0_101, %c0_102] : memref<8x1x128xf32, #tpu.memory_space<vmem>>, vector<1x1x128xf32>
      %196 = vector.shape_cast %195 : vector<1x1x128xf32> to vector<1x128xf32>
      %197 = vector.shape_cast %152 : vector<16x128xf32> to vector<16x1x128xf32>
      %198 = vector.shape_cast %154 : vector<24x128xf32> to vector<1x24x128xf32>
      %199 = vector.broadcast %197 : vector<16x1x128xf32> to vector<16x24x128xf32>
      %200 = vector.broadcast %198 : vector<1x24x128xf32> to vector<16x24x128xf32>
      %201 = arith.addf %199, %200 : vector<16x24x128xf32>
      %cst_103 = arith.constant 2.000000e-01 : f32
      %202 = vector.broadcast %cst_103 : f32 to vector<16x24x128xf32>
      %203 = arith.mulf %202, %201 : vector<16x24x128xf32>
      %204 = arith.maximumf %201, %203 : vector<16x24x128xf32>
      %205 = vector.shape_cast %196 : vector<1x128xf32> to vector<1x1x128xf32>
      %206 = vector.broadcast %205 : vector<1x1x128xf32> to vector<16x24x128xf32>
      %207 = arith.mulf %204, %206 : vector<16x24x128xf32>
      %cst_104 = arith.constant dense<0.000000e+00> : vector<16x24xf32>
      %208 = vector.multi_reduction <add>, %207, %cst_104 [2] : vector<16x24x128xf32> to vector<16x24xf32>
      %cst_105 = arith.constant 0.000000e+00 : f32
      %209 = vector.broadcast %cst_105 : f32 to vector<16x24xf32>
      %210 = arith.cmpf ogt, %1, %209 : vector<16x24xf32>
      %cst_106 = arith.constant -1.000000e+30 : f32
      %211 = vector.broadcast %cst_106 : f32 to vector<16x24xf32>
      %212 = arith.select %210, %208, %211 : vector<16x24xi1>, vector<16x24xf32>
      %cst_107 = arith.constant dense<0xFF800000> : vector<16xf32>
      %213 = vector.multi_reduction <maximumf>, %212, %cst_107 [1] : vector<16x24xf32> to vector<16xf32>
      %214 = vector.shape_cast %213 : vector<16xf32> to vector<16x1xf32>
      %215 = vector.broadcast %214 : vector<16x1xf32> to vector<16x24xf32>
      %216 = arith.subf %212, %215 : vector<16x24xf32>
      %217 = math.exp %216 : vector<16x24xf32>
      %218 = arith.mulf %217, %1 : vector<16x24xf32>
      %cst_108 = arith.constant dense<0.000000e+00> : vector<16xf32>
      %219 = vector.multi_reduction <add>, %218, %cst_108 [1] : vector<16x24xf32> to vector<16xf32>
      %220 = vector.shape_cast %219 : vector<16xf32> to vector<16x1xf32>
      %cst_109 = arith.constant 9.99999968E-21 : f32
      %221 = vector.broadcast %cst_109 : f32 to vector<16x1xf32>
      %222 = arith.maximumf %220, %221 : vector<16x1xf32>
      %223 = tpu.reciprocal %222 {approx = true} : vector<16x1xf32> -> vector<16x1xf32>
      %224 = vector.broadcast %223 : vector<16x1xf32> to vector<16x24xf32>
      %225 = arith.mulf %218, %224 : vector<16x24xf32>
      %226 = arith.truncf %225 : vector<16x24xf32> to vector<16x24xbf16>
      %227 = arith.truncf %154 : vector<24x128xf32> to vector<24x128xbf16>
      %cst_110 = arith.constant dense<0.000000e+00> : vector<16x128xf32>
      %228 = tpu.matmul %226, %227, %cst_110 {dimension_numbers = #tpu.dot_dimension_numbers<[1], [0], [0], [1], [0, 0, 1, 1], [], []>} : vector<16x24xbf16>, vector<24x128xbf16>, vector<16x128xf32> -> vector<16x128xf32>
      %229 = arith.addf %193, %228 : vector<16x128xf32>
      %c0_111 = arith.constant 0 : index
      %c0_112 = arith.constant 0 : index
      %230 = vector.load %arg23[%c0_111, %c0_112] : memref<16x128xf32, #tpu.memory_space<vmem>>, vector<16x128xf32>
      tpu.vector_store %arg23[%c0_111, %c0_112], %229 {strides = array<i32>} : memref<16x128xf32, #tpu.memory_space<vmem>>, vector<16x128xf32>,
    }
    %c8_i32_36 = arith.constant 8 : i32
    %c0_37 = arith.constant 0 : index
    %c0_38 = arith.constant 0 : index
    %73 = vector.load %arg22[%c0_37, %c0_38] : memref<24x128xf32, #tpu.memory_space<vmem>>, vector<24x128xf32>
    %cst_39 = arith.constant 1.250000e-01 : f32
    %74 = vector.broadcast %cst_39 : f32 to vector<24x128xf32>
    %75 = arith.mulf %73, %74 : vector<24x128xf32>
    %c0_40 = arith.constant 0 : index
    %c0_41 = arith.constant 0 : index
    %76 = vector.load %arg12[%c0_40, %c0_41] : memref<1x128xf32, #tpu.memory_space<vmem>>, vector<1x128xf32>
    %77 = vector.broadcast %76 : vector<1x128xf32> to vector<24x128xf32>
    %78 = arith.addf %75, %77 : vector<24x128xf32>
    %cst_42 = arith.constant 0.000000e+00 : f32
    %79 = vector.broadcast %cst_42 : f32 to vector<24x128xf32>
    %80 = arith.maximumf %78, %79 : vector<24x128xf32>
    %c0_43 = arith.constant 0 : index
    %c0_44 = arith.constant 0 : index
    %81 = vector.load %arg23[%c0_43, %c0_44] : memref<16x128xf32, #tpu.memory_space<vmem>>, vector<16x128xf32>
    %cst_45 = arith.constant 1.250000e-01 : f32
    %82 = vector.broadcast %cst_45 : f32 to vector<16x128xf32>
    %83 = arith.mulf %81, %82 : vector<16x128xf32>
    %c0_46 = arith.constant 0 : index
    %c0_47 = arith.constant 0 : index
    %84 = vector.load %arg14[%c0_46, %c0_47] : memref<1x128xf32, #tpu.memory_space<vmem>>, vector<1x128xf32>
    %85 = vector.broadcast %84 : vector<1x128xf32> to vector<16x128xf32>
    %86 = arith.addf %83, %85 : vector<16x128xf32>
    %cst_48 = arith.constant 0.000000e+00 : f32
    %87 = vector.broadcast %cst_48 : f32 to vector<16x128xf32>
    %88 = arith.maximumf %86, %87 : vector<16x128xf32>
    %89 = arith.truncf %88 : vector<16x128xf32> to vector<16x128xbf16>
    %cst_49 = arith.constant dense<0.000000e+00> : vector<24x128xf32>
    %90 = tpu.matmul %22, %89, %cst_49 {dimension_numbers = #tpu.dot_dimension_numbers<[1], [0], [0], [1], [0, 0, 1, 1], [], []>} : vector<24x16xbf16>, vector<16x128xbf16>, vector<24x128xf32> -> vector<24x128xf32>
    %91 = tpu.concatenate %90, %80 in 1 : vector<24x128xf32>, vector<24x128xf32> -> vector<24x256xf32>
    %92 = arith.truncf %91 : vector<24x256xf32> to vector<24x256xbf16>
    %c0_50 = arith.constant 0 : index
    %c0_51 = arith.constant 0 : index
    %93 = vector.load %arg15[%c0_50, %c0_51] : memref<256x64xbf16, #tpu.memory_space<vmem>>, vector<256x64xbf16>
    %cst_52 = arith.constant dense<0.000000e+00> : vector<24x64xf32>
    %94 = tpu.matmul %92, %93, %cst_52 {dimension_numbers = #tpu.dot_dimension_numbers<[1], [0], [0], [1], [0, 0, 1, 1], [], []>} : vector<24x256xbf16>, vector<256x64xbf16>, vector<24x64xf32> -> vector<24x64xf32>
    %c0_53 = arith.constant 0 : index
    %c0_54 = arith.constant 0 : index
    %95 = vector.load %arg16[%c0_53, %c0_54] : memref<1x64xf32, #tpu.memory_space<vmem>>, vector<1x64xf32>
    %96 = vector.broadcast %95 : vector<1x64xf32> to vector<24x64xf32>
    %97 = arith.addf %94, %96 : vector<24x64xf32>
    %98 = arith.mulf %97, %97 : vector<24x64xf32>
    %cst_55 = arith.constant dense<0.000000e+00> : vector<24xf32>
    %99 = vector.multi_reduction <add>, %98, %cst_55 [1] : vector<24x64xf32> to vector<24xf32>
    %100 = vector.shape_cast %99 : vector<24xf32> to vector<24x1xf32>
    %cst_56 = arith.constant 1.000000e-24 : f32
    %101 = vector.broadcast %cst_56 : f32 to vector<24x1xf32>
    %102 = arith.maximumf %100, %101 : vector<24x1xf32>
    %103 = math.rsqrt %102 : vector<24x1xf32>
    %104 = vector.broadcast %103 : vector<24x1xf32> to vector<24x64xf32>
    %105 = arith.mulf %97, %104 : vector<24x64xf32>
    %106 = arith.truncf %80 : vector<24x128xf32> to vector<24x128xbf16>
    %cst_57 = arith.constant dense<0.000000e+00> : vector<16x128xf32>
    %107 = tpu.matmul %25, %106, %cst_57 {dimension_numbers = #tpu.dot_dimension_numbers<[1], [0], [0], [1], [0, 0, 1, 1], [], []>} : vector<16x24xbf16>, vector<24x128xbf16>, vector<16x128xf32> -> vector<16x128xf32>
    %108 = tpu.concatenate %107, %88 in 1 : vector<16x128xf32>, vector<16x128xf32> -> vector<16x256xf32>
    %109 = arith.truncf %108 : vector<16x256xf32> to vector<16x256xbf16>
    %c0_58 = arith.constant 0 : index
    %c0_59 = arith.constant 0 : index
    %110 = vector.load %arg17[%c0_58, %c0_59] : memref<256x64xbf16, #tpu.memory_space<vmem>>, vector<256x64xbf16>
    %cst_60 = arith.constant dense<0.000000e+00> : vector<16x64xf32>
    %111 = tpu.matmul %109, %110, %cst_60 {dimension_numbers = #tpu.dot_dimension_numbers<[1], [0], [0], [1], [0, 0, 1, 1], [], []>} : vector<16x256xbf16>, vector<256x64xbf16>, vector<16x64xf32> -> vector<16x64xf32>
    %c0_61 = arith.constant 0 : index
    %c0_62 = arith.constant 0 : index
    %112 = vector.load %arg18[%c0_61, %c0_62] : memref<1x64xf32, #tpu.memory_space<vmem>>, vector<1x64xf32>
    %113 = vector.broadcast %112 : vector<1x64xf32> to vector<16x64xf32>
    %114 = arith.addf %111, %113 : vector<16x64xf32>
    %115 = arith.mulf %114, %114 : vector<16x64xf32>
    %cst_63 = arith.constant dense<0.000000e+00> : vector<16xf32>
    %116 = vector.multi_reduction <add>, %115, %cst_63 [1] : vector<16x64xf32> to vector<16xf32>
    %117 = vector.shape_cast %116 : vector<16xf32> to vector<16x1xf32>
    %cst_64 = arith.constant 1.000000e-24 : f32
    %118 = vector.broadcast %cst_64 : f32 to vector<16x1xf32>
    %119 = arith.maximumf %117, %118 : vector<16x1xf32>
    %120 = math.rsqrt %119 : vector<16x1xf32>
    %121 = vector.broadcast %120 : vector<16x1xf32> to vector<16x64xf32>
    %122 = arith.mulf %114, %121 : vector<16x64xf32>
    %c0_65 = arith.constant 0 : index
    %c0_66 = arith.constant 0 : index
    %123 = vector.load %arg19[%c0_65, %c0_66] : memref<16x16xbf16, #tpu.memory_space<vmem>>, vector<16x16xbf16>
    %124 = arith.truncf %122 : vector<16x64xf32> to vector<16x64xbf16>
    %cst_67 = arith.constant dense<0.000000e+00> : vector<16x64xf32>
    %125 = tpu.matmul %123, %124, %cst_67 {dimension_numbers = #tpu.dot_dimension_numbers<[1], [0], [0], [1], [0, 0, 1, 1], [], []>} : vector<16x16xbf16>, vector<16x64xbf16>, vector<16x64xf32> -> vector<16x64xf32>
    %c0_68 = arith.constant 0 : index
    %c0_69 = arith.constant 0 : index
    %126 = vector.load %arg20[%c0_68, %c0_69] : memref<16x24xbf16, #tpu.memory_space<vmem>>, vector<16x24xbf16>
    %127 = arith.truncf %105 : vector<24x64xf32> to vector<24x64xbf16>
    %cst_70 = arith.constant dense<0.000000e+00> : vector<16x64xf32>
    %128 = tpu.matmul %126, %127, %cst_70 {dimension_numbers = #tpu.dot_dimension_numbers<[1], [0], [0], [1], [0, 0, 1, 1], [], []>} : vector<16x24xbf16>, vector<24x64xbf16>, vector<16x64xf32> -> vector<16x64xf32>
    %129 = arith.mulf %125, %128 : vector<16x64xf32>
    %cst_71 = arith.constant 1.000000e+00 : f32
    %130 = vector.broadcast %cst_71 : f32 to vector<1x64xf32>
    %cst_72 = arith.constant dense<0.000000e+00> : vector<1x16xf32>
    %131 = tpu.matmul %130, %129, %cst_72 {dimension_numbers = #tpu.dot_dimension_numbers<[1], [1], [0], [0], [0, 0, 1, 0], [], []>} : vector<1x64xf32>, vector<16x64xf32>, vector<1x16xf32> -> vector<1x16xf32>
    %c0_73 = arith.constant 0 : index
    %c0_74 = arith.constant 0 : index
    %132 = vector.load %arg21[%c0_73, %c0_74] : memref<1x16xf32, #tpu.memory_space<vmem>>, vector<1x16xf32>
    tpu.vector_store %arg21[%c0_73, %c0_74], %131 {strides = array<i32>} : memref<1x16xf32, #tpu.memory_space<vmem>>, vector<1x16xf32>,
    return
  }
}

</mosaic_0001>

<bundles_post_ra>
// kernel: tpu_custom_call.1
= control target key start
LH: loop header
LB: loop body
LE: loop exit
PB: predicated region body
PF: predicated region fallthrough
CT: control target
= control target key end

     0   :  { %s4712_s0 = inlined_call_operand.vmem [shape: f32[24,16], index: 0, kind: input, shape index: {}]   ;;  %s4713_s1 = inlined_call_operand.vmem [shape: f32[16,128], index: 1, kind: input, shape index: {}]   ;;  %s4714_s2 = inlined_call_operand.vmem [shape: f32[24,128], index: 2, kind: input, shape index: {}]   ;;  %s4715_s3 = inlined_call_operand.vmem [shape: bf16[256,128], index: 3, kind: input, shape index: {}]   ;;  %s4716_s4 = inlined_call_operand.hbm [shape: f32[1,128], index: 4, kind: input, shape index: {}]   ;;  %s4717_s5 = inlined_call_operand.vmem [shape: bf16[256,128], index: 5, kind: input, shape index: {}]   ;;  %s4718_s6 = inlined_call_operand.vmem [shape: f32[1,128], index: 6, kind: input, shape index: {}]   ;;  %s4719_s7 = inlined_call_operand.hbm [shape: bf16[8,128,256], index: 7, kind: input, shape index: {}]   ;;  %s4720_s8 = inlined_call_operand.vmem [shape: f32[8,1,256], index: 8, kind: input, shape index: {}]   ;;  %s4721_s9 = inlined_call_operand.hbm [shape: bf16[8,128,256], index: 9, kind: input, shape index: {}]   ;;  %s4722_s10 = inlined_call_operand.vmem [shape: f32[8,1,256], index: 10, kind: input, shape index: {}]   ;;  %s4723_s11 = inlined_call_operand.vmem [shape: f32[8,1,128], index: 11, kind: input, shape index: {}]   ;;  %s4724_s12 = inlined_call_operand.vmem [shape: f32[1,128], index: 12, kind: input, shape index: {}]   ;;  %s4725_s13 = inlined_call_operand.vmem [shape: f32[8,1,128], index: 13, kind: input, shape index: {}]   ;;  %s4726_s14 = inlined_call_operand.vmem [shape: f32[1,128], index: 14, kind: input, shape index: {}]   ;;  %s4727_s15 = inlined_call_operand.vmem [shape: bf16[256,64], index: 15, kind: input, shape index: {}]   ;;  %s4728_s16 = inlined_call_operand.vmem [shape: f32[1,64], index: 16, kind: input, shape index: {}]   ;;  %s4729_s17 = inlined_call_operand.vmem [shape: bf16[256,64], index: 17, kind: input, shape index: {}]   ;;  %s4730_s18 = inlined_call_operand.vmem [shape: f32[1,64], index: 18, kind: input, shape index: {}]   ;;  %s4731_s19 = inlined_call_operand.vmem [shape: bf16[16,16], index: 19, kind: input, shape index: {}]   ;;  %s4732_s20 = inlined_call_operand.vmem [shape: bf16[16,24], index: 20, kind: input, shape index: {}]   ;;  %s4733_s21 = inlined_call_operand.hbm [shape: f32[1,16], index: 21, kind: output, shape index: {}]  }
   0x1   :  { %4742 = sst [smem:[#allocation17_spill]] %s4712_s0 }
   0x2   :  { %4743 = sst [smem:[#allocation18_spill]] %s4713_s1 }
   0x3   :  { %4744 = sst [smem:[#allocation19_spill]] %s4714_s2 }
   0x4   :  { %4745 = sst [smem:[#allocation20_spill]] %s4715_s3 }
   0x5   :  { %4746 = sst [smem:[#allocation21_spill]] %s4716_s4 }
   0x6   :  { %4747 = sst [smem:[#allocation22_spill]] %s4717_s5 }
   0x7   :  { %26 = vsyncpa [#allocation5], 0 }
   0x8   :  { %27 = vsyncpa [#allocation8], 0  ;;  %s56_s26 = sshll.u32 %s4719_s7, 4  ;;  %s57_s26 = int_to_ptr.hbm [resolvable:$true] %s56_s26 }
   0x9   :  { %28 = vsyncpa [#allocation6], 0  ;;  %s3390_s27 = smov [#allocation7]   ;;  %s4748_s0 = sld [smem:[#allocation21_spill]] }
   0xa   :  { %s58_s3 = sshll.u32 %s3390_s27, 4  ;;  %s3391_s30 = smov 128   ;;  %s59_s3 = int_to_ptr.vmem [resolvable:$true] %s58_s3 }
   0xb   :  { %s3392_s5 = smov 8   ;;  %s3393_s22 = smov [#allocation4]  }
   0xc   :  { %64 = dma.hbm_to_vmem [thread:$0]  %s57_s26, 16384, %s59_s3, [#allocation8], %s3391_s30, %s3391_s30, %s3392_s5  }
   0xd   :  { %s44_s23 = sshll.u32 %s3393_s22, 4  ;;  %s71_s2 = sshll.u32 %s4721_s9, 4  ;;  %s45_s23 = int_to_ptr.vmem [resolvable:$true] %s44_s23  ;;  %s72_s2 = int_to_ptr.hbm [resolvable:$true] %s71_s2 }
   0xe   :  { %s3394_s7 = smov [#allocation9]  }
   0xf   :  { %s42_s4 = sshll.u32 %s4748_s0, 4  ;;  %s73_s25 = sshll.u32 %s3394_s7, 4  ;;  %s43_s4 = int_to_ptr.hbm [resolvable:$true] %s42_s4  ;;  %s74_s25 = int_to_ptr.vmem [resolvable:$true] %s73_s25 }
  0x10   :  { %47 = dma.hbm_to_vmem [thread:$0]  %s43_s4, 16, %s45_s23, [#allocation5]  }
  0x11   :  { %79 = dma.hbm_to_vmem [thread:$0]  %s72_s2, 16384, %s74_s25, [#allocation8], %s3391_s30, %s3391_s30, %s3392_s5  }
  0x12   :  { %3380 = dma.done.wait [#allocation5], 16  }
  0x13   :  { %3381 = vsyncadd [#allocation5], 4294967280 }
  0x14   :  { %3382 = dma.done.wait [#allocation8], 32768  }
  0x15   :  { %3383 = vsyncadd [#allocation8], 4294934528  ;;  %v3395_v0 = vmov 0.0   ;;  %vm150_vm0 = vcmask 130048   ;;  %s4749_s27 = sld [smem:[#allocation17_spill]]  ;;  %vm160_vm4 = vcmask 195584  }
  0x16   :  { %662 = vst [vmem:[#allocation2 + $0x10] sm:$0xff] %v3395_v0  ;;  %s4750_s5 = sld [smem:[#allocation18_spill]]  ;;  %vm448_vm5 = vcmask 1043456  }
  0x17   :  { %663 = vst [vmem:[#allocation2] sm:$0xff] %v3395_v0  ;;  %s4751_s2 = sld [smem:[#allocation20_spill]] }
  0x18   :  { %664 = vst [vmem:[#allocation2 + $0x8] sm:$0xff] %v3395_v0  ;;  %s4752_s1 = sld [smem:[#allocation19_spill]] }
  0x19   :  { %665 = vst [vmem:[#allocation3 + $0x8] sm:$0xff] %v3395_v0  ;;  %s4753_s28 = sld [smem:[#allocation22_spill]] }
  0x1a   :  { %666 = vst [vmem:[#allocation3] sm:$0xff] %v3395_v0 }
  0x1b   :  { %v3520_v1 = vld [vmem:[%s4749_s27] sm:$0xff]  ;;  %v3528_v3 = vld [vmem:[%s4749_s27 + $0x8] sm:$0xff]  ;;  %v3536_v5 = vld [vmem:[%s4749_s27 + $0x10] sm:$0xff] }
  0x1c   :  { %118 = vxpose.xlu0.b32.start [1/3] (short) (narrow) %v3520_v1, 16  ;;  %v151_v2 = vsel %vm150_vm0, %v3520_v1, 0.0  ;;  %v154_v4 = vsel %vm150_vm0, %v3528_v3, 0.0  ;;  %v157_v6 = vsel %vm150_vm0, %v3536_v5, 0.0  ;;  %v195_v7 = vld [vmem:[%s4750_s5] sm:$0xff]  ;;  %v196_v8 = vld [vmem:[%s4750_s5 + $0x8] sm:$0xff] }
  0x1d   :  { %152 = vadd.xlane.f32.xlu1 %v151_v2  ;;  %v3547_v9 = vpack.c.bf16 %v196_v8, %v195_v7  ;;  %v3119_v24 = vld [vmem:[%s4751_s2 + $0x78] sm:$0xff]  ;;  %v3118_v27 = vld [vmem:[%s4751_s2 + $0x70] sm:$0xff]  ;;  %v3117_v30 = vld [vmem:[%s4751_s2 + $0x68] sm:$0xff] }
  0x1e   :  { %v3111_v25 = vld [vmem:[%s4751_s2 + $0x38] sm:$0xff]  ;;  %379 = vmatpush.bf16.msra.mxu2 %v3119_v24  ;;  %v3110_v28 = vld [vmem:[%s4751_s2 + $0x30] sm:$0xff]  ;;  %v3109_v31 = vld [vmem:[%s4751_s2 + $0x28] sm:$0xff] }
  0x1f   :  { %214 = vmatpush.bf16.msra.mxu0 %v3547_v9  ;;  %361 = vmatpush.bf16.msra.mxu1 %v3111_v25  ;;  %v3116_v33 = vld [vmem:[%s4751_s2 + $0x60] sm:$0xff]  ;;  %v3115_v35 = vld [vmem:[%s4751_s2 + $0x58] sm:$0xff]  ;;  %v3114_v37 = vld [vmem:[%s4751_s2 + $0x50] sm:$0xff] }
  0x20   :  { %v3108_v34 = vld [vmem:[%s4751_s2 + $0x20] sm:$0xff]  ;;  %v3107_v36 = vld [vmem:[%s4751_s2 + $0x18] sm:$0xff]  ;;  %v3106_v42 = vld [vmem:[%s4751_s2 + $0x10] sm:$0xff] }
  0x21   :  { %v3113_v43 = vld [vmem:[%s4751_s2 + $0x48] sm:$0xff]  ;;  %v3112_v45 = vld [vmem:[%s4751_s2 + $0x40] sm:$0xff]  ;;  %v199_v50 = vld [vmem:[%s4752_s1 + $0x10] sm:$0xff] }
  0x22   :  { %380 = vmatpush.bf16.msra.mxu2 %v3118_v27  ;;  %v3105_v44 = vld [vmem:[%s4751_s2 + $0x8] sm:$0xff]  ;;  %v197_v46 = vld [vmem:[%s4752_s1] sm:$0xff]  ;;  %v228_v51 = vpack.c.bf16 %v199_v50, %v199_v50  ;;  %v3123_v24 = vld [vmem:[%s4753_s28 + $0x18] sm:$0xff] }
  0x23   :  { %362 = vmatpush.bf16.msra.mxu1 %v3110_v28  ;;  %v198_v47 = vld [vmem:[%s4752_s1 + $0x8] sm:$0xff]  ;;  %v3104_v49 = vld [vmem:[%s4751_s2] sm:$0xff]  ;;  %v3122_v28 = vld [vmem:[%s4753_s28 + $0x10] sm:$0xff] }
  0x24   :  { %119 = vxpose.xlu0.b32.cont [2/3] (short) (narrow) %v3528_v3, 16  ;;  %v226_v48 = vpack.c.bf16 %v198_v47, %v197_v46  ;;  %v450_v53 = vsel %vm448_vm5, %v228_v51, 0  ;;  %v3220_v27 = vld [vmem:[#allocation4] ss:$0 sm:$0xff] }
  0x25   :  { %155 = vadd.xlane.f32.xlu1 %v154_v4  ;;  %458 = vmatpush.bf16.msra.mxu3 %v450_v53 }
  0x26   :  { %381 = vmatpush.bf16.msra.mxu2 %v3117_v30 }
  0x27   :  { %363 = vmatpush.bf16.msra.mxu1 %v3109_v31 }
  0x29   :  { %459 = vmatpush.bf16.msra.mxu3 %v226_v48 }
  0x2a   :  { %382 = vmatpush.bf16.msra.mxu2 %v3116_v33  ;;  %v3121_v33 = vld [vmem:[%s4753_s28 + $0x8] sm:$0xff] }
  0x2b   :  { %364 = vmatpush.bf16.msra.mxu1 %v3108_v34 }
  0x2c   :  { %120 = vxpose.xlu0.b32.end [3/3] (short) (narrow) %v3536_v5, 16 }
  0x2d   :  { %158 = vadd.xlane.f32.xlu1 %v157_v6 }
  0x2e   :  { %383 = vmatpush.bf16.msra.mxu2 %v3115_v35 }
  0x2f   :  { %365 = vmatpush.bf16.msra.mxu1 %v3107_v36  ;;  %v3120_v36 = vld [vmem:[%s4753_s28] sm:$0xff] }
  0x32   :  { %384 = vmatpush.bf16.msra.mxu2 %v3114_v37 }
  0x33   :  { %366 = vmatpush.bf16.msra.mxu1 %v3106_v42 }
  0x36   :  { %385 = vmatpush.bf16.msra.mxu2 %v3113_v43 }
  0x37   :  { %367 = vmatpush.bf16.msra.mxu1 %v3105_v44 }
  0x3a   :  { %386 = vmatpush.bf16.msra.mxu2 %v3112_v45 }
  0x3b   :  { %368 = vmatpush.bf16.msra.mxu1 %v3104_v49 }
  0x3d   :  { %387 = vmatmul.bf16.vlgmr.msra.gmra.mxu2 %v226_v48 }
  0x4d   :  { %392 = vmatmul.bf16.gmra.mxu2 %v228_v51 }
  0x90   :  { %v153_v10 = vpop.xlane.xlu1 %152 }
  0x91   :  { %v170_v11 = vmax.f32 %v153_v10, 1.0  ;;  %vm167_vm1 = vcmp.gt.f32.partialorder %v153_v10, 0.0  ;;  %v3135_v10 = vld [vmem:[%s4753_s28 + $0x78] sm:$0xff] }
  0x92   :  { %613 = vmatpush.bf16.msrb.mxu3 %v3135_v10 }
  0x93   :  { %3222 = vrcp.f32 %v170_v11  ;;  %v3134_v11 = vld [vmem:[%s4753_s28 + $0x70] sm:$0xff] }
  0x96   :  { %614 = vmatpush.bf16.msrb.mxu3 %v3134_v11 }
  0x98   :  { %v156_v12 = vpop.xlane.xlu1 %155 }
  0x99   :  { %v171_v13 = vmax.f32 %v156_v12, 1.0  ;;  %v3223_v14 = vpop.eup %3222  ;;  %vm168_vm2 = vcmp.gt.f32.partialorder %v156_v12, 0.0 }
  0x9a   :  { %v176_v15 = vsel %vm167_vm1, %v3223_v14, 0.0  ;;  %v3127_v14 = vld [vmem:[%s4753_s28 + $0x38] sm:$0xff] }
  0x9b   :  { %3224 = vrcp.f32 %v171_v13  ;;  %v187_v18 = vmul.f32 %v176_v15, %v3520_v1  ;;  %v3133_v13 = vld [vmem:[%s4753_s28 + $0x68] sm:$0xff]  ;;  %v3132_v15 = vld [vmem:[%s4753_s28 + $0x60] sm:$0xff]  ;;  %599 = vmatpush.bf16.msrb.mxu0 %v3127_v14 }
  0x9c   :  { %615 = vmatpush.bf16.msrb.mxu3 %v3133_v13 }
  0xa0   :  { %v159_v16 = vpop.xlane.xlu1 %158  ;;  %616 = vmatpush.bf16.msrb.mxu3 %v3132_v15 }
  0xa1   :  { %v3225_v17 = vpop.eup %3224  ;;  %v172_v19 = vmax.f32 %v159_v16, 1.0  ;;  %vm169_vm3 = vcmp.gt.f32.partialorder %v159_v16, 0.0  ;;  %v3126_v16 = vld [vmem:[%s4753_s28 + $0x30] sm:$0xff] }
  0xa2   :  { %v177_v20 = vsel %vm168_vm2, %v3225_v17, 0.0  ;;  %v3131_v17 = vld [vmem:[%s4753_s28 + $0x58] sm:$0xff]  ;;  %600 = vmatpush.bf16.msrb.mxu0 %v3126_v16 }
  0xa3   :  { %v188_v21 = vmul.f32 %v177_v20, %v3528_v3  ;;  %3226 = vrcp.f32 %v172_v19  ;;  %v3130_v20 = vld [vmem:[%s4753_s28 + $0x50] sm:$0xff] }
  0xa4   :  { %617 = vmatpush.bf16.msrb.mxu3 %v3131_v17 }
  0xa5   :  { %v3552_v22 = vpack.c.bf16 %v188_v21, %v187_v18  ;;  %v3125_v18 = vld [vmem:[%s4753_s28 + $0x28] sm:$0xff]  ;;  %v3124_v21 = vld [vmem:[%s4753_s28 + $0x20] sm:$0xff] }
  0xa6   :  { %601 = vmatpush.bf16.msrb.mxu0 %v3125_v18 }
  0xa7   :  { %2694 = vmatmul.msk.bf16.vlgmr.msra.gmra.mxu0 %vm150_vm0, %v3552_v22 }
  0xa8   :  { %618 = vmatpush.bf16.msrb.mxu3 %v3130_v20 }
  0xa9   :  { %v3227_v23 = vpop.eup %3226 }
  0xaa   :  { %v178_v26 = vsel %vm169_vm3, %v3227_v23, 0.0  ;;  %v3129_v23 = vld [vmem:[%s4753_s28 + $0x48] sm:$0xff]  ;;  %602 = vmatpush.bf16.msrb.mxu0 %v3124_v21 }
  0xab   :  { %v189_v29 = vmul.f32 %v178_v26, %v3536_v5  ;;  %v3128_v26 = vld [vmem:[%s4753_s28 + $0x40] sm:$0xff] }
  0xac   :  { %619 = vmatpush.bf16.msrb.mxu3 %v3129_v23 }
  0xad   :  { %v3575_v32 = vpack.c.bf16 %v189_v29, %v189_v29 }
  0xae   :  { %603 = vmatpush.bf16.msrb.mxu0 %v3123_v24 }
  0xb0   :  { %620 = vmatpush.bf16.msrb.mxu3 %v3128_v26 }
  0xb2   :  { %604 = vmatpush.bf16.msrb.mxu0 %v3122_v28 }
  0xb6   :  { %605 = vmatpush.bf16.msrb.mxu0 %v3121_v33 }
  0xb7   :  { %2695 = vmatmul.msk.bf16.gmra.mxu0 %vm150_vm0, %v3575_v32 }
  0xba   :  { %606 = vmatpush.bf16.msrb.mxu0 %v3120_v36 }
  0xc0   :  { %v3594_v38 = vpop.trf.xlu0  ;;  %v388_v12 = vpop.f32.mrf.mxu2 }
  0xc1   :  { %v161_v39 = vsel %vm160_vm4, %v3594_v38, 0.0 }
  0xc2   :  { %162 = vadd.xlane.f32.xlu2 %v161_v39 }
  0xc8   :  { %v3598_v40 = vpop.trf.xlu0  ;;  %v390_v19 = vpop.f32.mrf.mxu2 }
  0xc9   :  { %v164_v41 = vsel %vm160_vm4, %v3598_v40, 0.0 }
  0xca   :  { %165 = vadd.xlane.f32.xlu2 %v164_v41 }
  0xd0   :  { %v393_v25 = vpop.f32.mrf.mxu2 }
  0xd8   :  { %v395_v34 = vpop.f32.mrf.mxu2 }
 0x124   :  { %v216_v52 = vpop.f32.mrf.mxu0 }
 0x12c   :  { %v218_v54 = vpop.f32.mrf.mxu0 }
 0x12d   :  { %v225_v55 = vpack.c.bf16 %v218_v54, %v216_v52 }
 0x12f   :  { %369 = vmatmul.bf16.vlgmr.msra.gmra.mxu1 %v225_v55 }
 0x134   :  { %v221_v56 = vpop.f32.mrf.mxu0 }
 0x135   :  { %v163_v57 = vpop.xlane.xlu2 %162  ;;  %v227_v59 = vpack.c.bf16 %v221_v56, %v221_v56 }
 0x136   :  { %v181_v58 = vmax.f32 %v163_v57, 1.0  ;;  %vm179_vm6 = vcmp.gt.f32.partialorder %v163_v57, 0.0 }
 0x138   :  { %3228 = vrcp.f32 %v181_v58 }
 0x13c   :  { %v223_v60 = vpop.f32.mrf.mxu0 }
 0x13d   :  { %v166_v61 = vpop.xlane.xlu2 %165 }
 0x13e   :  { %v182_v62 = vmax.f32 %v166_v61, 1.0  ;;  %v3229_v63 = vpop.eup %3228  ;;  %vm180_vm7 = vcmp.gt.f32.partialorder %v166_v61, 0.0 }
 0x13f   :  { %374 = vmatmul.bf16.gmra.mxu1 %v227_v59  ;;  %v185_v0 = vsel %vm179_vm6, %v3229_v63, 0.0 }
 0x140   :  { %3230 = vrcp.f32 %v182_v62  ;;  %v192_v6 = vmul.f32 %v185_v0, %v3594_v38 }
 0x146   :  { %v3231_v2 = vpop.eup %3230 }
 0x147   :  { %v186_v4 = vsel %vm180_vm7, %v3231_v2, 0.0 }
 0x148   :  { %v193_v7 = vmul.f32 %v186_v4, %v3598_v40 }
 0x14a   :  { %v3629_v8 = vpack.c.bf16 %v193_v7, %v192_v6 }
 0x14c   :  { %2760 = vmatmul.msk.bf16.vlgmr.msra.gmra.mxu3 %vm160_vm4, %v3629_v8 }
 0x15c   :  { %621 = vmatmul.bf16.vlgmr.msrb.gmra.mxu3 %v3547_v9 }
 0x1ac   :  { %v370_v29 = vpop.f32.mrf.mxu1 }
 0x1ad   :  { %v371_v30 = vadd.f32 %v3220_v27, %v370_v29 }
 0x1af   :  { %v389_v31 = vadd.f32 %v388_v12, %v371_v30 }
 0x1b1   :  { %v397_v35 = vmul.f32 %v389_v31, %v389_v31 }
 0x1b3   :  { %400 = vadd.xlane.f32.xlu2 %v397_v35 }
 0x1b4   :  { %v372_v37 = vpop.f32.mrf.mxu1 }
 0x1b5   :  { %v373_v39 = vadd.f32 %v3220_v27, %v372_v37 }
 0x1b7   :  { %v391_v41 = vadd.f32 %v390_v19, %v373_v39 }
 0x1b9   :  { %v398_v42 = vmul.f32 %v391_v41, %v391_v41 }
 0x1bb   :  { %402 = vadd.xlane.f32.xlu0 %v398_v42 }
 0x1bc   :  { %v375_v9 = vpop.f32.mrf.mxu1 }
 0x1bd   :  { %v376_v43 = vadd.f32 %v3220_v27, %v375_v9  ;;  %v3221_v27 = vld [vmem:[%s4718_s6] ss:$0 sm:$0xff]  ;;  %s3691_s6 = smov 0  }
 0x1bf   :  { %v394_v44 = vadd.f32 %v393_v25, %v376_v43 }
 0x1c1   :  { %v399_v45 = vmul.f32 %v394_v44, %v394_v44 }
 0x1c3   :  { %404 = vadd.xlane.f32.xlu1 %v399_v45 }
 0x1c4   :  { %v377_v46 = vpop.f32.mrf.mxu1 }
 0x1cf   :  { %v461_v47 = vpop.f32.mrf.mxu3 }
 0x1d7   :  { %v463_v48 = vpop.f32.mrf.mxu3 }
 0x1d8   :  { %v466_v49 = vpack.c.bf16 %v463_v48, %v461_v47 }
 0x1da   :  { %607 = vmatmul.bf16.vlgmr.msrb.gmra.mxu0 %v466_v49 }
 0x1df   :  { %v622_v28 = vpop.f32.mrf.mxu3 }
 0x1e7   :  { %v624_v36 = vpop.f32.mrf.mxu3 }
 0x226   :  { %v401_v50 = vpop.xlane.xlu2 %400 }
 0x227   :  { %v406_v51 = vmax.f32 %v401_v50, 1e-24 }
 0x229   :  { %3232 = vrsqrt.f32 %v406_v51  ;;  %vm415_vm8 = vweird.f32 %v406_v51 }
 0x22e   :  { %v403_v52 = vpop.xlane.xlu0 %402 }
 0x22f   :  { %v3233_v53 = vpop.eup %3232  ;;  %v407_v54 = vmax.f32 %v403_v52, 1e-24 }
 0x230   :  { %v410_v55 = vmul.f32 %v3233_v53, %v406_v51  ;;  %vm416_vm9 = vweird.f32 %v3233_v53 }
 0x231   :  { %3234 = vrsqrt.f32 %v407_v54  ;;  %vm417_vm10 = vmor %vm415_vm8, %vm416_vm9  ;;  %vm425_vm11 = vweird.f32 %v407_v54 }
 0x232   :  { %v411_v56 = vmul.f32 %v3233_v53, %v410_v55 }
 0x234   :  { %v412_v57 = vmul.f32 0.5, %v411_v56 }
 0x236   :  { %v413_v58 = vsub.f32 1.5, %v412_v57  ;;  %v405_v59 = vpop.xlane.xlu1 %404 }
 0x237   :  { %v3235_v60 = vpop.eup %3234  ;;  %v408_v61 = vmax.f32 %v405_v59, 1e-24 }
 0x238   :  { %v420_v62 = vmul.f32 %v3235_v60, %v407_v54  ;;  %v414_v63 = vmul.f32 %v3233_v53, %v413_v58  ;;  %vm426_vm12 = vweird.f32 %v3235_v60 }
 0x239   :  { %3236 = vrsqrt.f32 %v408_v61  ;;  %vm427_vm13 = vmor %vm425_vm11, %vm426_vm12  ;;  %vm435_vm14 = vweird.f32 %v408_v61 }
 0x23a   :  { %v421_v0 = vmul.f32 %v3235_v60, %v420_v62  ;;  %v418_v4 = vsel %vm417_vm10, %v3233_v53, %v414_v63 }
 0x23b   :  { %v439_v12 = vmul.f32 %v418_v4, %v389_v31 }
 0x23c   :  { %v422_v2 = vmul.f32 0.5, %v421_v0 }
 0x23d   :  { %v442_v17 = vmax.f32 %v439_v12, 0.0 }
 0x23e   :  { %v423_v6 = vsub.f32 1.5, %v422_v2 }
 0x23f   :  { %v3237_v7 = vpop.eup %3236 }
 0x240   :  { %v424_v10 = vmul.f32 %v3235_v60, %v423_v6  ;;  %v430_v11 = vmul.f32 %v3237_v7, %v408_v61  ;;  %vm436_vm15 = vweird.f32 %v3237_v7 }
 0x241   :  { %vm437_vm1 = vmor %vm435_vm14, %vm436_vm15 }
 0x242   :  { %v428_v13 = vsel %vm427_vm13, %v3235_v60, %v424_v10  ;;  %v431_v14 = vmul.f32 %v3237_v7, %v430_v11 }
 0x243   :  { %v440_v15 = vmul.f32 %v428_v13, %v391_v41 }
 0x244   :  { %v432_v16 = vmul.f32 0.5, %v431_v14 }
 0x245   :  { %v443_v18 = vmax.f32 %v440_v15, 0.0 }
 0x246   :  { %v433_v19 = vsub.f32 1.5, %v432_v16 }
 0x247   :  { %v3682_v20 = vpack.c.bf16 %v443_v18, %v442_v17 }
 0x248   :  { %v434_v21 = vmul.f32 %v3237_v7, %v433_v19 }
 0x249   :  { %4754 = vst [vmem:[#allocation14_spill] sm:$0xff] %v3682_v20 }
 0x24a   :  { %v438_v23 = vsel %vm437_vm1, %v3237_v7, %v434_v21 }
 0x24b   :  { %v441_v24 = vmul.f32 %v438_v23, %v394_v44 }
 0x24d   :  { %v444_v25 = vmax.f32 %v441_v24, 0.0 }
 0x24f   :  { %v3684_v26 = vpack.c.bf16 %v444_v25, %v444_v25 }
 0x251   :  { %4755 = vst [vmem:[#allocation15_spill] sm:$0xff] %v3684_v26 }
 0x257   :  { %v608_v29 = vpop.f32.mrf.mxu0 }
 0x258   :  { %v609_v30 = vadd.f32 %v3221_v27, %v608_v29 }
 0x25a   :  { %v623_v31 = vadd.f32 %v622_v28, %v609_v30 }
 0x25c   :  { %v627_v33 = vmul.f32 %v623_v31, %v623_v31 }
 0x25e   :  { %629 = vadd.xlane.f32.xlu2 %v627_v33 }
 0x25f   :  { %v610_v34 = vpop.f32.mrf.mxu0 }
 0x260   :  { %v611_v35 = vadd.f32 %v3221_v27, %v610_v34 }
 0x262   :  { %v625_v37 = vadd.f32 %v624_v36, %v611_v35 }
 0x264   :  { %v628_v39 = vmul.f32 %v625_v37, %v625_v37 }
 0x266   :  { %631 = vadd.xlane.f32.xlu1 %v628_v39 }
 0x2d1   :  { %v630_v41 = vpop.xlane.xlu2 %629 }
 0x2d2   :  { %v633_v42 = vmax.f32 %v630_v41, 1e-24 }
 0x2d4   :  { %3238 = vrsqrt.f32 %v633_v42  ;;  %vm641_vm3 = vweird.f32 %v633_v42 }
 0x2d9   :  { %v632_v9 = vpop.xlane.xlu1 %631 }
 0x2da   :  { %v3239_v43 = vpop.eup %3238  ;;  %v634_v44 = vmax.f32 %v632_v9, 1e-24 }
 0x2db   :  { %v636_v45 = vmul.f32 %v3239_v43, %v633_v42  ;;  %vm642_vm2 = vweird.f32 %v3239_v43 }
 0x2dc   :  { %3240 = vrsqrt.f32 %v634_v44  ;;  %vm643_vm6 = vmor %vm641_vm3, %vm642_vm2  ;;  %vm651_vm8 = vweird.f32 %v634_v44 }
 0x2dd   :  { %v637_v46 = vmul.f32 %v3239_v43, %v636_v45 }
 0x2df   :  { %v638_v47 = vmul.f32 0.5, %v637_v46 }
 0x2e1   :  { %v639_v48 = vsub.f32 1.5, %v638_v47 }
 0x2e2   :  { %v3241_v49 = vpop.eup %3240 }
 0x2e3   :  { %v646_v50 = vmul.f32 %v3241_v49, %v634_v44  ;;  %v640_v51 = vmul.f32 %v3239_v43, %v639_v48  ;;  %vm652_vm7 = vweird.f32 %v3241_v49 }
 0x2e4   :  { %vm653_vm9 = vmor %vm651_vm8, %vm652_vm7 }
 0x2e5   :  { %v647_v52 = vmul.f32 %v3241_v49, %v646_v50  ;;  %v644_v54 = vsel %vm643_vm6, %v3239_v43, %v640_v51 }
 0x2e6   :  { %v655_v57 = vmul.f32 %v644_v54, %v623_v31 }
 0x2e7   :  { %v648_v53 = vmul.f32 0.5, %v647_v52 }
 0x2e8   :  { %v657_v60 = vmax.f32 %v655_v57, 0.0 }
 0x2e9   :  { %v649_v55 = vsub.f32 1.5, %v648_v53 }
 0x2eb   :  { %v650_v56 = vmul.f32 %v3241_v49, %v649_v55 }
 0x2ed   :  { %v654_v58 = vsel %vm653_vm9, %v3241_v49, %v650_v56 }
 0x2ee   :  { %v656_v59 = vmul.f32 %v654_v58, %v625_v37 }
 0x2f0   :  { %v658_v61 = vmax.f32 %v656_v59, 0.0 }
 0x2f2   :  { %v3689_v62 = vpack.c.bf16 %v658_v61, %v657_v60 }
 0x2f4   :  { %4756 = vst [vmem:[#allocation16_spill] sm:$0xff] %v3689_v62 }
 0x2f5 LB: > { %v4758_v26 = vld [vmem:[#allocation15_spill] sm:$0xff]  ;;  %v4759_v20 = vld [vmem:[#allocation14_spill] sm:$0xff]  ;;  %s3136_s3 = sshll.u32 %s3388_s6, 7  ;;  %s3701_s4 = scalar_lea.vmem %s4723_s11, %s3388_s6  ;;  %vm1373_vm10 = vcmask 130112   ;;  %vm1444_vm11 = vcmask 1041409   ;;  %vm1446_vm12 = vcmask 1042434   ;;  %s3388_s6 = sphi %s3691_s6, %s672_s6  }
 0x2f6   : > { %s3707_s22 = scalar_lea.vmem %s4725_s13, %s3388_s6  ;;  %s3709_s23 = scalar_lea.vmem [#allocation7], %s3136_s3  ;;  %vm1448_vm13 = vcmask 1043459   ;;  %vm1450_vm14 = vcmask 1044484   ;;  %vm1452_vm15 = vcmask 1045509   ;;  %vm1454_vm1 = vcmask 1046534  }
 0x2f7   : > { %v3151_v63 = vld [vmem:[%s3709_s23 + $0x74] sm:$0xf]  ;;  %v2888_v0 = vld [vmem:[%s3709_s23 + $0x78] sm:$0xf0]  ;;  %v2886_v4 = vld [vmem:[%s3709_s23 + $0x70] sm:$0xf] }
 0x2f8   : > { %v2891_v2 = vor.u32 %v3151_v63, %v2888_v0  ;;  %s3714_s1 = scalar_lea.vmem [#allocation9], %s3136_s3  ;;  %v3152_v13 = vld [vmem:[%s3709_s23 + $0x74] sm:$0xf0]  ;;  %v3149_v14 = vld [vmem:[%s3709_s23 + $0x64] sm:$0xf]  ;;  %s2827_s24 = sshll.u32 %s3388_s6, 1 }
 0x2f9   : > { %v2951_v6 = vld [vmem:[%s3714_s1 + $0x70] sm:$0xf]  ;;  %v3169_v7 = vld [vmem:[%s3714_s1 + $0x74] sm:$0xf0]  ;;  %v3168_v10 = vld [vmem:[%s3714_s1 + $0x74] sm:$0xf]  ;;  %v2887_v16 = vor.u32 %v3152_v13, %v2886_v4  ;;  %s693_s26 = scalar_lea.vmem %s4720_s8, %s2827_s24  ;;  %s826_s28 = scalar_lea.vmem %s4722_s10, %s2827_s24 }
 0x2fa   : > { %794 = vmatpush.bf16.msra.mxu1 %v2891_v2  ;;  %v2952_v11 = vor.u32 %v3169_v7, %v2951_v6  ;;  %v2953_v12 = vld [vmem:[%s3714_s1 + $0x78] sm:$0xf0]  ;;  %v2880_v17 = vld [vmem:[%s3709_s23 + $0x68] sm:$0xf0]  ;;  %v2943_v18 = vld [vmem:[%s3714_s1 + $0x60] sm:$0xf] }
 0x2fb   : > { %v4757_v62 = vld [vmem:[#allocation16_spill] sm:$0xff]  ;;  %v2956_v15 = vor.u32 %v3168_v10, %v2953_v12  ;;  %v3167_v19 = vld [vmem:[%s3714_s1 + $0x64] sm:$0xf0]  ;;  %v2883_v21 = vor.u32 %v3149_v14, %v2880_v17  ;;  %v3166_v24 = vld [vmem:[%s3714_s1 + $0x64] sm:$0xf]  ;;  %780 = vmatpush.bf16.msra.mxu0 %v2887_v16  ;;  %vm1456_vm2 = vcmask 1047559  }
 0x2fc   : > { %913 = vmatpush.bf16.msra.mxu2 %v2952_v11  ;;  %v2944_v23 = vor.u32 %v3167_v19, %v2943_v18  ;;  %v2945_v25 = vld [vmem:[%s3714_s1 + $0x68] sm:$0xf0]  ;;  %v2878_v27 = vld [vmem:[%s3709_s23 + $0x60] sm:$0xf]  ;;  %v3150_v29 = vld [vmem:[%s3709_s23 + $0x64] sm:$0xf0] }
 0x2fd   : > { %931 = vmatpush.bf16.msra.mxu3 %v2956_v15  ;;  %v2948_v28 = vor.u32 %v3166_v24, %v2945_v25  ;;  %v3147_v30 = vld [vmem:[%s3709_s23 + $0x54] sm:$0xf]  ;;  %v2872_v31 = vld [vmem:[%s3709_s23 + $0x58] sm:$0xf0]  ;;  %v2879_v33 = vor.u32 %v3150_v29, %v2878_v27  ;;  %v2935_v35 = vld [vmem:[%s3714_s1 + $0x50] sm:$0xf] }
 0x2fe   : > { %795 = vmatpush.bf16.msra.mxu1 %v2883_v21  ;;  %v2875_v34 = vor.u32 %v3147_v30, %v2872_v31  ;;  %v3165_v36 = vld [vmem:[%s3714_s1 + $0x54] sm:$0xf0]  ;;  %v3164_v37 = vld [vmem:[%s3714_s1 + $0x54] sm:$0xf]  ;;  %v2937_v39 = vld [vmem:[%s3714_s1 + $0x58] sm:$0xf0] }
 0x2ff   : > { %v2870_v41 = vld [vmem:[%s3709_s23 + $0x50] sm:$0xf]  ;;  %v3148_v42 = vld [vmem:[%s3709_s23 + $0x54] sm:$0xf0]  ;;  %v2936_v9 = vor.u32 %v3165_v36, %v2935_v35  ;;  %v3145_v43 = vld [vmem:[%s3709_s23 + $0x44] sm:$0xf]  ;;  %781 = vmatpush.bf16.msra.mxu0 %v2879_v33  ;;  %v2940_v45 = vor.u32 %v3164_v37, %v2937_v39 }
 0x300   : > { %914 = vmatpush.bf16.msra.mxu2 %v2944_v23  ;;  %v2864_v44 = vld [vmem:[%s3709_s23 + $0x48] sm:$0xf0]  ;;  %v2871_v46 = vor.u32 %v3148_v42, %v2870_v41  ;;  %v2927_v47 = vld [vmem:[%s3714_s1 + $0x40] sm:$0xf]  ;;  %v3163_v48 = vld [vmem:[%s3714_s1 + $0x44] sm:$0xf0] }
 0x301   : > { %932 = vmatpush.bf16.msra.mxu3 %v2948_v28  ;;  %v3162_v49 = vld [vmem:[%s3714_s1 + $0x44] sm:$0xf]  ;;  %v2867_v50 = vor.u32 %v3145_v43, %v2864_v44  ;;  %v2929_v51 = vld [vmem:[%s3714_s1 + $0x48] sm:$0xf0]  ;;  %v2862_v52 = vld [vmem:[%s3709_s23 + $0x40] sm:$0xf]  ;;  %v2928_v56 = vor.u32 %v3163_v48, %v2927_v47 }
 0x302   : > { %796 = vmatpush.bf16.msra.mxu1 %v2875_v34  ;;  %v3146_v53 = vld [vmem:[%s3709_s23 + $0x44] sm:$0xf0]  ;;  %v3143_v54 = vld [vmem:[%s3709_s23 + $0x34] sm:$0xf]  ;;  %v2856_v55 = vld [vmem:[%s3709_s23 + $0x38] sm:$0xf0]  ;;  %v2932_v57 = vor.u32 %v3162_v49, %v2929_v51 }
 0x303   : > { %782 = vmatpush.bf16.msra.mxu0 %v2871_v46  ;;  %v2863_v58 = vor.u32 %v3146_v53, %v2862_v52  ;;  %v2919_v59 = vld [vmem:[%s3714_s1 + $0x30] sm:$0xf]  ;;  %v3161_v60 = vld [vmem:[%s3714_s1 + $0x34] sm:$0xf0]  ;;  %v3160_v61 = vld [vmem:[%s3714_s1 + $0x34] sm:$0xf]  ;;  %v2859_v63 = vor.u32 %v3143_v54, %v2856_v55 }
 0x304   : > { %915 = vmatpush.bf16.msra.mxu2 %v2936_v9  ;;  %v2921_v0 = vld [vmem:[%s3714_s1 + $0x38] sm:$0xf0]  ;;  %v2854_v2 = vld [vmem:[%s3709_s23 + $0x30] sm:$0xf]  ;;  %v3144_v4 = vld [vmem:[%s3709_s23 + $0x34] sm:$0xf0]  ;;  %v2920_v10 = vor.u32 %v3161_v60, %v2919_v59 }
 0x305   : > { %933 = vmatpush.bf16.msra.mxu3 %v2940_v45  ;;  %v3141_v6 = vld [vmem:[%s3709_s23 + $0x24] sm:$0xf]  ;;  %v2848_v7 = vld [vmem:[%s3709_s23 + $0x28] sm:$0xf0]  ;;  %v2924_v11 = vor.u32 %v3160_v61, %v2921_v0  ;;  %v2855_v12 = vor.u32 %v3144_v4, %v2854_v2  ;;  %v2911_v13 = vld [vmem:[%s3714_s1 + $0x20] sm:$0xf] }
 0x306   : > { %797 = vmatpush.bf16.msra.mxu1 %v2867_v50  ;;  %v3159_v14 = vld [vmem:[%s3714_s1 + $0x24] sm:$0xf0]  ;;  %v3158_v15 = vld [vmem:[%s3714_s1 + $0x24] sm:$0xf]  ;;  %v2851_v16 = vor.u32 %v3141_v6, %v2848_v7  ;;  %v2913_v17 = vld [vmem:[%s3714_s1 + $0x28] sm:$0xf0] }
 0x307   : > { %783 = vmatpush.bf16.msra.mxu0 %v2863_v58  ;;  %v2846_v18 = vld [vmem:[%s3709_s23 + $0x20] sm:$0xf]  ;;  %v3142_v19 = vld [vmem:[%s3709_s23 + $0x24] sm:$0xf0]  ;;  %v3139_v21 = vld [vmem:[%s3709_s23 + $0x14] sm:$0xf]  ;;  %v2912_v24 = vor.u32 %v3159_v14, %v2911_v13  ;;  %v2916_v25 = vor.u32 %v3158_v15, %v2913_v17 }
 0x308   : > { %916 = vmatpush.bf16.msra.mxu2 %v2928_v56  ;;  %v2840_v23 = vld [vmem:[%s3709_s23 + $0x18] sm:$0xf0]  ;;  %v2847_v27 = vor.u32 %v3142_v19, %v2846_v18  ;;  %v2903_v28 = vld [vmem:[%s3714_s1 + $0x10] sm:$0xf]  ;;  %v3157_v29 = vld [vmem:[%s3714_s1 + $0x14] sm:$0xf0] }
 0x309   : > { %934 = vmatpush.bf16.msra.mxu3 %v2932_v57  ;;  %v3156_v30 = vld [vmem:[%s3714_s1 + $0x14] sm:$0xf]  ;;  %v2843_v31 = vor.u32 %v3139_v21, %v2840_v23  ;;  %v2905_v33 = vld [vmem:[%s3714_s1 + $0x18] sm:$0xf0]  ;;  %v2838_v34 = vld [vmem:[%s3709_s23 + $0x10] sm:$0xf]  ;;  %v2904_v39 = vor.u32 %v3157_v29, %v2903_v28 }
 0x30a   : > { %798 = vmatpush.bf16.msra.mxu1 %v2859_v63  ;;  %v3140_v35 = vld [vmem:[%s3709_s23 + $0x14] sm:$0xf0]  ;;  %v3137_v36 = vld [vmem:[%s3709_s23 + $0x4] sm:$0xf]  ;;  %v2832_v37 = vld [vmem:[%s3709_s23 + $0x8] sm:$0xf0]  ;;  %v2908_v41 = vor.u32 %v3156_v30, %v2905_v33 }
 0x30b   : > { %784 = vmatpush.bf16.msra.mxu0 %v2855_v12  ;;  %v2839_v42 = vor.u32 %v3140_v35, %v2838_v34  ;;  %v2895_v9 = vld [vmem:[%s3714_s1] sm:$0xf]  ;;  %v3155_v43 = vld [vmem:[%s3714_s1 + $0x4] sm:$0xf0]  ;;  %v2835_v44 = vor.u32 %v3137_v36, %v2832_v37  ;;  %v3154_v45 = vld [vmem:[%s3714_s1 + $0x4] sm:$0xf] }
 0x30c   : > { %917 = vmatpush.bf16.msra.mxu2 %v2920_v10  ;;  %v2897_v46 = vld [vmem:[%s3714_s1 + $0x8] sm:$0xf0]  ;;  %v2830_v47 = vld [vmem:[%s3709_s23] sm:$0xf]  ;;  %v3138_v48 = vld [vmem:[%s3709_s23 + $0x4] sm:$0xf0]  ;;  %v2896_v49 = vor.u32 %v3155_v43, %v2895_v9 }
 0x30d   : > { %935 = vmatpush.bf16.msra.mxu3 %v2924_v11  ;;  %v2900_v50 = vor.u32 %v3154_v45, %v2897_v46  ;;  %v2831_v51 = vor.u32 %v3138_v48, %v2830_v47  ;;  %v3787_v52 = vld [vmem:[%s693_s26] sm:$0x3]  ;;  %vm1317_vm3 = vcmp.gt.f32.partialorder %v3520_v1, 0.0  ;;  %vm1948_vm6 = vcmask 195712   ;;  %s672_s6 = sadd.s32 1, %s3388_s6  }
 0x30e   : > { %799 = vmatpush.bf16.msra.mxu1 %v2851_v16  ;;  %v697_v53 = vperm.slane %v3787_v52, 1  ;;  %v827_v56 = vld [vmem:[%s826_s28] sm:$0x3]  ;;  %v696_v63 = vperm.slane %v3787_v52, 0  ;;  %vm1318_vm7 = vcmp.gt.f32.partialorder %v3528_v3, 0.0  ;;  %vm1894_vm8 = vcmp.gt.f32.partialorder %v3598_v40, 0.0 }
 0x30f   : > { %785 = vmatpush.bf16.msra.mxu0 %v2847_v27  ;;  %v829_v60 = vperm.slane %v827_v56, 0  ;;  %v3801_v0 = vperm.slane %v827_v56, 1  ;;  %vm1893_vm9 = vcmp.gt.f32.partialorder %v3594_v38, 0.0  ;;  %p669_p0 = scmp.ge.s32.totalorder %s672_s6, 8  }
 0x310   : > { %918 = vmatpush.bf16.msra.mxu2 %v2912_v24  ;;  %v3830_v24 = vld [vmem:[%s3707_s22] ss:$0 sm:$0xff]  ;;  %s2668_s29 = sshll.u32 (%p669_p0), %s4733_s21, 4  ;;  %s2669_s29 = int_to_ptr.hbm [resolvable:$true] %s2668_s29 }
 0x311   : > { %936 = vmatpush.bf16.msra.mxu3 %v2916_v25 }
 0x312   : > { %800 = vmatpush.bf16.msra.mxu1 %v2843_v31 }
 0x313   : > { %786 = vmatpush.bf16.msra.mxu0 %v2839_v42 }
 0x314   : > { %919 = vmatpush.bf16.msra.mxu2 %v2904_v39 }
 0x315   : > { %937 = vmatpush.bf16.msra.mxu3 %v2908_v41 }
 0x316   : > { %801 = vmatpush.bf16.msra.mxu1 %v2835_v44 }
 0x317   : > { %787 = vmatpush.bf16.msra.mxu0 %v2831_v51 }
 0x318   : > { %920 = vmatpush.bf16.msra.mxu2 %v2896_v49 }
 0x319   : > { %938 = vmatpush.bf16.msra.mxu3 %v2900_v50  ;;  %802 = vmatmul.bf16.vlgmr.msra.gmra.mxu1 %v4757_v62 }
 0x31a   : > { %788 = vmatmul.bf16.vlgmr.msra.gmra.mxu0 %v4757_v62 }
 0x31b   : > { %921 = vmatmul.bf16.vlgmr.msra.gmra.mxu2 %v4759_v20 }
 0x31c   : > { %939 = vmatmul.bf16.vlgmr.msra.gmra.mxu3 %v4759_v20 }
 0x32b   : > { %926 = vmatmul.bf16.gmra.mxu2 %v4758_v26 }
 0x32c   : > { %944 = vmatmul.bf16.gmra.mxu3 %v4758_v26 }
 0x396   : > { %v803_v54 = vpop.f32.mrf.mxu1 }
 0x397   : > { %v3795_v55 = vadd.f32 %v803_v54, %v697_v53  ;;  %v789_v57 = vpop.f32.mrf.mxu0 }
 0x398   : > { %v3812_v13 = vadd.f32 %v789_v57, %v696_v63  ;;  %v3852_v57 = vld [vmem:[%s3701_s4] ss:$0 sm:$0xff] }
 0x399   : > { %v1557_v58 = vrot.slane %v3795_v55, 2  ;;  %v1556_v59 = vrot.slane %v3795_v55, 1  ;;  %v1560_v61 = vrot.slane %v3795_v55, 5  ;;  %v1558_v2 = vrot.slane %v3795_v55, 3 }
 0x39a   : > { %v3818_v15 = vperm.slane %v3795_v55, 0  ;;  %v1559_v36 = vrot.slane %v3795_v55, 4 }
 0x39b   : > { %v3804_v6 = vperm.slane %v1557_v58, 0  ;;  %v3806_v7 = vperm.slane %v1556_v59, 0  ;;  %v3810_v12 = vperm.slane %v1560_v61, 0  ;;  %v3821_v17 = vperm.slane %v1558_v2, 0 }
 0x39c   : > { %v3848_v51 = vperm.slane %v1559_v36, 0 }
 0x39e   : > { %v922_v4 = vpop.f32.mrf.mxu2 }
 0x39f   : > { %v3808_v10 = vadd.f32 %v922_v4, %v829_v60  ;;  %v940_v11 = vpop.f32.mrf.mxu3  ;;  %v791_v18 = vpop.f32.mrf.mxu0  ;;  %v1561_v4 = vrot.slane %v3795_v55, 6 }
 0x3a0   : > { %v3815_v14 = vadd.f32 %v940_v11, %v3801_v0  ;;  %v3832_v25 = vadd.f32 %v791_v18, %v696_v63 }
 0x3a1   : > { %v978_v16 = vperm.slane %v3808_v10, 0  ;;  %v958_v28 = vrot.slane %v3808_v10, 2  ;;  %v960_v61 = vrot.slane %v3808_v10, 4 }
 0x3a2   : > { %v1602_v19 = vadd.f32 %v3818_v15, %v3815_v14  ;;  %v1608_v21 = vadd.f32 %v3804_v6, %v3815_v14  ;;  %v1605_v23 = vadd.f32 %v3806_v7, %v3815_v14  ;;  %v1617_v27 = vadd.f32 %v3810_v12, %v3815_v14 }
 0x3a3   : > { %v1026_v33 = vadd.f32 %v978_v16, %v3812_v13  ;;  %v1519_v34 = vpack.c.bf16 %v3832_v25, %v3812_v13  ;;  %v1611_v35 = vadd.f32 %v3821_v17, %v3815_v14  ;;  %v980_v45 = vperm.slane %v958_v28, 0 }
 0x3a4   : > { %v1650_v29 = vmul.f32 0.2, %v1602_v19  ;;  %v1656_v30 = vmul.f32 0.2, %v1608_v21  ;;  %v1653_v31 = vmul.f32 0.2, %v1605_v23  ;;  %v1027_v59 = vadd.f32 %v978_v16, %v3832_v25 }
 0x3a5   : > { %1533 = vmatpush.bf16.msrb.mxu0 %v1519_v34  ;;  %v1665_v44 = vmul.f32 0.2, %v1617_v27  ;;  %v1074_v49 = vmul.f32 0.2, %v1026_v33  ;;  %v1659_v50 = vmul.f32 0.2, %v1611_v35  ;;  %v1030_v56 = vadd.f32 %v980_v45, %v3812_v13 }
 0x3a6   : > { %v924_v37 = vpop.f32.mrf.mxu2  ;;  %v1698_v39 = vmax.f32 %v1602_v19, %v1650_v29  ;;  %v1704_v41 = vmax.f32 %v1608_v21, %v1656_v30  ;;  %v1701_v42 = vmax.f32 %v1605_v23, %v1653_v31  ;;  %v1614_v2 = vadd.f32 %v3848_v51, %v3815_v14 }
 0x3a7   : > { %v3843_v9 = vadd.f32 %v924_v37, %v829_v60  ;;  %v942_v43 = vpop.f32.mrf.mxu3  ;;  %v1713_v54 = vmax.f32 %v1617_v27, %v1665_v44  ;;  %v1122_v58 = vmax.f32 %v1026_v33, %v1074_v49  ;;  %v1707_v63 = vmax.f32 %v1611_v35, %v1659_v50 }
 0x3a8   : > { %v1749_v46 = vmul.f32 %v3830_v24, %v1698_v39  ;;  %v1755_v47 = vmul.f32 %v3830_v24, %v1704_v41  ;;  %v1752_v48 = vmul.f32 %v3830_v24, %v1701_v42  ;;  %v1078_v23 = vmul.f32 0.2, %v1030_v56 }
 0x3a9   : > { %v1764_v21 = vmul.f32 %v3830_v24, %v1713_v54  ;;  %v1173_v16 = vmul.f32 %v3852_v57, %v1122_v58  ;;  %v1075_v28 = vmul.f32 0.2, %v1027_v59  ;;  %v3866_v29 = vperm.slane %v960_v61, 0 }
 0x3aa   : > { %1797 = vadd.xlane.f32.xlu2 %v1749_v46  ;;  %1809 = vadd.xlane.f32.xlu0 %v1755_v47  ;;  %v1758_v30 = vmul.f32 %v3830_v24, %v1707_v63  ;;  %v1662_v31 = vmul.f32 0.2, %v1614_v2  ;;  %v3869_v33 = vperm.slane %v1561_v4, 0  ;;  %v3874_v34 = vadd.f32 %v942_v43, %v3801_v0 }
 0x3ab   : > { %1803 = vadd.xlane.f32.xlu1 %v1752_v48  ;;  %v1126_v35 = vmax.f32 %v1030_v56, %v1078_v23  ;;  %v1031_v36 = vadd.f32 %v980_v45, %v3832_v25  ;;  %v961_v37 = vrot.slane %v3808_v10, 5  ;;  %v1123_v41 = vmax.f32 %v1027_v59, %v1075_v28 }
 0x3ac   : > { %v1035_v42 = vadd.f32 %v3866_v29, %v3832_v25  ;;  %v959_v44 = vrot.slane %v3808_v10, 3  ;;  %v1710_v46 = vmax.f32 %v1614_v2, %v1662_v31  ;;  %v957_v43 = vrot.slane %v3808_v10, 1 }
 0x3ad   : > { %v2070_v45 = vpack.c.bf16 %v3874_v34, %v3815_v14  ;;  %v1177_v48 = vmul.f32 %v3852_v57, %v1126_v35  ;;  %v983_v49 = vperm.slane %v961_v37, 0  ;;  %v1174_v54 = vmul.f32 %v3852_v57, %v1123_v41 }
 0x3ae   : > { %v927_v11 = vpop.f32.mrf.mxu2  ;;  %v1083_v56 = vmul.f32 0.2, %v1035_v42  ;;  %v1079_v58 = vmul.f32 0.2, %v1031_v36  ;;  %v981_v59 = vperm.slane %v959_v44, 0  ;;  %v1761_v61 = vmul.f32 %v3830_v24, %v1710_v46 }
 0x3af   : > { %v3859_v18 = vadd.f32 %v927_v11, %v829_v60  ;;  %v945_v19 = vpop.f32.mrf.mxu3  ;;  %v979_v2 = vperm.slane %v957_v43, 0  ;;  %v1036_v4 = vadd.f32 %v983_v49, %v3812_v13  ;;  %v805_v11 = vpop.f32.mrf.mxu1  ;;  %v1037_v44 = vadd.f32 %v983_v49, %v3832_v25 }
 0x3b0   : > { %v3863_v27 = vadd.f32 %v945_v19, %v3801_v0  ;;  %v1620_v0 = vadd.f32 %v3869_v33, %v3815_v14  ;;  %v1131_v19 = vmax.f32 %v1035_v42, %v1083_v56  ;;  %v1032_v23 = vadd.f32 %v981_v59, %v3812_v13 }
 0x3b1   : > { %v3896_v31 = vadd.f32 %v805_v11, %v697_v53  ;;  %v962_v43 = vrot.slane %v3808_v10, 6 }
 0x3b2   : > { %1827 = vadd.xlane.f32.xlu2 %v1764_v21  ;;  %1221 = vadd.xlane.f32.xlu0 %v1173_v16  ;;  %v2071_v60 = vpack.c.bf16 %v3863_v27, %v3863_v27  ;;  %v1668_v63 = vmul.f32 0.2, %v1620_v0  ;;  %v1127_v21 = vmax.f32 %v1031_v36, %v1079_v58  ;;  %v963_v16 = vrot.slane %v3808_v10, 7 }
 0x3b3   : > { %1815 = vadd.xlane.f32.xlu1 %v1758_v30  ;;  %v1028_v30 = vadd.f32 %v979_v2, %v3812_v13  ;;  %v1182_v35 = vmul.f32 %v3852_v57, %v1131_v19  ;;  %v1563_v52 = vrot.slane %v3896_v31, 1  ;;  %v984_v58 = vperm.slane %v962_v43, 0 }
 0x3b4   : > { %v2076_v39 = vsel %vm448_vm5, %v2071_v60, 0  ;;  %v1716_v28 = vmax.f32 %v1620_v0, %v1668_v63  ;;  %v1084_v60 = vmul.f32 0.2, %v1036_v4  ;;  %v1178_v37 = vmul.f32 %v3852_v57, %v1127_v21 }
 0x3b5   : > { %2084 = vmatpush.bf16.msrb.mxu1 %v2076_v39  ;;  %v1080_v39 = vmul.f32 0.2, %v1032_v23  ;;  %v3900_v41 = vperm.slane %v963_v16, 0  ;;  %v1076_v42 = vmul.f32 0.2, %v1028_v30  ;;  %v1038_v11 = vadd.f32 %v984_v58, %v3812_v13 }
 0x3b6   : > { %v929_v47 = vpop.f32.mrf.mxu2  ;;  %v1767_v36 = vmul.f32 %v3830_v24, %v1716_v28  ;;  %v1132_v53 = vmax.f32 %v1036_v4, %v1084_v60  ;;  %v1567_v19 = vrot.slane %v3896_v31, 5 }
 0x3b7   : > { %v947_v50 = vpop.f32.mrf.mxu3  ;;  %v1128_v46 = vmax.f32 %v1032_v23, %v1080_v39  ;;  %v1041_v0 = vadd.f32 %v3900_v41, %v3832_v25  ;;  %v1124_v47 = vmax.f32 %v1028_v30, %v1076_v42  ;;  %v1033_v23 = vadd.f32 %v981_v59, %v3832_v25 }
 0x3b8   : > { %v3909_v50 = vperm.slane %v1563_v52, 0  ;;  %v1086_v60 = vmul.f32 0.2, %v1038_v11 }
 0x3b9   : > { %2085 = vmatpush.bf16.msrb.mxu1 %v2070_v45  ;;  %v1029_v45 = vadd.f32 %v979_v2, %v3832_v25  ;;  %v1179_v56 = vmul.f32 %v3852_v57, %v1128_v46  ;;  %v1089_v49 = vmul.f32 0.2, %v1041_v0  ;;  %v1034_v46 = vadd.f32 %v3866_v29, %v3812_v13 }
 0x3ba   : > { %1229 = vadd.xlane.f32.xlu2 %v1177_v48  ;;  %1223 = vadd.xlane.f32.xlu0 %v1174_v54  ;;  %v1085_v48 = vmul.f32 0.2, %v1037_v44  ;;  %v1183_v54 = vmul.f32 %v3852_v57, %v1132_v53  ;;  %v1629_v10 = vadd.f32 %v3909_v50, %v3815_v14  ;;  %v1606_v29 = vadd.f32 %v3806_v7, %v3874_v34 }
 0x3bb   : > { %1821 = vadd.xlane.f32.xlu1 %v1761_v61  ;;  %v1175_v61 = vmul.f32 %v3852_v57, %v1124_v47  ;;  %v1077_v63 = vmul.f32 0.2, %v1029_v45  ;;  %v1137_v2 = vmax.f32 %v1041_v0, %v1089_v49 }
 0x3bc   : > { %v1133_v4 = vmax.f32 %v1037_v44, %v1085_v48  ;;  %v1677_v28 = vmul.f32 0.2, %v1629_v10  ;;  %v1134_v44 = vmax.f32 %v1038_v11, %v1086_v60 }
 0x3bd   : > { %v1125_v21 = vmax.f32 %v1029_v45, %v1077_v63  ;;  %v1188_v30 = vmul.f32 %v3852_v57, %v1137_v2 }
 0x3be   : > { %v1184_v16 = vmul.f32 %v3852_v57, %v1133_v4  ;;  %v1725_v42 = vmax.f32 %v1629_v10, %v1677_v28  ;;  %v1185_v43 = vmul.f32 %v3852_v57, %v1134_v44  ;;  %v1039_v4 = vadd.f32 %v984_v58, %v3832_v25 }
 0x3bf   : > { %v1176_v39 = vmul.f32 %v3852_v57, %v1125_v21  ;;  %v1564_v10 = vrot.slane %v3896_v31, 2  ;;  %v1654_v21 = vmul.f32 0.2, %v1606_v29  ;;  %v1630_v58 = vadd.f32 %v3909_v50, %v3874_v34 }
 0x3c0   : > { %v1776_v0 = vmul.f32 %v3830_v24, %v1725_v42  ;;  %v1040_v42 = vadd.f32 %v3900_v41, %v3812_v13  ;;  %v1612_v41 = vadd.f32 %v3821_v17, %v3874_v34 }
 0x3c1   : > { %v3945_v28 = vperm.slane %v1564_v10, 0  ;;  %v1702_v60 = vmax.f32 %v1606_v29, %v1654_v21 }
 0x3c2   : > { %1239 = vadd.xlane.f32.xlu2 %v1182_v35  ;;  %1231 = vadd.xlane.f32.xlu0 %v1178_v37  ;;  %v3921_v35 = vperm.slane %v1567_v19, 0  ;;  %v3924_v37 = vperm.slane %v3896_v31, 0 }
 0x3c3   : > { %1833 = vadd.xlane.f32.xlu1 %v1767_v36  ;;  %v1081_v36 = vmul.f32 0.2, %v1033_v23 }
 0x3c4   : > { %v1641_v59 = vadd.f32 %v3921_v35, %v3815_v14  ;;  %v1626_v52 = vadd.f32 %v3924_v37, %v3815_v14 }
 0x3c5   : > { %v1129_v53 = vmax.f32 %v1033_v23, %v1081_v36 }
 0x3c6   : > { %v1689_v47 = vmul.f32 0.2, %v1641_v59  ;;  %v1674_v45 = vmul.f32 0.2, %v1626_v52 }
 0x3c7   : > { %v1180_v48 = vmul.f32 %v3852_v57, %v1129_v53 }
 0x3c8   : > { %v1722_v49 = vmax.f32 %v1626_v52, %v1674_v45  ;;  %v1678_v52 = vmul.f32 0.2, %v1630_v58  ;;  %v1618_v45 = vadd.f32 %v3810_v12, %v3874_v34 }
 0x3ca   : > { %1241 = vadd.xlane.f32.xlu2 %v1183_v54  ;;  %1233 = vadd.xlane.f32.xlu0 %v1179_v56  ;;  %v1082_v54 = vmul.f32 0.2, %v1034_v46  ;;  %v1737_v56 = vmax.f32 %v1641_v59, %v1689_v47  ;;  %v1773_v11 = vmul.f32 %v3830_v24, %v1722_v49  ;;  %v1753_v59 = vmul.f32 %v3830_v24, %v1702_v60 }
 0x3cb   : > { %1225 = vadd.xlane.f32.xlu1 %v1175_v61  ;;  %v1603_v61 = vadd.f32 %v3818_v15, %v3874_v34  ;;  %v1666_v29 = vmul.f32 0.2, %v1618_v45 }
 0x3cc   : > { %v1130_v63 = vmax.f32 %v1034_v46, %v1082_v54  ;;  %v1788_v2 = vmul.f32 %v3830_v24, %v1737_v56  ;;  %v1632_v54 = vadd.f32 %v3945_v28, %v3815_v14  ;;  %v1565_v56 = vrot.slane %v3896_v31, 3 }
 0x3cd   : > { %v1651_v19 = vmul.f32 0.2, %v1603_v61 }
 0x3ce   : > { %v1181_v23 = vmul.f32 %v3852_v57, %v1130_v63  ;;  %v1660_v63 = vmul.f32 0.2, %v1612_v41  ;;  %v1680_v10 = vmul.f32 0.2, %v1632_v54 }
 0x3d0   : > { %v1708_v21 = vmax.f32 %v1612_v41, %v1660_v63  ;;  %v966_v41 = vrot.slane %v3843_v9, 3 }
 0x3d2   : > { %1251 = vadd.xlane.f32.xlu2 %v1188_v30  ;;  %1243 = vadd.xlane.f32.xlu0 %v1184_v16  ;;  %v1087_v16 = vmul.f32 0.2, %v1039_v4  ;;  %v1699_v30 = vmax.f32 %v1603_v61, %v1651_v19  ;;  %v1714_v19 = vmax.f32 %v1618_v45, %v1666_v29 }
 0x3d3   : > { %1227 = vadd.xlane.f32.xlu1 %v1176_v39  ;;  %v1633_v39 = vadd.f32 %v3945_v28, %v3874_v34 }
 0x3d4   : > { %v1135_v36 = vmax.f32 %v1039_v4, %v1087_v16  ;;  %v1750_v44 = vmul.f32 %v3830_v24, %v1699_v30  ;;  %v964_v16 = vrot.slane %v3843_v9, 1  ;;  %v1728_v30 = vmax.f32 %v1632_v54, %v1680_v10 }
 0x3d5   : > { %v1681_v53 = vmul.f32 0.2, %v1633_v39 }
 0x3d6   : > { %v1186_v46 = vmul.f32 %v3852_v57, %v1135_v36  ;;  %v1765_v36 = vmul.f32 %v3830_v24, %v1714_v19 }
 0x3d7   : > { %v1729_v47 = vmax.f32 %v1633_v39, %v1681_v53 }
 0x3d9   : > { %v1780_v61 = vmul.f32 %v3830_v24, %v1729_v47 }
 0x3da   : > { %1851 = vadd.xlane.f32.xlu2 %v1776_v0  ;;  %1245 = vadd.xlane.f32.xlu0 %v1185_v43  ;;  %v1088_v0 = vmul.f32 0.2, %v1040_v42  ;;  %v1726_v43 = vmax.f32 %v1630_v58, %v1678_v52  ;;  %v1566_v58 = vrot.slane %v3896_v31, 4  ;;  %v1779_v52 = vmul.f32 %v3830_v24, %v1728_v30 }
 0x3db   : > { %1235 = vadd.xlane.f32.xlu1 %v1180_v48 }
 0x3dc   : > { %v1136_v48 = vmax.f32 %v1040_v42, %v1088_v0  ;;  %v1777_v49 = vmul.f32 %v3830_v24, %v1726_v43  ;;  %v1759_v42 = vmul.f32 %v3830_v24, %v1708_v21  ;;  %v1615_v0 = vadd.f32 %v3848_v51, %v3874_v34 }
 0x3dd   : > { %v967_v21 = vrot.slane %v3843_v9, 4 }
 0x3de   : > { %v1187_v4 = vmul.f32 %v3852_v57, %v1136_v48 }
 0x3e2   : > { %1875 = vadd.xlane.f32.xlu2 %v1788_v2  ;;  %1845 = vadd.xlane.f32.xlu0 %v1773_v11  ;;  %v3966_v2 = vperm.slane %v1565_v56, 0  ;;  %v1642_v11 = vadd.f32 %v3921_v35, %v3874_v34  ;;  %v1568_v56 = vrot.slane %v3896_v31, 6 }
 0x3e3   : > { %1237 = vadd.xlane.f32.xlu1 %v1181_v23 }
 0x3e4   : > { %v1636_v23 = vadd.f32 %v3966_v2, %v3874_v34  ;;  %v1635_v60 = vadd.f32 %v3966_v2, %v3815_v14  ;;  %v1690_v39 = vmul.f32 0.2, %v1642_v11  ;;  %v3996_v19 = vperm.slane %v1568_v56, 0 }
 0x3e6   : > { %v1683_v53 = vmul.f32 0.2, %v1635_v60  ;;  %v1738_v43 = vmax.f32 %v1642_v11, %v1690_v39  ;;  %v1644_v39 = vadd.f32 %v3996_v19, %v3815_v14 }
 0x3e8   : > { %v1731_v48 = vmax.f32 %v1635_v60, %v1683_v53 }
 0x3ea   : > { %1799 = vadd.xlane.f32.xlu0 %v1750_v44  ;;  %1805 = vadd.xlane.f32.xlu2 %v1753_v59  ;;  %v1684_v44 = vmul.f32 0.2, %v1636_v23  ;;  %v3978_v59 = vperm.slane %v964_v16, 0  ;;  %v1782_v10 = vmul.f32 %v3830_v24, %v1731_v48 }
 0x3eb   : > { %1247 = vadd.xlane.f32.xlu1 %v1186_v46  ;;  %v3981_v46 = vperm.slane %v1566_v58, 0 }
 0x3ec   : > { %v1732_v47 = vmax.f32 %v1636_v23, %v1684_v44  ;;  %v1044_v45 = vadd.f32 %v3978_v59, %v3812_v13 }
 0x3ed   : > { %v1638_v54 = vadd.f32 %v3981_v46, %v3815_v14  ;;  %v1639_v60 = vadd.f32 %v3981_v46, %v3874_v34 }
 0x3ee   : > { %v1783_v29 = vmul.f32 %v3830_v24, %v1732_v47  ;;  %v1092_v63 = vmul.f32 0.2, %v1044_v45 }
 0x3ef   : > { %v1686_v11 = vmul.f32 0.2, %v1638_v54  ;;  %v1687_v53 = vmul.f32 0.2, %v1639_v60 }
 0x3f0   : > { %v1140_v23 = vmax.f32 %v1044_v45, %v1092_v63  ;;  %v1621_v45 = vadd.f32 %v3869_v33, %v3874_v34 }
 0x3f1   : > { %v1734_v58 = vmax.f32 %v1638_v54, %v1686_v11  ;;  %v1735_v48 = vmax.f32 %v1639_v60, %v1687_v53  ;;  %v969_v54 = vrot.slane %v3843_v9, 6 }
 0x3f2   : > { %1853 = vadd.xlane.f32.xlu0 %v1777_v49  ;;  %1859 = vadd.xlane.f32.xlu2 %v1780_v61  ;;  %v1663_v49 = vmul.f32 0.2, %v1615_v0  ;;  %v1789_v61 = vmul.f32 %v3830_v24, %v1738_v43  ;;  %v1692_v43 = vmul.f32 0.2, %v1644_v39 }
 0x3f3   : > { %1249 = vadd.xlane.f32.xlu1 %v1187_v4  ;;  %v3993_v4 = vperm.slane %v966_v41, 0  ;;  %v4019_v11 = vperm.slane %v969_v54, 0 }
 0x3f4   : > { %v1711_v16 = vmax.f32 %v1615_v0, %v1663_v49  ;;  %v1785_v0 = vmul.f32 %v3830_v24, %v1734_v58  ;;  %v1740_v56 = vmax.f32 %v1644_v39, %v1692_v43  ;;  %v1627_v49 = vadd.f32 %v3924_v37, %v3874_v34 }
 0x3f5   : > { %v1049_v30 = vadd.f32 %v3993_v4, %v3832_v25  ;;  %v1055_v60 = vadd.f32 %v4019_v11, %v3832_v25  ;;  %v1645_v58 = vadd.f32 %v3996_v19, %v3874_v34  ;;  %v970_v39 = vrot.slane %v3843_v9, 7 }
 0x3f6   : > { %v1762_v44 = vmul.f32 %v3830_v24, %v1711_v16 }
 0x3f7   : > { %v1693_v43 = vmul.f32 0.2, %v1645_v58 }
 0x3fa   : > { %1829 = vadd.xlane.f32.xlu0 %v1765_v36  ;;  %1817 = vadd.xlane.f32.xlu2 %v1759_v42  ;;  %v4005_v36 = vperm.slane %v967_v21, 0  ;;  %v1191_v42 = vmul.f32 %v3852_v57, %v1140_v23  ;;  %v1791_v21 = vmul.f32 %v3830_v24, %v1740_v56  ;;  %v1675_v23 = vmul.f32 0.2, %v1627_v49 }
 0x3fb   : > { %1857 = vadd.xlane.f32.xlu1 %v1779_v52  ;;  %v1097_v52 = vmul.f32 0.2, %v1049_v30  ;;  %v1741_v56 = vmax.f32 %v1645_v58, %v1693_v43 }
 0x3fc   : > { %v1050_v47 = vadd.f32 %v4005_v36, %v3812_v13 }
 0x3fd   : > { %v1145_v41 = vmax.f32 %v1049_v30, %v1097_v52 }
 0x3ff   : > { %v1196_v63 = vmul.f32 %v3852_v57, %v1145_v41 }
 0x402   : > { %1877 = vadd.xlane.f32.xlu0 %v1789_v61  ;;  %1865 = vadd.xlane.f32.xlu2 %v1783_v29  ;;  %v1098_v61 = vmul.f32 0.2, %v1050_v47  ;;  %v1669_v29 = vmul.f32 0.2, %v1621_v45 }
 0x403   : > { %1863 = vadd.xlane.f32.xlu1 %v1782_v10  ;;  %v1786_v10 = vmul.f32 %v3830_v24, %v1735_v48 }
 0x404   : > { %v1146_v16 = vmax.f32 %v1050_v47, %v1098_v61  ;;  %v1717_v30 = vmax.f32 %v1621_v45, %v1669_v29  ;;  %v4031_v47 = vperm.slane %v970_v39, 0  ;;  %v986_v45 = vperm.slane %v3843_v9, 0 }
 0x406   : > { %v1197_v52 = vmul.f32 %v3852_v57, %v1146_v16  ;;  %v1768_v53 = vmul.f32 %v3830_v24, %v1717_v30  ;;  %v1042_v61 = vadd.f32 %v986_v45, %v3812_v13 }
 0x408   : > { %v1090_v39 = vmul.f32 0.2, %v1042_v61 }
 0x40a   : > { %1257 = vadd.xlane.f32.xlu0 %v1191_v42  ;;  %1823 = vadd.xlane.f32.xlu2 %v1762_v44  ;;  %v1723_v42 = vmax.f32 %v1627_v49, %v1675_v23  ;;  %v1609_v44 = vadd.f32 %v3804_v6, %v3874_v34  ;;  %v1056_v49 = vadd.f32 %v4031_v47, %v3812_v13  ;;  %v965_v23 = vrot.slane %v3843_v9, 2 }
 0x40b   : > { %1869 = vadd.xlane.f32.xlu1 %v1785_v0  ;;  %v1103_v0 = vmul.f32 0.2, %v1055_v60  ;;  %v1138_v43 = vmax.f32 %v1042_v61, %v1090_v39  ;;  %v1610_v39 = vadd.f32 %v3804_v6, %v3863_v27 }
 0x40c   : > { %v1774_v41 = vmul.f32 %v3830_v24, %v1723_v42  ;;  %v1657_v48 = vmul.f32 0.2, %v1609_v44  ;;  %v1104_v58 = vmul.f32 0.2, %v1056_v49 }
 0x40d   : > { %v1151_v54 = vmax.f32 %v1055_v60, %v1103_v0  ;;  %v1792_v60 = vmul.f32 %v3830_v24, %v1741_v56 }
 0x40e   : > { %v1152_v0 = vmax.f32 %v1056_v49, %v1104_v58 }
 0x40f   : > { %v1202_v30 = vmul.f32 %v3852_v57, %v1151_v54 }
 0x412   : > { %1267 = vadd.xlane.f32.xlu0 %v1196_v63  ;;  %1871 = vadd.xlane.f32.xlu2 %v1786_v10  ;;  %v1705_v10 = vmax.f32 %v1609_v44, %v1657_v48  ;;  %v1368_v44 = vlaneseq }
 0x413   : > { %1881 = vadd.xlane.f32.xlu1 %v1791_v21  ;;  %v1045_v21 = vadd.f32 %v3978_v59, %v3832_v25  ;;  %v1631_v59 = vadd.f32 %v3909_v50, %v3863_v27  ;;  %v1189_v50 = vmul.f32 %v3852_v57, %v1138_v43 }
 0x414   : > { %v1756_v42 = vmul.f32 %v3830_v24, %v1705_v10 }
 0x41a   : > { %1269 = vadd.xlane.f32.xlu0 %v1197_v52  ;;  %1835 = vadd.xlane.f32.xlu2 %v1768_v53  ;;  %v1093_v52 = vmul.f32 0.2, %v1045_v21  ;;  %v988_v53 = vperm.slane %v965_v23, 0  ;;  %v1679_v23 = vmul.f32 0.2, %v1631_v59 }
 0x41b   : > { %1847 = vadd.xlane.f32.xlu1 %v1774_v41  ;;  %v1043_v41 = vadd.f32 %v986_v45, %v3832_v25 }
 0x41c   : > { %v1141_v56 = vmax.f32 %v1045_v21, %v1093_v52  ;;  %v1046_v20 = vadd.f32 %v988_v53, %v3812_v13  ;;  %v1727_v21 = vmax.f32 %v1631_v59, %v1679_v23  ;;  %v1047_v52 = vadd.f32 %v988_v53, %v3832_v25 }
 0x41d   : > { %v4038_v29 = vpop.xlane.xlu2 %1797  ;;  %v4040_v63 = vpop.xlane.xlu0 %1809  ;;  %v1658_v23 = vmul.f32 0.2, %v1610_v39 }
 0x41e   : > { %v4045_v16 = vpop.xlane.xlu1 %1803  ;;  %v1192_v49 = vmul.f32 %v3852_v57, %v1141_v56  ;;  %v1094_v61 = vmul.f32 0.2, %v1046_v20  ;;  %v1051_v56 = vadd.f32 %v4005_v36, %v3832_v25 }
 0x420   : > { %v1142_v43 = vmax.f32 %v1046_v20, %v1094_v61  ;;  %v1095_v20 = vmul.f32 0.2, %v1047_v52  ;;  %v1099_v36 = vmul.f32 0.2, %v1051_v56 }
 0x422   : > { %1279 = vadd.xlane.f32.xlu0 %v1202_v30  ;;  %1883 = vadd.xlane.f32.xlu2 %v1792_v60  ;;  %v4058_v30 = vand.u32 127, %v1368_v44  ;;  %v1203_v60 = vmul.f32 %v3852_v57, %v1152_v0 }
 0x423   : > { %1811 = vadd.xlane.f32.xlu1 %v1756_v42  ;;  %v1091_v42 = vmul.f32 0.2, %v1043_v41 }
 0x424   : > { %v4064_v45 = vadd.s32 4294967288, %v4058_v30 }
 0x425   : > { %v4053_v48 = vpop.xlane.xlu2 %1827  ;;  %v1222_v54 = vpop.xlane.xlu0 %1221  ;;  %v1139_v58 = vmax.f32 %v1043_v41, %v1091_v42  ;;  %v1778_v41 = vmul.f32 %v3830_v24, %v1727_v21  ;;  %v1193_v42 = vmul.f32 %v3852_v57, %v1142_v43  ;;  %v1048_v21 = vadd.f32 %v3993_v4, %v3812_v13 }
 0x426   : > { %v4056_v10 = vpop.xlane.xlu1 %1815 }
 0x427   : > { %v1190_v53 = vmul.f32 %v3852_v57, %v1139_v58  ;;  %v1096_v4 = vmul.f32 0.2, %v1048_v21 }
 0x42a   : > { %1281 = vadd.xlane.f32.xlu0 %v1203_v60  ;;  %1253 = vadd.xlane.f32.xlu2 %v1189_v50  ;;  %v968_v60 = vrot.slane %v3843_v9, 5  ;;  %v1370_v50 = vperm.slane %v1222_v54, %v4058_v30  ;;  %v1634_v9 = vadd.f32 %v3945_v28, %v3863_v27  ;;  %v1706_v54 = vmax.f32 %v1610_v39, %v1658_v23 }
 0x42b   : > { %1259 = vadd.xlane.f32.xlu1 %v1192_v49 }
 0x42c   : > { %v991_v61 = vperm.slane %v968_v60, 0  ;;  %v1757_v39 = vmul.f32 %v3830_v24, %v1706_v54  ;;  %v1057_v54 = vadd.f32 %v4031_v47, %v3832_v25  ;;  %v1054_v47 = vadd.f32 %v4019_v11, %v3812_v13 }
 0x42d   : > { %v1230_v44 = vpop.xlane.xlu2 %1229  ;;  %v1224_v0 = vpop.xlane.xlu0 %1223 }
 0x42e   : > { %v1372_v49 = vperm.slane %v1224_v0, %v4064_v45  ;;  %v4074_v59 = vpop.xlane.xlu1 %1821  ;;  %v1143_v0 = vmax.f32 %v1047_v52, %v1095_v20  ;;  %v1052_v26 = vadd.f32 %v991_v61, %v3812_v13  ;;  %v1378_v43 = vperm.slane %v1230_v44, %v4058_v30 }
 0x42f   : > { %v1613_v44 = vadd.f32 %v3821_v17, %v3863_v27 }
 0x430   : > { %v4078_v6 = vsel %vm1373_vm10, %v1372_v49, %v1370_v50  ;;  %v1147_v49 = vmax.f32 %v1051_v56, %v1099_v36  ;;  %v1194_v52 = vmul.f32 %v3852_v57, %v1143_v0  ;;  %v1100_v20 = vmul.f32 0.2, %v1052_v26 }
 0x431   : > { %v1053_v36 = vadd.f32 %v991_v61, %v3832_v25  ;;  %v1661_v62 = vmul.f32 0.2, %v1613_v44 }
 0x432   : > { %1855 = vadd.xlane.f32.xlu0 %v1778_v41  ;;  %1255 = vadd.xlane.f32.xlu2 %v1190_v53  ;;  %v1682_v53 = vmul.f32 0.2, %v1634_v9  ;;  %v1198_v23 = vmul.f32 %v3852_v57, %v1147_v49 }
 0x433   : > { %1261 = vadd.xlane.f32.xlu1 %v1193_v42  ;;  %v1144_v42 = vmax.f32 %v1048_v21, %v1096_v4 }
 0x434   : > { %v1730_v56 = vmax.f32 %v1634_v9, %v1682_v53  ;;  %v1709_v9 = vmax.f32 %v1613_v44, %v1661_v62 }
 0x435   : > { %v4086_v50 = vpop.xlane.xlu2 %1239  ;;  %v1232_v58 = vpop.xlane.xlu0 %1231 }
 0x436   : > { %v1379_v60 = vperm.slane %v1232_v58, %v4064_v45  ;;  %v4091_v41 = vpop.xlane.xlu1 %1833  ;;  %v1781_v49 = vmul.f32 %v3830_v24, %v1730_v56  ;;  %v1760_v44 = vmul.f32 %v3830_v24, %v1709_v9  ;;  %v1619_v9 = vadd.f32 %v3810_v12, %v3863_v27 }
 0x438   : > { %v1380_v28 = vsel %vm1373_vm10, %v1379_v60, %v1378_v43  ;;  %v1148_v60 = vmax.f32 %v1052_v26, %v1100_v20  ;;  %v1637_v26 = vadd.f32 %v3966_v2, %v3863_v27  ;;  %v1604_v20 = vadd.f32 %v3818_v15, %v3863_v27 }
 0x439   : > { %v1102_v15 = vmul.f32 0.2, %v1054_v47 }
 0x43a   : > { %1813 = vadd.xlane.f32.xlu0 %v1757_v39  ;;  %1263 = vadd.xlane.f32.xlu2 %v1194_v52  ;;  %v1195_v39 = vmul.f32 %v3852_v57, %v1144_v42  ;;  %v1101_v52 = vmul.f32 0.2, %v1053_v36  ;;  %v1199_v17 = vmul.f32 %v3852_v57, %v1148_v60  ;;  %v1685_v11 = vmul.f32 0.2, %v1637_v26 }
 0x43b   : > { %1271 = vadd.xlane.f32.xlu1 %v1198_v23  ;;  %v1105_v23 = vmul.f32 0.2, %v1057_v54 }
 0x43c   : > { %v1149_v61 = vmax.f32 %v1053_v36, %v1101_v52 }
 0x43d   : > { %v1242_v58 = vpop.xlane.xlu2 %1241  ;;  %v1234_v43 = vpop.xlane.xlu0 %1233  ;;  %v1153_v4 = vmax.f32 %v1057_v54, %v1105_v23  ;;  %v1150_v23 = vmax.f32 %v1054_v47, %v1102_v15  ;;  %v1667_v47 = vmul.f32 0.2, %v1619_v9  ;;  %v971_v15 = vrot.slane %v3859_v18, 1 }
 0x43e   : > { %v1226_v0 = vpop.xlane.xlu1 %1225  ;;  %v1387_v56 = vperm.slane %v1242_v58, %v4058_v30  ;;  %v1200_v54 = vmul.f32 %v3852_v57, %v1149_v61  ;;  %v1607_v61 = vadd.f32 %v3806_v7, %v3863_v27 }
 0x43f   : > { %v1375_v2 = vperm.slane %v1226_v0, %v4058_v30  ;;  %v1201_v12 = vmul.f32 %v3852_v57, %v1150_v23 }
 0x440   : > { %v1655_v7 = vmul.f32 0.2, %v1607_v61 }
 0x442   : > { %1861 = vadd.xlane.f32.xlu0 %v1781_v49  ;;  %1265 = vadd.xlane.f32.xlu2 %v1195_v39  ;;  %v1204_v49 = vmul.f32 %v3852_v57, %v1153_v4  ;;  %v1652_v39 = vmul.f32 0.2, %v1604_v20 }
 0x443   : > { %1273 = vadd.xlane.f32.xlu1 %v1199_v17  ;;  %v1733_v17 = vmax.f32 %v1637_v26, %v1685_v11  ;;  %v1703_v11 = vmax.f32 %v1607_v61, %v1655_v7 }
 0x445   : > { %v4109_v21 = vpop.xlane.xlu2 %1251  ;;  %v1244_v53 = vpop.xlane.xlu0 %1243  ;;  %v1784_v26 = vmul.f32 %v3830_v24, %v1733_v17  ;;  %v1754_v61 = vmul.f32 %v3830_v24, %v1703_v11 }
 0x446   : > { %v1388_v42 = vperm.slane %v1244_v53, %v4064_v45  ;;  %v1228_v62 = vpop.xlane.xlu1 %1227 }
 0x447   : > { %v1376_v36 = vperm.slane %v1228_v62, %v4064_v45  ;;  %v1381_v62 = vperm.slane %v1234_v43, %v4058_v30  ;;  %v1715_v43 = vmax.f32 %v1619_v9, %v1667_v47 }
 0x448   : > { %v4119_v60 = vsel %vm1373_vm10, %v1388_v42, %v1387_v56  ;;  %v1700_v56 = vmax.f32 %v1604_v20, %v1652_v39 }
 0x449   : > { %v1377_v58 = vsel %vm1373_vm10, %v1376_v36, %v1375_v2  ;;  %v1766_v9 = vmul.f32 %v3830_v24, %v1715_v43 }
 0x44a   : > { %v1445_v52 = vsel %vm1444_vm11, %v1377_v58, %v4078_v6  ;;  %1819 = vadd.xlane.f32.xlu0 %v1760_v44  ;;  %1275 = vadd.xlane.f32.xlu2 %v1200_v54  ;;  %v1616_v6 = vadd.f32 %v3848_v51, %v3863_v27  ;;  %v1751_v2 = vmul.f32 %v3830_v24, %v1700_v56 }
 0x44b   : > { %1283 = vadd.xlane.f32.xlu1 %v1204_v49  ;;  %v1447_v0 = vsel %vm1446_vm12, %v1380_v28, %v1445_v52  ;;  %v1643_v51 = vadd.f32 %v3921_v35, %v3863_v27  ;;  %v1628_v54 = vadd.f32 %v3924_v37, %v3863_v27  ;;  %v1640_v52 = vadd.f32 %v3981_v46, %v3863_v27 }
 0x44c   : > { %v1664_v20 = vmul.f32 0.2, %v1616_v6  ;;  %v1385_v35 = vperm.slane %v4086_v50, %v4064_v45 }
 0x44d   : > { %v4131_v53 = vpop.xlane.xlu2 %1851  ;;  %v4133_v4 = vpop.xlane.xlu0 %1245  ;;  %v1691_v37 = vmul.f32 0.2, %v1643_v51  ;;  %v1676_v56 = vmul.f32 0.2, %v1628_v54 }
 0x44e   : > { %v1236_v42 = vpop.xlane.xlu1 %1235  ;;  %v1712_v39 = vmax.f32 %v1616_v6, %v1664_v20 }
 0x44f   : > { %v1382_v28 = vperm.slane %v1236_v42, %v4064_v45  ;;  %v995_v42 = vperm.slane %v971_v15, 0  ;;  %v1739_v50 = vmax.f32 %v1643_v51, %v1691_v37  ;;  %v1724_v47 = vmax.f32 %v1628_v54, %v1676_v56 }
 0x450   : > { %v1763_v46 = vmul.f32 %v3830_v24, %v1712_v39  ;;  %v1943_v15 = vperm.slane %v4038_v29, %v4058_v30  ;;  %v1390_v54 = vperm.slane %v4133_v4, %v4058_v30 }
 0x451   : > { %v1383_v44 = vsel %vm1373_vm10, %v1382_v28, %v1381_v62  ;;  %v1688_v62 = vmul.f32 0.2, %v1640_v52  ;;  %v1060_v7 = vadd.f32 %v995_v42, %v3812_v13  ;;  %v1061_v56 = vadd.f32 %v995_v42, %v3832_v25 }
 0x452   : > { %v1449_v36 = vsel %vm1448_vm13, %v1383_v44, %v1447_v0  ;;  %1867 = vadd.xlane.f32.xlu0 %v1784_v26  ;;  %1277 = vadd.xlane.f32.xlu2 %v1201_v12  ;;  %v994_v0 = vperm.slane %v3859_v18, 0  ;;  %v972_v12 = vrot.slane %v3859_v18, 2 }
 0x453   : > { %1801 = vadd.xlane.f32.xlu1 %v1751_v2  ;;  %v1736_v20 = vmax.f32 %v1640_v52, %v1688_v62  ;;  %v1790_v52 = vmul.f32 %v3830_v24, %v1739_v50  ;;  %v1108_v37 = vmul.f32 0.2, %v1060_v7  ;;  %v973_v50 = vrot.slane %v3859_v18, 3 }
 0x454   : > { %v1058_v28 = vadd.f32 %v994_v0, %v3812_v13  ;;  %v1059_v11 = vadd.f32 %v994_v0, %v3832_v25 }
 0x455   : > { %v4149_v58 = vpop.xlane.xlu2 %1875  ;;  %v4151_v49 = vpop.xlane.xlu0 %1845  ;;  %v1156_v62 = vmax.f32 %v1060_v7, %v1108_v37 }
 0x456   : > { %v1238_v17 = vpop.xlane.xlu1 %1237  ;;  %v1106_v43 = vmul.f32 0.2, %v1058_v28  ;;  %v1107_v4 = vmul.f32 0.2, %v1059_v11 }
 0x457   : > { %v1384_v23 = vperm.slane %v1238_v17, %v4058_v30  ;;  %v1207_v7 = vmul.f32 %v3852_v57, %v1156_v62 }
 0x459   : > { %v1386_v6 = vsel %vm1373_vm10, %v1385_v35, %v1384_v23  ;;  %v996_v23 = vperm.slane %v972_v12, 0 }
 0x45a   : > { %v4165_v26 = vsel %vm1450_vm14, %v1386_v6, %v1449_v36  ;;  %1831 = vadd.xlane.f32.xlu0 %v1766_v9  ;;  %1807 = vadd.xlane.f32.xlu2 %v1754_v61  ;;  %v1950_v36 = vperm.slane %v4045_v16, %v4058_v30  ;;  %v1775_v16 = vmul.f32 %v3830_v24, %v1724_v47 }
 0x45b   : > { %1825 = vadd.xlane.f32.xlu1 %v1763_v46  ;;  %v1787_v61 = vmul.f32 %v3830_v24, %v1736_v20  ;;  %v1063_v6 = vadd.f32 %v996_v23, %v3832_v25  ;;  %v1154_v46 = vmax.f32 %v1058_v28, %v1106_v43  ;;  %v1990_v24 = vperm.slane %v4131_v53, %v4058_v30 }
 0x45c   : > { %v997_v43 = vperm.slane %v973_v50, 0 }
 0x45d   : > { %v1800_v44 = vpop.xlane.xlu0 %1799  ;;  %v1806_v2 = vpop.xlane.xlu2 %1805  ;;  %v1205_v28 = vmul.f32 %v3852_v57, %v1154_v46 }
 0x45e   : > { %v1944_v39 = vperm.slane %v1800_v44, %v4064_v45  ;;  %v1951_v51 = vperm.slane %v1806_v2, %v4064_v45  ;;  %v1248_v17 = vpop.xlane.xlu1 %1247  ;;  %v1155_v44 = vmax.f32 %v1059_v11, %v1107_v4  ;;  %v1109_v2 = vmul.f32 0.2, %v1061_v56 }
 0x45f   : > { %v1391_v35 = vperm.slane %v1248_v17, %v4064_v45  ;;  %v1065_v4 = vadd.f32 %v997_v43, %v3832_v25 }
 0x460   : > { %v4181_v0 = vsel %vm1373_vm10, %v1944_v39, %v1943_v15  ;;  %v4184_v29 = vsel %vm1373_vm10, %v1951_v51, %v1950_v36  ;;  %v1062_v15 = vadd.f32 %v996_v23, %v3812_v13  ;;  %v1111_v36 = vmul.f32 0.2, %v1063_v6 }
 0x461   : > { %v4188_v9 = vsel %vm1373_vm10, %v1391_v35, %v1390_v54  ;;  %v1206_v11 = vmul.f32 %v3852_v57, %v1155_v44  ;;  %v1157_v51 = vmax.f32 %v1061_v56, %v1109_v2  ;;  %v1622_v54 = vadd.f32 %v3869_v33, %v3863_v27 }
 0x462   : > { %1879 = vadd.xlane.f32.xlu0 %v1790_v52  ;;  %1849 = vadd.xlane.f32.xlu2 %v1775_v16  ;;  %v1110_v17 = vmul.f32 0.2, %v1062_v15  ;;  %v1159_v53 = vmax.f32 %v1063_v6, %v1111_v36  ;;  %v1064_v35 = vadd.f32 %v997_v43, %v3812_v13  ;;  %v1562_v52 = vrot.slane %v3795_v55, 7 }
 0x463   : > { %1873 = vadd.xlane.f32.xlu1 %v1787_v61  ;;  %v1208_v37 = vmul.f32 %v3852_v57, %v1157_v51  ;;  %v1970_v56 = vperm.slane %v4053_v48, %v4058_v30  ;;  %v1960_v6 = vperm.slane %v4056_v10, %v4058_v30  ;;  %v1670_v44 = vmul.f32 0.2, %v1622_v54 }
 0x464   : > { %v1158_v61 = vmax.f32 %v1062_v15, %v1110_v17  ;;  %v1112_v15 = vmul.f32 0.2, %v1064_v35  ;;  %v1577_v10 = vperm.slane %v1562_v52, 0  ;;  %v1113_v36 = vmul.f32 0.2, %v1065_v4 }
 0x465   : > { %v1854_v12 = vpop.xlane.xlu0 %1853  ;;  %v1860_v47 = vpop.xlane.xlu2 %1859  ;;  %v974_v51 = vrot.slane %v3859_v18, 4 }
 0x466   : > { %v1991_v42 = vperm.slane %v1854_v12, %v4064_v45  ;;  %v4198_v20 = vpop.xlane.xlu1 %1249  ;;  %v1996_v55 = vperm.slane %v1860_v47, %v4064_v45  ;;  %v1210_v12 = vmul.f32 %v3852_v57, %v1159_v53  ;;  %v1718_v57 = vmax.f32 %v1622_v54, %v1670_v44 }
 0x467   : > { %v1160_v43 = vmax.f32 %v1064_v35, %v1112_v15  ;;  %v1161_v52 = vmax.f32 %v1065_v4, %v1113_v36  ;;  %v4246_v35 = vld [vmem:[%s3707_s22] ss:$0 sm:$0xff] }
 0x468   : > { %v4201_v39 = vsel %vm1373_vm10, %v1991_v42, %v1990_v24  ;;  %v4231_v42 = vld [vmem:[%s3701_s4] ss:$0 sm:$0xff] }
 0x469   : > { %v1209_v47 = vmul.f32 %v4231_v42, %v1158_v61  ;;  %v1769_v61 = vmul.f32 %v4246_v35, %v1718_v57 }
 0x46a   : > { %1285 = vadd.xlane.f32.xlu0 %v1205_v28  ;;  %1289 = vadd.xlane.f32.xlu2 %v1207_v7  ;;  %v1646_v28 = vadd.f32 %v3996_v19, %v3863_v27  ;;  %v1569_v7 = vrot.slane %v3896_v31, 7 }
 0x46b   : > { %1287 = vadd.xlane.f32.xlu1 %v1206_v11  ;;  %v1623_v11 = vadd.f32 %v1577_v10, %v3815_v14 }
 0x46d   : > { %v1830_v23 = vpop.xlane.xlu0 %1829  ;;  %v1818_v16 = vpop.xlane.xlu2 %1817 }
 0x46e   : > { %v1971_v33 = vperm.slane %v1830_v23, %v4064_v45  ;;  %v1961_v46 = vperm.slane %v1818_v16, %v4064_v45  ;;  %v1858_v62 = vpop.xlane.xlu1 %1857  ;;  %v1624_v23 = vadd.f32 %v1577_v10, %v3874_v34  ;;  %v2010_v16 = vperm.slane %v4149_v58, %v4058_v30 }
 0x46f   : > { %v1995_v50 = vperm.slane %v1858_v62, %v4058_v30  ;;  %v998_v58 = vperm.slane %v974_v51, 0  ;;  %v1965_v51 = vperm.slane %v4074_v59, %v4058_v30 }
 0x470   : > { %v4222_v2 = vsel %vm1373_vm10, %v1971_v33, %v1970_v56  ;;  %v4225_v48 = vsel %vm1373_vm10, %v1961_v46, %v1960_v6  ;;  %v1694_v56 = vmul.f32 0.2, %v1646_v28  ;;  %v1585_v6 = vperm.slane %v1569_v7, 0 }
 0x471   : > { %v4228_v24 = vsel %vm1373_vm10, %v1996_v55, %v1995_v50  ;;  %v1211_v33 = vmul.f32 %v4231_v42, %v1160_v43  ;;  %v1671_v46 = vmul.f32 0.2, %v1623_v11  ;;  %v1212_v55 = vmul.f32 %v4231_v42, %v1161_v52 }
 0x472   : > { %1291 = vadd.xlane.f32.xlu0 %v1208_v37  ;;  %1295 = vadd.xlane.f32.xlu2 %v1210_v12  ;;  %v1672_v50 = vmul.f32 0.2, %v1624_v23  ;;  %v1647_v12 = vadd.f32 %v1585_v6, %v3815_v14  ;;  %v1742_v15 = vmax.f32 %v1646_v28, %v1694_v56  ;;  %v1648_v43 = vadd.f32 %v1585_v6, %v3874_v34 }
 0x473   : > { %1293 = vadd.xlane.f32.xlu1 %v1209_v47  ;;  %v1719_v44 = vmax.f32 %v1623_v11, %v1671_v46  ;;  %v1066_v47 = vadd.f32 %v998_v58, %v3812_v13  ;;  %v1067_v34 = vadd.f32 %v998_v58, %v3832_v25  ;;  %v976_v56 = vrot.slane %v3859_v18, 6 }
 0x474   : > { %v1720_v7 = vmax.f32 %v1624_v23, %v1672_v50  ;;  %v1695_v52 = vmul.f32 0.2, %v1647_v12  ;;  %v1793_v28 = vmul.f32 %v4246_v35, %v1742_v15  ;;  %v1696_v23 = vmul.f32 0.2, %v1648_v43 }
 0x475   : > { %v1878_v17 = vpop.xlane.xlu0 %1877  ;;  %v1866_v53 = vpop.xlane.xlu2 %1865  ;;  %v1770_v14 = vmul.f32 %v4246_v35, %v1719_v44  ;;  %v1114_v11 = vmul.f32 0.2, %v1066_v47 }
 0x476   : > { %v2011_v54 = vperm.slane %v1878_v17, %v4064_v45  ;;  %v2001_v37 = vperm.slane %v1866_v53, %v4064_v45  ;;  %v1864_v19 = vpop.xlane.xlu1 %1863  ;;  %v1743_v59 = vmax.f32 %v1647_v12, %v1695_v52  ;;  %v1744_v50 = vmax.f32 %v1648_v43, %v1696_v23 }
 0x477   : > { %v2000_v31 = vperm.slane %v1864_v19, %v4058_v30  ;;  %v1625_v19 = vadd.f32 %v1577_v10, %v3863_v27  ;;  %v1000_v43 = vperm.slane %v976_v56, 0  ;;  %v977_v52 = vrot.slane %v3859_v18, 7 }
 0x478   : > { %v4250_v4 = vsel %vm1373_vm10, %v2011_v54, %v2010_v16  ;;  %v1771_v54 = vmul.f32 %v4246_v35, %v1720_v7  ;;  %v1794_v10 = vmul.f32 %v4246_v35, %v1743_v59 }
 0x479   : > { %v4254_v62 = vsel %vm1373_vm10, %v2001_v37, %v2000_v31  ;;  %v1649_v37 = vadd.f32 %v1585_v6, %v3863_v27  ;;  %v1162_v31 = vmax.f32 %v1066_v47, %v1114_v11  ;;  %v1115_v6 = vmul.f32 0.2, %v1067_v34 }
 0x47a   : > { %1297 = vadd.xlane.f32.xlu0 %v1211_v33  ;;  %1837 = vadd.xlane.f32.xlu2 %v1769_v61  ;;  %v975_v61 = vrot.slane %v3859_v18, 5  ;;  %v1393_v33 = vperm.slane %v4198_v20, %v4058_v30  ;;  %v1394_v27 = vperm.slane %v4109_v21, %v4064_v45  ;;  %v1673_v47 = vmul.f32 0.2, %v1625_v19 }
 0x47b   : > { %1299 = vadd.xlane.f32.xlu1 %v1212_v55  ;;  %v1697_v15 = vmul.f32 0.2, %v1649_v37  ;;  %v1453_v21 = vsel %vm1452_vm15, %v4119_v60, %v4165_v26  ;;  %v1975_v18 = vperm.slane %v4091_v41, %v4058_v30 }
 0x47c   : > { %v999_v7 = vperm.slane %v975_v61, 0  ;;  %v1721_v60 = vmax.f32 %v1625_v19, %v1673_v47 }
 0x47d   : > { %v4259_v36 = vpop.xlane.xlu0 %1257  ;;  %v1824_v57 = vpop.xlane.xlu2 %1823 }
 0x47e   : > { %v1966_v17 = vperm.slane %v1824_v57, %v4064_v45  ;;  %v1870_v53 = vpop.xlane.xlu1 %1869  ;;  %v1213_v57 = vmul.f32 %v4231_v42, %v1162_v31  ;;  %v1068_v11 = vadd.f32 %v999_v7, %v3812_v13  ;;  %v1069_v26 = vadd.f32 %v999_v7, %v3832_v25 }
 0x47f   : > { %v2005_v58 = vperm.slane %v1870_v53, %v4058_v30  ;;  %v1163_v53 = vmax.f32 %v1067_v34, %v1115_v6 }
 0x480   : > { %v4266_v16 = vsel %vm1373_vm10, %v1966_v17, %v1965_v51  ;;  %v1795_v51 = vmul.f32 %v4246_v35, %v1744_v50  ;;  %v1395_v17 = vsel %vm1373_vm10, %v1394_v27, %v1393_v33  ;;  %v1001_v33 = vperm.slane %v977_v52, 0 }
 0x481   : > { %v1214_v56 = vmul.f32 %v4231_v42, %v1163_v53  ;;  %v1116_v50 = vmul.f32 0.2, %v1068_v11  ;;  %v1117_v6 = vmul.f32 0.2, %v1069_v26  ;;  %v1955_v53 = vperm.slane %v4040_v63, %v4058_v30 }
 0x482   : > { %1839 = vadd.xlane.f32.xlu0 %v1770_v14  ;;  %1885 = vadd.xlane.f32.xlu2 %v1793_v28  ;;  %v1455_v14 = vsel %vm1454_vm1, %v4188_v9, %v1453_v21  ;;  %v1745_v28 = vmax.f32 %v1649_v37, %v1697_v15  ;;  %v1985_v37 = vperm.slane %v4151_v49, %v4058_v30 }
 0x483   : > { %1841 = vadd.xlane.f32.xlu1 %v1771_v54  ;;  %v1070_v54 = vadd.f32 %v1000_v43, %v3812_v13  ;;  %v4302_v23 = vsel %vm1456_vm2, %v1395_v17, %v1455_v14  ;;  %v1071_v49 = vadd.f32 %v1000_v43, %v3832_v25  ;;  %v1164_v27 = vmax.f32 %v1068_v11, %v1116_v50 }
 0x484   : > { %v1796_v19 = vmul.f32 %v4246_v35, %v1745_v28  ;;  %v1073_v15 = vadd.f32 %v1001_v33, %v3832_v25  ;;  %v1165_v7 = vmax.f32 %v1069_v26, %v1117_v6 }
 0x485   : > { %v4278_v46 = vpop.xlane.xlu0 %1267  ;;  %v1872_v55 = vpop.xlane.xlu2 %1871  ;;  %v1119_v52 = vmul.f32 0.2, %v1071_v49  ;;  %v1215_v14 = vmul.f32 %v4231_v42, %v1164_v27 }
 0x486   : > { %v2006_v12 = vperm.slane %v1872_v55, %v4064_v45  ;;  %v4282_v44 = vpop.xlane.xlu1 %1881 }
 0x487   : > { %v2015_v17 = vperm.slane %v4282_v44, %v4058_v30  ;;  %v1216_v44 = vmul.f32 %v4231_v42, %v1165_v7  ;;  %v1167_v63 = vmax.f32 %v1071_v49, %v1119_v52 }
 0x488   : > { %v4288_v20 = vsel %vm1373_vm10, %v2006_v12, %v2005_v58  ;;  %v1118_v58 = vmul.f32 0.2, %v1070_v54  ;;  %v1772_v12 = vmul.f32 %v4246_v35, %v1721_v60 }
 0x48a   : > { %1887 = vadd.xlane.f32.xlu0 %v1794_v10  ;;  %1301 = vadd.xlane.f32.xlu2 %v1213_v57  ;;  %v1166_v10 = vmax.f32 %v1070_v54, %v1118_v58 }
 0x48b   : > { %1889 = vadd.xlane.f32.xlu1 %v1795_v51  ;;  %v1072_v51 = vadd.f32 %v1001_v33, %v3812_v13  ;;  %v1121_v13 = vmul.f32 0.2, %v1073_v15 }
 0x48c   : > { %v1217_v28 = vmul.f32 %v4231_v42, %v1166_v10 }
 0x48d   : > { %v4304_v59 = vpop.xlane.xlu0 %1269  ;;  %v1836_v31 = vpop.xlane.xlu2 %1835  ;;  %v1120_v54 = vmul.f32 0.2, %v1072_v51 }
 0x48e   : > { %v1976_v34 = vperm.slane %v1836_v31, %v4064_v45  ;;  %v1848_v9 = vpop.xlane.xlu1 %1847  ;;  %v1169_v31 = vmax.f32 %v1073_v15, %v1121_v13 }
 0x48f   : > { %v1986_v61 = vperm.slane %v1848_v9, %v4064_v45  ;;  %v1218_v9 = vmul.f32 %v4231_v42, %v1167_v63 }
 0x490   : > { %v4315_v55 = vsel %vm1373_vm10, %v1976_v34, %v1975_v18  ;;  %v1168_v18 = vmax.f32 %v1072_v51, %v1120_v54  ;;  %v1406_v54 = vperm.slane %v4278_v46, %v4064_v45 }
 0x491   : > { %v4319_v41 = vsel %vm1373_vm10, %v1986_v61, %v1985_v37  ;;  %v1220_v37 = vmul.f32 %v4231_v42, %v1169_v31 }
 0x492   : > { %1303 = vadd.xlane.f32.xlu0 %v1214_v56  ;;  %1891 = vadd.xlane.f32.xlu2 %v1796_v19  ;;  %v1219_v61 = vmul.f32 %v4231_v42, %v1168_v18  ;;  %v4346_v56 = vadd.s32 4294967280, %v4058_v30 }
 0x493   : > { %1843 = vadd.xlane.f32.xlu1 %v1772_v12  ;;  %v4351_v12 = vsel %vm1317_vm3, %v4302_v23, -1e+30 }
 0x494   : > { %v1478_v6 = vsel %vm150_vm0, %v4351_v12, -inf }
 0x495   : > { %v4324_v47 = vpop.xlane.xlu0 %1279  ;;  %v1884_v57 = vpop.xlane.xlu2 %1883 }
 0x496   : > { %v2016_v35 = vperm.slane %v1884_v57, %v4064_v45  ;;  %v1812_v21 = vpop.xlane.xlu1 %1811 }
 0x497   : > { %v1956_v43 = vperm.slane %v1812_v21, %v4064_v45 }
 0x498   : > { %v4334_v25 = vsel %vm1373_vm10, %v2016_v35, %v2015_v17 }
 0x499   : > { %v1957_v11 = vsel %vm1373_vm10, %v1956_v43, %v1955_v53 }
 0x49a   : > { %1305 = vadd.xlane.f32.xlu0 %v1215_v14  ;;  %1309 = vadd.xlane.f32.xlu2 %v1217_v28 }
 0x49b   : > { %1307 = vadd.xlane.f32.xlu1 %v1216_v44 }
 0x49d   : > { %v4340_v60 = vpop.xlane.xlu0 %1281  ;;  %v1254_v26 = vpop.xlane.xlu2 %1253 }
 0x49e   : > { %v1260_v34 = vpop.xlane.xlu1 %1259  ;;  %v1396_v53 = vperm.slane %v1254_v26, %v4058_v30 }
 0x49f   : > { %v1400_v43 = vperm.slane %v1260_v34, %v4064_v45 }
 0x4a2   : > { %1311 = vadd.xlane.f32.xlu0 %v1218_v9  ;;  %1315 = vadd.xlane.f32.xlu2 %v1220_v37 }
 0x4a3   : > { %1313 = vadd.xlane.f32.xlu1 %v1219_v61 }
 0x4a5   : > { %v1856_v33 = vpop.xlane.xlu0 %1855  ;;  %v1256_v19 = vpop.xlane.xlu2 %1255 }
 0x4a6   : > { %v1993_v50 = vperm.slane %v1856_v33, %v4346_v56  ;;  %v1262_v58 = vpop.xlane.xlu1 %1261  ;;  %v1397_v35 = vperm.slane %v1256_v19, %v4064_v45  ;;  %v1408_v33 = vperm.slane %v4304_v59, %v4058_v30 }
 0x4a7   : > { %v1402_v13 = vperm.slane %v1262_v58, %v4058_v30 }
 0x4a8   : > { %v4355_v42 = vsel %vm1948_vm6, %v1993_v50, %v4201_v39  ;;  %v1398_v63 = vsel %vm1373_vm10, %v1397_v35, %v1396_v53 }
 0x4aa   : > { %1479 = vmax.xlane.f32.xlu0 %v1478_v6 }
 0x4ad   : > { %v1814_v49 = vpop.xlane.xlu0 %1813  ;;  %v1264_v27 = vpop.xlane.xlu2 %1263 }
 0x4ae   : > { %v1958_v10 = vperm.slane %v1814_v49, %v4346_v56  ;;  %v1272_v15 = vpop.xlane.xlu1 %1271  ;;  %v1403_v21 = vperm.slane %v1264_v27, %v4064_v45  ;;  %v1415_v49 = vperm.slane %v4324_v47, %v4064_v45 }
 0x4b0   : > { %v1959_v57 = vsel %vm1948_vm6, %v1958_v10, %v1957_v11  ;;  %v1404_v31 = vsel %vm1373_vm10, %v1403_v21, %v1402_v13 }
 0x4b5   : > { %v1862_v7 = vpop.xlane.xlu0 %1861  ;;  %v1266_v51 = vpop.xlane.xlu2 %1265 }
 0x4b6   : > { %v1998_v23 = vperm.slane %v1862_v7, %v4346_v56  ;;  %v1274_v17 = vpop.xlane.xlu1 %1273  ;;  %v1405_v52 = vperm.slane %v1266_v51, %v4058_v30  ;;  %v1417_v7 = vperm.slane %v4340_v60, %v4058_v30 }
 0x4b7   : > { %v1411_v46 = vperm.slane %v1274_v17, %v4058_v30 }
 0x4b8   : > { %v4364_v39 = vsel %vm1948_vm6, %v1998_v23, %v4228_v24  ;;  %v1399_v24 = vperm.slane %v4259_v36, %v4058_v30  ;;  %v1407_v34 = vsel %vm1373_vm10, %v1406_v54, %v1405_v52  ;;  %v1409_v36 = vperm.slane %v1272_v15, %v4064_v45 }
 0x4ba   : > { %v1401_v18 = vsel %vm1373_vm10, %v1400_v43, %v1399_v24  ;;  %v1410_v27 = vsel %vm1373_vm10, %v1409_v36, %v1408_v33 }
 0x4bb   : > { %v1458_v37 = vsel %vm1444_vm11, %v1401_v18, %v1398_v63 }
 0x4bc   : > { %v1459_v61 = vsel %vm1446_vm12, %v1404_v31, %v1458_v37 }
 0x4bd   : > { %v1820_v14 = vpop.xlane.xlu0 %1819  ;;  %v1276_v28 = vpop.xlane.xlu2 %1275  ;;  %v1460_v19 = vsel %vm1448_vm13, %v1407_v34, %v1459_v61 }
 0x4be   : > { %v1963_v11 = vperm.slane %v1820_v14, %v4346_v56  ;;  %v1284_v44 = vpop.xlane.xlu1 %1283  ;;  %v1412_v9 = vperm.slane %v1276_v28, %v4064_v45  ;;  %v1461_v59 = vsel %vm1450_vm14, %v1410_v27, %v1460_v19 }
 0x4bf   : > { %v1418_v50 = vperm.slane %v1284_v44, %v4064_v45 }
 0x4c0   : > { %v1964_v26 = vsel %vm1948_vm6, %v1963_v11, %v4225_v48  ;;  %v1413_v48 = vsel %vm1373_vm10, %v1412_v9, %v1411_v46 }
 0x4c1   : > { %v1462_v23 = vsel %vm1452_vm15, %v1413_v48, %v1461_v59  ;;  %v1419_v17 = vsel %vm1373_vm10, %v1418_v50, %v1417_v7 }
 0x4c5   : > { %v1868_v58 = vpop.xlane.xlu0 %1867  ;;  %v1278_v6 = vpop.xlane.xlu2 %1277 }
 0x4c6   : > { %v1414_v10 = vperm.slane %v1278_v6, %v4058_v30  ;;  %v1802_v15 = vpop.xlane.xlu1 %1801  ;;  %v2003_v37 = vperm.slane %v1868_v58, %v4346_v56 }
 0x4c7   : > { %v1947_v53 = vperm.slane %v1802_v15, %v4346_v56 }
 0x4c8   : > { %v1416_v51 = vsel %vm1373_vm10, %v1415_v49, %v1414_v10 }
 0x4c9   : > { %v1463_v47 = vsel %vm1454_vm1, %v1416_v51, %v1462_v23  ;;  %v1949_v11 = vsel %vm1948_vm6, %v1947_v53, %v4181_v0 }
 0x4ca   : > { %v1464_v35 = vsel %vm1456_vm2, %v1419_v17, %v1463_v47 }
 0x4cb   : > { %v4406_v21 = vsel %vm1318_vm7, %v1464_v35, -1e+30 }
 0x4cc   : > { %v1481_v60 = vsel %vm150_vm0, %v4406_v21, -inf }
 0x4cd   : > { %v1832_v43 = vpop.xlane.xlu0 %1831  ;;  %v1808_v52 = vpop.xlane.xlu2 %1807  ;;  %1482 = vmax.xlane.f32.xlu1 %v1481_v60 }
 0x4ce   : > { %v1953_v14 = vperm.slane %v1808_v52, %v4346_v56  ;;  %v1826_v28 = vpop.xlane.xlu1 %1825 }
 0x4cf   : > { %v1968_v13 = vperm.slane %v1826_v28, %v4346_v56 }
 0x4d0   : > { %v1954_v44 = vsel %vm1948_vm6, %v1953_v14, %v4184_v29 }
 0x4d1   : > { %v2025_v24 = vsel %vm1444_vm11, %v1954_v44, %v1949_v11  ;;  %v1969_v31 = vsel %vm1948_vm6, %v1968_v13, %v4266_v16  ;;  %v2004_v16 = vsel %vm1948_vm6, %v2003_v37, %v4254_v62 }
 0x4d2   : > { %v2026_v54 = vsel %vm1446_vm12, %v1959_v57, %v2025_v24 }
 0x4d3   : > { %v2027_v63 = vsel %vm1448_vm13, %v1964_v26, %v2026_v54 }
 0x4d4   : > { %v2028_v18 = vsel %vm1450_vm14, %v1969_v31, %v2027_v63 }
 0x4d5   : > { %v1880_v34 = vpop.xlane.xlu0 %1879  ;;  %v1850_v9 = vpop.xlane.xlu2 %1849 }
 0x4d6   : > { %v1988_v0 = vperm.slane %v1850_v9, %v4346_v56  ;;  %v1874_v36 = vpop.xlane.xlu1 %1873 }
 0x4d7   : > { %v2008_v29 = vperm.slane %v1874_v36, %v4346_v56 }
 0x4d8   : > { %v1989_v61 = vsel %vm1948_vm6, %v1988_v0, %v4319_v41 }
 0x4d9   : > { %v2032_v57 = vsel %vm1444_vm11, %v4355_v42, %v1989_v61  ;;  %v2009_v33 = vsel %vm1948_vm6, %v2008_v29, %v4288_v20  ;;  %v2013_v42 = vperm.slane %v1880_v34, %v4346_v56 }
 0x4da   : > { %v2033_v26 = vsel %vm1446_vm12, %v4364_v39, %v2032_v57  ;;  %v1973_v39 = vperm.slane %v1832_v43, %v4346_v56 }
 0x4db   : > { %v2034_v46 = vsel %vm1448_vm13, %v2004_v16, %v2033_v26  ;;  %v2014_v49 = vsel %vm1948_vm6, %v2013_v42, %v4250_v4 }
 0x4dc   : > { %v2035_v19 = vsel %vm1450_vm14, %v2009_v33, %v2034_v46  ;;  %v1974_v27 = vsel %vm1948_vm6, %v1973_v39, %v4222_v2 }
 0x4dd   : > { %v4438_v48 = vpop.xlane.xlu0 %1285  ;;  %v1290_v50 = vpop.xlane.xlu2 %1289  ;;  %v2036_v20 = vsel %vm1452_vm15, %v2014_v49, %v2035_v19  ;;  %v2029_v10 = vsel %vm1452_vm15, %v1974_v27, %v2028_v18 }
 0x4de   : > { %v4440_v41 = vpop.xlane.xlu1 %1287  ;;  %v1420_v16 = vperm.slane %v4438_v48, %v4058_v30  ;;  %v1423_v26 = vperm.slane %v1290_v50, %v4058_v30 }
 0x4df   : > { %v1421_v46 = vperm.slane %v4440_v41, %v4064_v45 }
 0x4e1   : > { %v1422_v41 = vsel %vm1373_vm10, %v1421_v46, %v1420_v16 }
 0x4e5   : > { %v1292_v58 = vpop.xlane.xlu0 %1291  ;;  %v4443_v6 = vpop.xlane.xlu2 %1295 }
 0x4e6   : > { %v4445_v62 = vpop.xlane.xlu1 %1293  ;;  %v1424_v29 = vperm.slane %v1292_v58, %v4064_v45  ;;  %v1427_v42 = vperm.slane %v4443_v6, %v4064_v45 }
 0x4e7   : > { %v1426_v58 = vperm.slane %v4445_v62, %v4058_v30 }
 0x4e8   : > { %v1425_v49 = vsel %vm1373_vm10, %v1424_v29, %v1423_v26 }
 0x4e9   : > { %v1465_v6 = vsel %vm1444_vm11, %v1425_v49, %v1422_v41  ;;  %vm1319_vm11 = vcmp.gt.f32.partialorder %v3536_v5, 0.0 }
 0x4ed   : > { %v1298_v15 = vpop.xlane.xlu0 %1297  ;;  %v1838_v7 = vpop.xlane.xlu2 %1837 }
 0x4ee   : > { %v1978_v59 = vperm.slane %v1838_v7, %v4346_v56  ;;  %v1300_v51 = vpop.xlane.xlu1 %1299  ;;  %v1428_v7 = vsel %vm1373_vm10, %v1427_v42, %v1426_v58 }
 0x4ef   : > { %v1430_v48 = vperm.slane %v1300_v51, %v4064_v45  ;;  %v1466_v51 = vsel %vm1446_vm12, %v1428_v7, %v1465_v6 }
 0x4f0   : > { %v1979_v23 = vsel %vm1948_vm6, %v1978_v59, %v4315_v55 }
 0x4f1   : > { %v2030_v17 = vsel %vm1454_vm1, %v1979_v23, %v2029_v10 }
 0x4f5   : > { %v1840_v47 = vpop.xlane.xlu0 %1839  ;;  %v1886_v35 = vpop.xlane.xlu2 %1885 }
 0x4f6   : > { %v2018_v4 = vperm.slane %v1886_v35, %v4346_v56  ;;  %v1842_v53 = vpop.xlane.xlu1 %1841  ;;  %v1980_v55 = vperm.slane %v1840_v47, %v4058_v30 }
 0x4f7   : > { %v1981_v11 = vperm.slane %v1842_v53, %v4064_v45 }
 0x4f8   : > { %v2019_v2 = vsel %vm1948_vm6, %v2018_v4, %v4334_v25 }
 0x4f9   : > { %v2037_v60 = vsel %vm1454_vm1, %v2019_v2, %v2036_v20  ;;  %v1982_v18 = vsel %vm1373_vm10, %v1981_v11, %v1980_v55  ;;  %v1429_v20 = vperm.slane %v1298_v15, %v4058_v30 }
 0x4fb   : > { %v1431_v59 = vsel %vm1373_vm10, %v1430_v48, %v1429_v20 }
 0x4fc   : > { %v1467_v35 = vsel %vm1448_vm13, %v1431_v59, %v1466_v51 }
 0x4fd   : > { %v1888_v43 = vpop.xlane.xlu0 %1887  ;;  %v1302_v52 = vpop.xlane.xlu2 %1301 }
 0x4fe   : > { %v1890_v14 = vpop.xlane.xlu1 %1889  ;;  %v2020_v28 = vperm.slane %v1888_v43, %v4058_v30  ;;  %v1432_v62 = vperm.slane %v1302_v52, %v4058_v30 }
 0x4ff   : > { %v2021_v13 = vperm.slane %v1890_v14, %v4064_v45 }
 0x501   : > { %v2022_v25 = vsel %vm1373_vm10, %v2021_v13, %v2020_v28 }
 0x505   : > { %v1304_v44 = vpop.xlane.xlu0 %1303  ;;  %v1892_v24 = vpop.xlane.xlu2 %1891 }
 0x506   : > { %v2023_v54 = vperm.slane %v1892_v24, %v4346_v56  ;;  %v1844_v63 = vpop.xlane.xlu1 %1843  ;;  %v1433_v50 = vperm.slane %v1304_v44, %v4064_v45 }
 0x507   : > { %v1983_v31 = vperm.slane %v1844_v63, %v4346_v56 }
 0x508   : > { %v2024_v34 = vsel %vm1948_vm6, %v2023_v54, %v2022_v25  ;;  %v1434_v15 = vsel %vm1373_vm10, %v1433_v50, %v1432_v62 }
 0x509   : > { %v2038_v9 = vsel %vm1456_vm2, %v2024_v34, %v2037_v60  ;;  %v1984_v37 = vsel %vm1948_vm6, %v1983_v31, %v1982_v18  ;;  %v1468_v43 = vsel %vm1450_vm14, %v1434_v15, %v1467_v35 }
 0x50a   : > { %v4475_v0 = vsel %vm1894_vm8, %v2038_v9, -1e+30  ;;  %v2031_v36 = vsel %vm1456_vm2, %v1984_v37, %v2030_v17 }
 0x50b   : > { %v2046_v56 = vsel %vm160_vm4, %v4475_v0, -inf  ;;  %v4481_v61 = vsel %vm1893_vm9, %v2031_v36, -1e+30 }
 0x50c   : > { %2047 = vmax.xlane.f32.xlu0 %v2046_v56  ;;  %v2043_v57 = vsel %vm160_vm4, %v4481_v61, -inf }
 0x50d   : > { %2044 = vmax.xlane.f32.xlu2 %v2043_v57  ;;  %v1306_v33 = vpop.xlane.xlu0 %1305  ;;  %v1310_v19 = vpop.xlane.xlu2 %1309 }
 0x50e   : > { %v1308_v39 = vpop.xlane.xlu1 %1307  ;;  %v1435_v27 = vperm.slane %v1306_v33, %v4058_v30  ;;  %v1438_v4 = vperm.slane %v1310_v19, %v4058_v30 }
 0x50f   : > { %v1436_v10 = vperm.slane %v1308_v39, %v4064_v45 }
 0x511   : > { %v1437_v23 = vsel %vm1373_vm10, %v1436_v10, %v1435_v27 }
 0x512   : > { %v1469_v28 = vsel %vm1452_vm15, %v1437_v23, %v1468_v43 }
 0x515   : > { %v1312_v17 = vpop.xlane.xlu0 %1311  ;;  %v1316_v47 = vpop.xlane.xlu2 %1315 }
 0x516   : > { %v1439_v53 = vperm.slane %v1312_v17, %v4064_v45  ;;  %v1442_v2 = vperm.slane %v1316_v47, %v4064_v45  ;;  %v1314_v60 = vpop.xlane.xlu1 %1313 }
 0x517   : > { %v1441_v52 = vperm.slane %v1314_v60, %v4058_v30 }
 0x518   : > { %v1440_v14 = vsel %vm1373_vm10, %v1439_v53, %v1438_v4 }
 0x519   : > { %v1443_v13 = vsel %vm1373_vm10, %v1442_v2, %v1441_v52  ;;  %v1470_v55 = vsel %vm1454_vm1, %v1440_v14, %v1469_v28  ;;  %vm2318_vm10 = vcmask (%p669_p0), 523264  }
 0x51a   : > { %v1471_v11 = vsel %vm1456_vm2, %v1443_v13, %v1470_v55 }
 0x51b   : > { %v1477_v44 = vsel %vm1319_vm11, %v1471_v11, -1e+30  ;;  %v949_v11 = vld [vmem:[#allocation2 + $0x10] sm:$0xff] }
 0x51c   : > { %v1484_v45 = vsel %vm150_vm0, %v1477_v44, -inf }
 0x51d   : > { %v1480_v24 = vpop.xlane.xlu0 %1479  ;;  %1485 = vmax.xlane.f32.xlu1 %v1484_v45 }
 0x51e   : > { %v1487_v54 = vsub.f32 %v4351_v12, %v1480_v24  ;;  %v950_v24 = vld [vmem:[#allocation2] sm:$0xff] }
 0x520   : > { %v1490_v30 = vmul.f32 1.442695, %v1487_v54 }
 0x522   : > { %3244 = vpow2.f32 %v1490_v30 }
 0x528   : > { %v3245_v63 = vpop.eup %3244 }
 0x529   : > { %v1496_v25 = vmul.f32 %v3245_v63, %v3520_v1  ;;  %v1550_v63 = vld [vmem:[#allocation3 + $0x8] sm:$0xff]  ;;  %v3185_v1 = vld [vmem:[%s4727_s15 + $0x78] sm:$0xff] (%p669_p0) }
 0x52a   :  { %2297 = vmatpush.bf16.msra.mxu2 (%p669_p0), %v3185_v1 }
 0x52b   : > { %v1499_v31 = vsel %vm150_vm0, %v1496_v25, 0.0 }
 0x52c   : > { %1500 = vadd.xlane.f32.xlu2 %v1499_v31 }
 0x540   : > { %v1483_v18 = vpop.xlane.xlu1 %1482 }
 0x541   : > { %v1488_v34 = vsub.f32 %v4406_v21, %v1483_v18  ;;  %v1551_v18 = vld [vmem:[#allocation3] sm:$0xff] }
 0x543   : > { %v1492_v9 = vmul.f32 1.442695, %v1488_v34 }
 0x545   : > { %3246 = vpow2.f32 %v1492_v9 }
 0x54b   : > { %v3247_v37 = vpop.eup %3246 }
 0x54c   : > { %v1497_v36 = vmul.f32 %v3247_v37, %v3528_v3  ;;  %v951_v37 = vld [vmem:[#allocation2 + $0x8] sm:$0xff] }
 0x54e   : > { %v1502_v29 = vsel %vm150_vm0, %v1497_v36, 0.0 }
 0x54f   : > { %1503 = vadd.xlane.f32.xlu0 %v1502_v29 }
 0x57f   : > { %v2048_v12 = vpop.xlane.xlu0 %2047 }
 0x580   : > { %v2050_v56 = vsub.f32 %v4475_v0, %v2048_v12  ;;  %v2045_v57 = vpop.xlane.xlu2 %2044 }
 0x581   : > { %v2049_v16 = vsub.f32 %v4481_v61, %v2045_v57 }
 0x582   : > { %v2053_v26 = vmul.f32 1.442695, %v2050_v56 }
 0x583   : > { %v2051_v46 = vmul.f32 1.442695, %v2049_v16 }
 0x584   : > { %3248 = vpow2.f32 %v2053_v26 }
 0x585   : > { %3250 = vpow2.f32 %v2051_v46  ;;  %v3266_v46 = vld [vmem:[%s4726_s14] ss:$0 sm:$0xff] (%p669_p0) }
 0x58a   : > { %v3249_v33 = vpop.eup %3248 }
 0x58b   : > { %v3251_v21 = vpop.eup %3250  ;;  %v2056_v19 = vmul.f32 %v3249_v33, %v3598_v40 }
 0x58c   : > { %v2055_v42 = vmul.f32 %v3251_v21, %v3594_v38 }
 0x58d   : > { %v2060_v58 = vsel %vm160_vm4, %v2056_v19, 0.0 }
 0x58e   : > { %2061 = vadd.xlane.f32.xlu2 %v2060_v58  ;;  %v2057_v39 = vsel %vm160_vm4, %v2055_v42, 0.0 }
 0x58f   : > { %2058 = vadd.xlane.f32.xlu1 %v2057_v39 }
 0x590   : > { %v1486_v0 = vpop.xlane.xlu1 %1485 }
 0x591   : > { %v1489_v49 = vsub.f32 %v1477_v44, %v1486_v0 }
 0x593   : > { %v1494_v20 = vmul.f32 1.442695, %v1489_v49 }
 0x595   : > { %3252 = vpow2.f32 %v1494_v20 }
 0x59b   : > { %v3253_v61 = vpop.eup %3252 }
 0x59c   : > { %v1498_v48 = vmul.f32 %v3253_v61, %v3536_v5  ;;  %v3177_v5 = vld [vmem:[%s4727_s15 + $0x38] sm:$0xff] (%p669_p0) }
 0x59d   :  { %2279 = vmatpush.bf16.msra.mxu1 (%p669_p0), %v3177_v5 }
 0x59e   : > { %v1505_v50 = vsel %vm150_vm0, %v1498_v48, 0.0 }
 0x59f   : > { %1506 = vadd.xlane.f32.xlu0 %v1505_v50  ;;  %v1501_v41 = vpop.xlane.xlu2 %1500  ;;  %v3184_v50 = vld [vmem:[%s4727_s15 + $0x70] sm:$0xff] (%p669_p0) }
 0x5a0   : > { %v1508_v27 = vmax.f32 %v1501_v41, 1e-20  ;;  %2298 = vmatpush.bf16.msra.mxu2 (%p669_p0), %v3184_v50 }
 0x5a2   : > { %3254 = vrcp.f32 %v1508_v27  ;;  %v3176_v27 = vld [vmem:[%s4727_s15 + $0x30] sm:$0xff] (%p669_p0) }
 0x5a3   :  { %2280 = vmatpush.bf16.msra.mxu1 (%p669_p0), %v3176_v27 }
 0x5a8   : > { %v3255_v7 = vpop.eup %3254 }
 0x5a9   : > { %v1514_v59 = vmul.f32 %v3255_v7, %v1496_v25 }
 0x5c2   : > { %v1504_v10 = vpop.xlane.xlu0 %1503 }
 0x5c3   : > { %v1509_v6 = vmax.f32 %v1504_v10, 1e-20  ;;  %v3193_v10 = vld [vmem:[%s4729_s17 + $0x38] sm:$0xff] (%p669_p0) }
 0x5c5   : > { %3256 = vrcp.f32 %v1509_v6 }
 0x5cb   : > { %v3257_v62 = vpop.eup %3256 }
 0x5cc   : > { %v1515_v15 = vmul.f32 %v3257_v62, %v1497_v36 }
 0x5ce   : > { %v1517_v51 = vpack.c.bf16 %v1515_v15, %v1514_v59  ;;  %v3183_v15 = vld [vmem:[%s4727_s15 + $0x68] sm:$0xff] (%p669_p0) }
 0x5cf   :  { %2299 = vmatpush.bf16.msra.mxu2 (%p669_p0), %v3183_v15 }
 0x5d0   : > { %2957 = vmatmul.msk.bf16.vlgmr.msrb.gmra.mxu0 %vm150_vm0, %v1517_v51 }
 0x601   : > { %v2062_v23 = vpop.xlane.xlu2 %2061 }
 0x602   : > { %v2064_v17 = vmax.f32 %v2062_v23, 1e-20  ;;  %v2059_v47 = vpop.xlane.xlu1 %2058  ;;  %v3175_v23 = vld [vmem:[%s4727_s15 + $0x28] sm:$0xff] (%p669_p0) }
 0x603   : > { %v2063_v35 = vmax.f32 %v2059_v47, 1e-20  ;;  %2281 = vmatpush.bf16.msra.mxu1 (%p669_p0), %v3175_v23 }
 0x604   : > { %3258 = vrcp.f32 %v2064_v17  ;;  %v3192_v17 = vld [vmem:[%s4729_s17 + $0x30] sm:$0xff] (%p669_p0) }
 0x605   : > { %3260 = vrcp.f32 %v2063_v35  ;;  %v3201_v35 = vld [vmem:[%s4729_s17 + $0x78] sm:$0xff] (%p669_p0) }
 0x60a   : > { %v3259_v4 = vpop.eup %3258 }
 0x60b   : > { %v3261_v53 = vpop.eup %3260  ;;  %v2068_v2 = vmul.f32 %v3259_v4, %v2056_v19  ;;  %v3182_v4 = vld [vmem:[%s4727_s15 + $0x60] sm:$0xff] (%p669_p0) }
 0x60c   : > { %v2067_v60 = vmul.f32 %v3261_v53, %v2055_v42  ;;  %v3267_v42 = vld [vmem:[%s4724_s12] ss:$0 sm:$0xff] (%p669_p0)  ;;  %2300 = vmatpush.bf16.msra.mxu2 (%p669_p0), %v3182_v4 }
 0x60d   :  { %v3174_v53 = vld [vmem:[%s4727_s15 + $0x20] sm:$0xff] (%p669_p0) }
 0x60e   : > { %v2069_v43 = vpack.c.bf16 %v2068_v2, %v2067_v60  ;;  %v3200_v2 = vld [vmem:[%s4729_s17 + $0x70] sm:$0xff] (%p669_p0)  ;;  %v3181_v60 = vld [vmem:[%s4727_s15 + $0x58] sm:$0xff] (%p669_p0)  ;;  %2282 = vmatpush.bf16.msra.mxu1 (%p669_p0), %v3174_v53 }
 0x610   : > { %2959 = vmatmul.msk.bf16.vlgmr.msrb.gmra.mxu1 %vm160_vm4, %v2069_v43  ;;  %v3173_v43 = vld [vmem:[%s4727_s15 + $0x18] sm:$0xff] (%p669_p0)  ;;  %2301 = vmatpush.bf16.msra.mxu2 (%p669_p0), %v3181_v60 }
 0x612   : > { %v1507_v52 = vpop.xlane.xlu0 %1506  ;;  %2283 = vmatpush.bf16.msra.mxu1 (%p669_p0), %v3173_v43 }
 0x613   : > { %v1510_v14 = vmax.f32 %v1507_v52, 1e-20  ;;  %v3199_v52 = vld [vmem:[%s4729_s17 + $0x68] sm:$0xff] (%p669_p0) }
 0x615   : > { %3262 = vrcp.f32 %v1510_v14  ;;  %v3180_v14 = vld [vmem:[%s4727_s15 + $0x50] sm:$0xff] (%p669_p0) }
 0x616   :  { %2302 = vmatpush.bf16.msra.mxu2 (%p669_p0), %v3180_v14 }
 0x61b   : > { %v3263_v28 = vpop.eup %3262 }
 0x61c   : > { %v1516_v13 = vmul.f32 %v3263_v28, %v1498_v48  ;;  %v3179_v28 = vld [vmem:[%s4727_s15 + $0x48] sm:$0xff] (%p669_p0) }
 0x61d   :  { %2303 = vmatpush.bf16.msra.mxu2 (%p669_p0), %v3179_v28 }
 0x61e   : > { %v1518_v55 = vpack.c.bf16 %v1516_v13, %v1516_v13  ;;  %v3178_v13 = vld [vmem:[%s4727_s15 + $0x40] sm:$0xff] (%p669_p0) }
 0x620   : > { %2958 = vmatmul.msk.bf16.gmra.mxu0 %vm150_vm0, %v1518_v55  ;;  %v3172_v55 = vld [vmem:[%s4727_s15 + $0x10] sm:$0xff] (%p669_p0) }
 0x621   :  { %2304 = vmatpush.bf16.msra.mxu2 (%p669_p0), %v3178_v13  ;;  %2284 = vmatpush.bf16.msra.mxu1 (%p669_p0), %v3172_v55 }
 0x64d   : > { %v1535_v44 = vpop.f32.mrf.mxu0 }
 0x64e   : > { %v1544_v45 = vadd.f32 %v1535_v44, %v949_v11  ;;  %v3190_v11 = vld [vmem:[%s4729_s17 + $0x20] sm:$0xff] (%p669_p0)  ;;  %v3171_v44 = vld [vmem:[%s4727_s15 + $0x8] sm:$0xff] (%p669_p0) }
 0x64f   :  { %2285 = vmatpush.bf16.msra.mxu1 (%p669_p0), %v3171_v44 }
 0x650   : > { %1547 = vst [vmem:[#allocation2 + $0x10] sm:$0xff] %v1544_v45  ;;  %v3189_v45 = vld [vmem:[%s4729_s17 + $0x18] sm:$0xff] (%p669_p0) }
 0x655   : > { %v1537_v54 = vpop.f32.mrf.mxu0 }
 0x656   : > { %v1545_v30 = vadd.f32 %v1537_v54, %v950_v24  ;;  %v3196_v24 = vld [vmem:[%s4729_s17 + $0x50] sm:$0xff] (%p669_p0)  ;;  %v3170_v54 = vld [vmem:[%s4727_s15] sm:$0xff] (%p669_p0) }
 0x657   :  { %v2096_v21 = vld [vmem:[#allocation2 + $0x10] sm:$0xff] (%p669_p0)  ;;  %2286 = vmatpush.bf16.msra.mxu1 (%p669_p0), %v3170_v54 }
 0x658   : > { %1548 = vst [vmem:[#allocation2] sm:$0xff] %v1545_v30  ;;  %v2099_v49 = vmul.f32 (%p669_p0), 0.125, %v2096_v21  ;;  %v3188_v30 = vld [vmem:[%s4729_s17 + $0x10] sm:$0xff] (%p669_p0) }
 0x65a   :  { %v2106_v61 = vadd.f32 (%p669_p0), %v3267_v42, %v2099_v49 }
 0x65c   :  { %v2109_v7 = vmax.f32 (%p669_p0), %v2106_v61, 0.0 }
 0x65f   :  { %v2097_v58 = vld [vmem:[#allocation2] sm:$0xff] (%p669_p0) }
 0x660   :  { %v2100_v20 = vmul.f32 (%p669_p0), 0.125, %v2097_v58 }
 0x662   :  { %v2107_v48 = vadd.f32 (%p669_p0), %v3267_v42, %v2100_v20 }
 0x664   :  { %v2110_v62 = vmax.f32 (%p669_p0), %v2107_v48, 0.0 }
 0x666   :  { %v2144_v47 = vpack.c.bf16 (%p669_p0), %v2110_v62, %v2109_v7 }
 0x668   :  { %2305 = vmatmul.bf16.vlgmr.msra.gmra.mxu2 (%p669_p0), %v2144_v47 }
 0x68d   : > { %v2087_v25 = vpop.f32.mrf.mxu1 }
 0x68e   : > { %v2092_v31 = vadd.f32 %v2087_v25, %v1550_v63  ;;  %v3195_v63 = vld [vmem:[%s4729_s17 + $0x48] sm:$0xff] (%p669_p0) }
 0x68f   :  { %v3187_v25 = vld [vmem:[%s4729_s17 + $0x8] sm:$0xff] (%p669_p0) }
 0x690   : > { %2094 = vst [vmem:[#allocation3 + $0x8] sm:$0xff] %v2092_v31  ;;  %v3194_v31 = vld [vmem:[%s4729_s17 + $0x40] sm:$0xff] (%p669_p0) }
 0x695   : > { %v2089_v34 = vpop.f32.mrf.mxu1 }
 0x696   : > { %v2093_v9 = vadd.f32 %v2089_v34, %v1551_v18  ;;  %v3186_v18 = vld [vmem:[%s4729_s17] sm:$0xff] (%p669_p0) }
 0x697   :  { %v2112_v56 = vld [vmem:[#allocation3 + $0x8] sm:$0xff] (%p669_p0) }
 0x698   : > { %2095 = vst [vmem:[#allocation3] sm:$0xff] %v2093_v9  ;;  %v2114_v16 = vmul.f32 (%p669_p0), 0.125, %v2112_v56 }
 0x69a   :  { %v2120_v39 = vadd.f32 (%p669_p0), %v3266_v46, %v2114_v16 }
 0x69c   :  { %v2122_v38 = vmax.f32 (%p669_p0), %v2120_v39, 0.0 }
 0x69d   : > { %v1540_v36 = vpop.f32.mrf.mxu0 }
 0x69e   : > { %v1546_v29 = vadd.f32 %v1540_v36, %v951_v37 }
 0x69f   :  { %v2113_v57 = vld [vmem:[#allocation3] sm:$0xff] (%p669_p0) }
 0x6a0   : > { %1549 = vst [vmem:[#allocation2 + $0x8] sm:$0xff] %v1546_v29  ;;  %v2115_v26 = vmul.f32 (%p669_p0), 0.125, %v2113_v57 }
 0x6a1   :  { %671 = sbr.rel (!%p669_p0) target bundleno = 757 (0x2f5), region = 129 }
 0x6a2   :  { %v2121_v0 = vadd.f32 (%p669_p0), %v3266_v46, %v2115_v26 }
 0x6a4   :  { %v2123_v40 = vmax.f32 (%p669_p0), %v2121_v0, 0.0  ;;  %v3269_v0 = vld [vmem:[%s4730_s18] ss:$0 sm:$0xff] (%p669_p0) }
 0x6a5   : > { %v1542_v12 = vpop.f32.mrf.mxu0 }
 0x6a6   :  { %v4562_v6 = vpack.c.bf16 %v2123_v40, %v2122_v38 }
 0x6a7   :  { %v2098_v33 = vld [vmem:[#allocation2 + $0x8] sm:$0xff] }
 0x6a8   :  { %v2101_v19 = vmul.f32 0.125, %v2098_v33  ;;  %2132 = vmatpush.bf16.msra.mxu0 %v4562_v6 }
 0x6aa   :  { %v2108_v3 = vadd.f32 %v3267_v42, %v2101_v19  ;;  %v3268_v42 = vld [vmem:[%s4728_s16] ss:$0 sm:$0xff] }
 0x6ab   :  { %2960 = vmatmul.msk.bf16.vlgmr.msra.gmra.mxu0 %vm150_vm0, %v3552_v22  ;;  %v3191_v22 = vld [vmem:[%s4729_s17 + $0x28] sm:$0xff] }
 0x6ac   :  { %v2111_v41 = vmax.f32 %v2108_v3, 0.0  ;;  %2514 = vmatpush.bf16.msrb.mxu0 %v3193_v10 }
 0x6ae   :  { %v2146_v59 = vpack.c.bf16 %v2111_v41, %v2111_v41 }
 0x6b0   :  { %v2365_v51 = vsel %vm448_vm5, %v2146_v59, 0  ;;  %2515 = vmatpush.bf16.msrb.mxu0 %v3192_v17  ;;  %2310 = vmatmul.bf16.gmra.mxu2 %v2146_v59 }
 0x6b1   :  { %2373 = vmatpush.bf16.msra.mxu3 %v2365_v51 }
 0x6b4   :  { %2516 = vmatpush.bf16.msrb.mxu0 %v3191_v22 }
 0x6b5   :  { %2374 = vmatpush.bf16.msra.mxu3 %v2144_v47 }
 0x6b8   :  { %3026 = vmatmul.msk.bf16.vlgmr.msra.gmra.mxu3 %vm160_vm4, %v3629_v8  ;;  %v3198_v8 = vld [vmem:[%s4729_s17 + $0x60] sm:$0xff]  ;;  %2517 = vmatpush.bf16.msrb.mxu0 %v3190_v11 }
 0x6b9   :  { %2528 = vmatpush.bf16.msrb.mxu3 %v3201_v35 }
 0x6bb   :  { %2961 = vmatmul.msk.bf16.gmra.mxu0 %vm150_vm0, %v3575_v32  ;;  %v3197_v32 = vld [vmem:[%s4729_s17 + $0x58] sm:$0xff] }
 0x6bc   :  { %2518 = vmatpush.bf16.msrb.mxu0 %v3189_v45 }
 0x6bd   :  { %2529 = vmatpush.bf16.msrb.mxu3 %v3200_v2 }
 0x6c0   :  { %2519 = vmatpush.bf16.msrb.mxu0 %v3188_v30 }
 0x6c1   :  { %2530 = vmatpush.bf16.msrb.mxu3 %v3199_v52 }
 0x6c4   :  { %2520 = vmatpush.bf16.msrb.mxu0 %v3187_v25 }
 0x6c5   :  { %2531 = vmatpush.bf16.msrb.mxu3 %v3198_v8 }
 0x6c8   :  { %2521 = vmatpush.bf16.msrb.mxu0 %v3186_v18 }
 0x6c9   :  { %2532 = vmatpush.bf16.msrb.mxu3 %v3197_v32 }
 0x6cd   :  { %2533 = vmatpush.bf16.msrb.mxu3 %v3196_v24 }
 0x6d1   :  { %2534 = vmatpush.bf16.msrb.mxu3 %v3195_v63 }
 0x6d5   :  { %2535 = vmatpush.bf16.msrb.mxu3 %v3194_v31 }
 0x6d8   :  { %2536 = vmatmul.bf16.vlgmr.msrb.gmra.mxu3 %v4562_v6 }
 0x6eb   :  { %v2306_v26 = vpop.f32.mrf.mxu2 }
 0x6f3   :  { %v2308_v46 = vpop.f32.mrf.mxu2 }
 0x728   :  { %v2134_v34 = vpop.f32.mrf.mxu0 }
 0x730   :  { %v2136_v9 = vpop.f32.mrf.mxu0 }
 0x731   :  { %v2143_v37 = vpack.c.bf16 %v2136_v9, %v2134_v34 }
 0x733   :  { %2287 = vmatmul.bf16.vlgmr.msra.gmra.mxu1 %v2143_v37  ;;  %v2311_v33 = vpop.f32.mrf.mxu2 }
 0x738   :  { %v2139_v29 = vpop.f32.mrf.mxu0 }
 0x739   :  { %v2145_v57 = vpack.c.bf16 %v2139_v29, %v2139_v29 }
 0x73b   :  { %v2376_v36 = vpop.f32.mrf.mxu3  ;;  %v2313_v21 = vpop.f32.mrf.mxu2 }
 0x740   :  { %v2141_v16 = vpop.f32.mrf.mxu0 }
 0x743   :  { %v2378_v12 = vpop.f32.mrf.mxu3  ;;  %2292 = vmatmul.bf16.gmra.mxu1 %v2145_v57 }
 0x744   :  { %v2381_v56 = vpack.c.bf16 %v2378_v12, %v2376_v36 }
 0x746   :  { %2522 = vmatmul.bf16.vlgmr.msrb.gmra.mxu0 %v2381_v56 }
 0x75b   :  { %v2537_v49 = vpop.f32.mrf.mxu3 }
 0x763   :  { %v2539_v6 = vpop.f32.mrf.mxu3 }
 0x7b0   :  { %v2288_v19 = vpop.f32.mrf.mxu1 }
 0x7b1   :  { %v2289_v50 = vadd.f32 %v3268_v42, %v2288_v19 }
 0x7b3   :  { %v4673_v59 = vadd.f32 %v2306_v26, %v2289_v50 }
 0x7b5   :  { %v2315_v4 = vmul.f32 %v4673_v59, %v4673_v59 }
 0x7b7   :  { %v2319_v53 = vsel %vm2318_vm10, %v2315_v4, 0.0 }
 0x7b8   :  { %v2290_v58 = vpop.f32.mrf.mxu1 }
 0x7b9   :  { %v2291_v39 = vadd.f32 %v3268_v42, %v2290_v58 }
 0x7bb   :  { %v4660_v20 = vadd.f32 %v2308_v46, %v2291_v39 }
 0x7bd   :  { %v2316_v5 = vmul.f32 %v4660_v20, %v4660_v20 }
 0x7bf   :  { %v2322_v40 = vsel %vm2318_vm10, %v2316_v5, 0.0 }
 0x7c0   :  { %v2293_v61 = vpop.f32.mrf.mxu1  ;;  %2323 = vadd.xlane.f32.xlu1 %v2322_v40 }
 0x7c1   :  { %v2294_v48 = vadd.f32 %v3268_v42, %v2293_v61 }
 0x7c3   :  { %v2523_v1 = vpop.f32.mrf.mxu0  ;;  %v4667_v41 = vadd.f32 %v2311_v33, %v2294_v48 }
 0x7c4   :  { %v2524_v3 = vadd.f32 %v3269_v0, %v2523_v1 }
 0x7c5   :  { %v2317_v62 = vmul.f32 %v4667_v41, %v4667_v41 }
 0x7c6   :  { %v4664_v38 = vadd.f32 %v2537_v49, %v2524_v3 }
 0x7c7   :  { %v2325_v51 = vsel %vm2318_vm10, %v2317_v62, 0.0 }
 0x7c8   :  { %v2542_v27 = vmul.f32 %v4664_v38, %v4664_v38  ;;  %v2295_v17 = vpop.f32.mrf.mxu1  ;;  %2326 = vadd.xlane.f32.xlu0 %v2325_v51  ;;  %v3203_v51 = vld [vmem:[%s4732_s20] sm:$0xff] }
 0x7ca   :  { %v2544_v23 = vsel %vm2318_vm10, %v2542_v27, 0.0 }
 0x7cb   :  { %v2525_v10 = vpop.f32.mrf.mxu0  ;;  %2545 = vadd.xlane.f32.xlu1 %v2544_v23 }
 0x7cc   :  { %v2526_v7 = vadd.f32 %v3269_v0, %v2525_v10 }
 0x7ce   :  { %v4675_v15 = vadd.f32 %v2539_v6, %v2526_v7  ;;  %v3202_v7 = vld [vmem:[%s4731_s19] sm:$0xff]  ;;  %s3397_s19 = smov [#allocation10]  }
 0x7cf   :  { %s2666_s2 = sshll.u32 %s3397_s19, 4  ;;  %s2667_s2 = int_to_ptr.vmem [resolvable:$true] %s2666_s2 }
 0x7d0   :  { %v2543_v47 = vmul.f32 %v4675_v15, %v4675_v15  ;;  %2320 = vadd.xlane.f32.xlu0 %v2319_v53 }
 0x7d2   :  { %v2547_v35 = vsel %vm2318_vm10, %v2543_v47, 0.0 }
 0x7d3   :  { %2548 = vadd.xlane.f32.xlu2 %v2547_v35 }
 0x833   :  { %v2324_v22 = vpop.xlane.xlu1 %2323 }
 0x834   :  { %v2329_v2 = vmax.f32 %v2324_v22, 1e-24 }
 0x836   :  { %3270 = vrsqrt.f32 %v2329_v2  ;;  %vm2347_vm9 = vweird.f32 %v2329_v2 }
 0x83b   :  { %v2327_v60 = vpop.xlane.xlu0 %2326 }
 0x83c   :  { %v2330_v52 = vmax.f32 %v2327_v60, 1e-24  ;;  %v4685_v8 = vpop.eup %3270 }
 0x83d   :  { %v2342_v13 = vmul.f32 %v4685_v8, %v2329_v2  ;;  %vm2348_vm3 = vweird.f32 %v4685_v8 }
 0x83e   :  { %v2546_v43 = vpop.xlane.xlu1 %2545  ;;  %3272 = vrsqrt.f32 %v2330_v52  ;;  %vm2357_vm13 = vweird.f32 %v2330_v52 }
 0x83f   :  { %v2550_v14 = vmax.f32 %v2546_v43, 1e-24  ;;  %v2343_v44 = vmul.f32 %v4685_v8, %v2342_v13 }
 0x841   :  { %3274 = vrsqrt.f32 %v2550_v14  ;;  %v2344_v31 = vmul.f32 0.5, %v2343_v44  ;;  %vm2558_vm1 = vweird.f32 %v2550_v14 }
 0x843   :  { %v2321_v11 = vpop.xlane.xlu0 %2320  ;;  %v2345_v56 = vsub.f32 1.5, %v2344_v31 }
 0x844   :  { %v3273_v32 = vpop.eup %3272  ;;  %v2328_v45 = vmax.f32 %v2321_v11, 1e-24 }
 0x845   :  { %v2352_v54 = vmul.f32 %v3273_v32, %v2330_v52  ;;  %vm2358_vm12 = vweird.f32 %v3273_v32  ;;  %v2346_v39 = vmul.f32 %v4685_v8, %v2345_v56 }
 0x846   :  { %v2549_v28 = vpop.xlane.xlu2 %2548  ;;  %vm2359_vm15 = vmor %vm2357_vm13, %vm2358_vm12  ;;  %vm2337_vm13 = vweird.f32 %v2328_v45 }
 0x847   :  { %v2551_v55 = vmax.f32 %v2549_v28, 1e-24  ;;  %v3275_v24 = vpop.eup %3274  ;;  %v2353_v63 = vmul.f32 %v3273_v32, %v2352_v54  ;;  %vm2349_vm12 = vmor %vm2347_vm9, %vm2348_vm3 }
 0x848   :  { %v2553_v30 = vmul.f32 %v3275_v24, %v2550_v14  ;;  %vm2559_vm14 = vweird.f32 %v3275_v24 }
 0x849   :  { %3276 = vrsqrt.f32 %v2551_v55  ;;  %v2354_v34 = vmul.f32 0.5, %v2353_v63  ;;  %vm2560_vm6 = vmor %vm2558_vm1, %vm2559_vm14  ;;  %vm2568_vm7 = vweird.f32 %v2551_v55 }
 0x84a   :  { %3278 = vrsqrt.f32 %v2328_v45  ;;  %v2554_v18 = vmul.f32 %v3275_v24, %v2553_v30 }
 0x84b   :  { %v2355_v36 = vsub.f32 1.5, %v2354_v34 }
 0x84c   :  { %v2555_v37 = vmul.f32 0.5, %v2554_v18 }
 0x84d   :  { %v2356_v46 = vmul.f32 %v3273_v32, %v2355_v36 }
 0x84e   :  { %v2556_v57 = vsub.f32 1.5, %v2555_v37 }
 0x84f   :  { %v3277_v25 = vpop.eup %3276  ;;  %v2360_v42 = vsel %vm2359_vm15, %v3273_v32, %v2356_v46 }
 0x850   :  { %v2563_v9 = vmul.f32 %v3277_v25, %v2551_v55  ;;  %v3279_v12 = vpop.eup %3278  ;;  %v2557_v33 = vmul.f32 %v3275_v24, %v2556_v57  ;;  %vm2569_vm2 = vweird.f32 %v3277_v25  ;;  %v2363_v58 = vmul.f32 %v2360_v42, %v4667_v41 }
 0x851   :  { %v2332_v26 = vmul.f32 %v3279_v12, %v2328_v45  ;;  %vm2570_vm8 = vmor %vm2568_vm7, %vm2569_vm2  ;;  %vm2338_vm11 = vweird.f32 %v3279_v12  ;;  %v2350_v41 = vsel %vm2349_vm12, %v4685_v8, %v2346_v39 }
 0x852   :  { %v2564_v29 = vmul.f32 %v3277_v25, %v2563_v9  ;;  %v2561_v0 = vsel %vm2560_vm6, %v3275_v24, %v2557_v33  ;;  %v2602_v3 = vpack.c.bf16 %v2363_v58, %v2363_v58  ;;  %vm2339_vm14 = vmor %vm2337_vm13, %vm2338_vm11 }
 0x853   :  { %v2333_v19 = vmul.f32 %v3279_v12, %v2332_v26  ;;  %v2572_v61 = vmul.f32 %v2561_v0, %v4664_v38  ;;  %v2362_v38 = vmul.f32 %v2350_v41, %v4660_v20  ;;  %v3396_v20 = vmov 1.0  }
 0x854   :  { %v2565_v16 = vmul.f32 0.5, %v2564_v29  ;;  %v2612_v50 = vsel %vm448_vm5, %v2602_v3, 0 }
 0x855   :  { %v2334_v1 = vmul.f32 0.5, %v2333_v19  ;;  %2620 = vmatpush.bf16.msra.mxu3 %v2612_v50 }
 0x856   :  { %v2566_v21 = vsub.f32 1.5, %v2565_v16 }
 0x857   :  { %v2335_v40 = vsub.f32 1.5, %v2334_v1 }
 0x858   :  { %v2567_v49 = vmul.f32 %v3277_v25, %v2566_v21 }
 0x859   :  { %v2336_v27 = vmul.f32 %v3279_v12, %v2335_v40 }
 0x85a   :  { %v2571_v5 = vsel %vm2570_vm8, %v3277_v25, %v2567_v49 }
 0x85b   :  { %v2573_v48 = vmul.f32 %v2571_v5, %v4675_v15  ;;  %v2340_v6 = vsel %vm2339_vm14, %v3279_v12, %v2336_v27 }
 0x85c   :  { %v2361_v62 = vmul.f32 %v2340_v6, %v4673_v59 }
 0x85d   :  { %v2576_v10 = vpack.c.bf16 %v2573_v48, %v2572_v61 }
 0x85e   :  { %v2601_v15 = vpack.c.bf16 %v2362_v38, %v2361_v62 }
 0x85f   :  { %2592 = vmatpush.bf16.msra.mxu0 %v2576_v10 }
 0x860   :  { %2621 = vmatpush.bf16.msra.mxu3 %v2601_v15 }
 0x862   :  { %3095 = vmatmul.msk.bf16.vlgmr.msra.gmra.mxu0 %vm150_vm0, %v3202_v7  ;;  %vm2659_vm0 = vcmask 122880  }
 0x863   :  { %3100 = vmatmul.msk.bf16.vlgmr.msra.gmra.mxu3 %vm160_vm4, %v3203_v51 }
 0x8df   :  { %v2594_v23 = vpop.f32.mrf.mxu0 }
 0x8e6   :  { %v2623_v17 = vpop.f32.mrf.mxu3 }
 0x8e7   :  { %v2596_v47 = vpop.f32.mrf.mxu0  ;;  %v2628_v59 = vmul.f32 %v2623_v17, %v2594_v23 }
 0x8ee   :  { %v2625_v35 = vpop.f32.mrf.mxu3 }
 0x8ef   :  { %v2629_v4 = vmul.f32 %v2625_v35, %v2596_v47 }
 0x8f1   :  { %3101 = vmatpush.xpose.msk.msrb.mxu1 %vm2318_vm10, %v2629_v4 }
 0x8f5   :  { %3102 = vmatpush.xpose.msk.msrb.mxu1 %vm2318_vm10, %v2628_v59 }
 0x8f8   :  { %3103 = vmatmul.msk.f32.vlgmr.msrb.gmra.mxu1 %vm2318_vm10, %v3396_v20 }
 0x975   :  { %v2656_v53 = vpop.f32.mrf.mxu1 }
 0x976   :  { %2660 = vst.msk [vmem:[#allocation10] sm:$0x1] %vm2659_vm0, %v2656_v53 }
 0x977   :  { %2671 = dma.vmem_to_hbm [thread:$0]  %s2667_s2, 16, %s2669_s29, [#allocation6]  }
 0x978   :  { %3384 = dma.done.wait [#allocation6], 16  }
 0x979   :  { %3385 = vsyncadd [#allocation6], 4294967280 }
 0x97a   :  { %2676 = vsyncpa [#allocation5], 1 }
 0x97b   :  { %2677 = vsyncpa [#allocation8], 1 }
 0x97c   :  { %2678 = vsyncpa [#allocation6], 1 }

</bundles_post_ra>
